<compile_context>
chip_gen: v7x
topology: tpu7x:2x2x1
jax: 0.10.0
libtpu: 0.0.40
codegen_flags: <defaults>
</compile_context>

<pallas_src>
import jax
import jax.numpy as jnp
from jax import lax
from jax.experimental import pallas as pl
from jax.experimental.pallas import tpu as pltpu

LANES = 128
C1_PAD = 16          # conv1 out channels padded 10 -> 16 (lane count of HBM intermediate)
C2_PAD = 32          # conv2 out channels padded 20 -> 32 (VMEM-only)
F1 = 25              # conv1 im2col features (5*5*1)  — no pad, Mosaic pads K lanes free
F2 = 250             # conv2 im2col features (5*5*10)
POS = 16             # 4x4 pooled positions after conv2 (x.view(-1, 320) -> 16 * 20)
VMEM_LIMIT = 32 * 1024 * 1024   # safe on v5e/v6e (128 MiB) and v7x (64 MiB physical)


def _round_up(n, m):
    return -(-n // m) * m


def _pick_tile(n, max_tile, mult=16):
    """Row tile: multiple of `mult`, capped at max_tile, and (when possible) small
    enough for >= 2 grid steps so ("parallel",) shards across both v7x TensorCores."""
    t = _round_up(max(1, -(-n // 2)), mult)
    return max(mult, min(max_tile, t))


# ----------------------------------------------------------------------------
# Kernel 1: conv1 (1->10, k=5) + 2x2 max-pool + relu, one GEMM per row tile
# ----------------------------------------------------------------------------

def conv_pool_relu_kernel(p_ref, w_ref, b_ref, o_ref):
    """p_ref: [4, T, F] pool-phase im2col patches (bf16)
       w_ref: [F, C]    conv weight as GEMM matrix, Cout zero-padded (bf16)
       b_ref: [1, C]    bias (f32)
       o_ref: [T, C]    pooled + relu'd activations (bf16)."""
    t = o_ref.shape[0]
    f = p_ref.shape[-1]
    # [4,T,F] -> [4T,F]: leading-dim merge with the lane dim untouched and T a
    # multiple of the (packed) sublane tile -> a free layout no-op.  (The previous
    # jnp.concatenate materialized a full VMEM copy of the patch slab every step.)
    p = p_ref[...].reshape(4 * t, f)
    y = jnp.dot(p, w_ref[...], preferred_element_type=jnp.float32)          # [4T, C]
    # 2x2 max-pool across the four phase slabs.  Bias added AFTER the max: valid
    # only because the bias is a per-channel constant (commutes with max).
    m = jnp.maximum(jnp.maximum(y[0:t], y[t:2 * t]),
                    jnp.maximum(y[2 * t:3 * t], y[3 * t:4 * t]))
    m = m + b_ref[...]
    # epilogue kept in f32 (v5e has no bf16 VPU); cast only at the store
    o_ref[...] = jnp.maximum(m, 0.0).astype(o_ref.dtype)


def _conv1_stage(phases, w, b, *, max_tile=4096):
    _, n, f = phases.shape
    c = w.shape[1]
    tile = _pick_tile(n, max_tile)
    n_pad = _round_up(n, tile)
    if n_pad != n:
        phases = jnp.pad(phases, ((0, 0), (0, n_pad - n), (0, 0)))
    steps = n_pad // tile
    flops = 2 * 4 * n_pad * f * c
    bytes_accessed = 4 * n_pad * f * 2 + n_pad * c * 2 + steps * (f * c * 2 + c * 4)
    out = pl.pallas_call(
        conv_pool_relu_kernel,
        out_shape=jax.ShapeDtypeStruct((n_pad, c), jnp.bfloat16),
        grid=(n_pad // tile,),
        in_specs=[
            # streaming patch slab (double-buffered by default; pl.Buffered(3) is a
            # cheap knob here if a profile shows exposed DMA)
            pl.BlockSpec((4, tile, f), lambda i: (0, i, 0)),
            pl.BlockSpec((f, c), lambda i: (0, 0)),
            pl.BlockSpec((1, c), lambda i: (0, 0)),
        ],
        # 16-lane output (10 real channels): masked stores in-kernel (plenty of
        # store-slot slack) in exchange for 8x less HBM write+re-read traffic.
        out_specs=pl.BlockSpec((tile, c), lambda i: (i, 0)),
        compiler_params=pltpu.CompilerParams(
            dimension_semantics=("parallel",),
            vmem_limit_bytes=VMEM_LIMIT),
        cost_estimate=pl.CostEstimate(flops=flops, transcendentals=0,
                                      bytes_accessed=bytes_accessed),
    )(phases, w, b)
    return out[:n]


# ----------------------------------------------------------------------------
# Kernel 2 (fused tail): conv2 + pool + relu + fc1 + relu + fc2 + log_softmax
# gridded over batch tiles — conv2's activation never leaves VMEM.
# ----------------------------------------------------------------------------

def conv2_head_kernel(p_ref, w2_ref, b2_ref, fw1_ref, fb1_ref, fw2_ref, fb2_ref,
                      o_ref):
    """p_ref:  [4, 16, Bt, 250] conv2 pool-phase patches, rows (phase, pos, b), bf16
       w2_ref: [250, 32]  conv2 weight as GEMM matrix (bf16)
       b2_ref: [1, 32]    conv2 bias (f32)
       fw1_ref:[16, 32, 128] fc1 weight, refolded per pooled position (bf16)
       fb1_ref:[1, 128]   fc1 bias (f32)
       fw2_ref:[128, 128] fc2 weight (bf16)
       fb2_ref:[1, 128]   fc2 bias; padded class cols hold -1e30 (f32)
       o_ref:  [Bt, 128]  log-probs; ONLY columns 0..9 are valid classes (f32)."""
    bt = o_ref.shape[0]
    n_pos = p_ref.shape[1]
    f = p_ref.shape[-1]
    t = n_pos * bt

    # conv2 as ONE GEMM over all 4 phases x 16 positions x Bt images (free reshape).
    p = p_ref[...].reshape(4 * t, f)
    y = jnp.dot(p, w2_ref[...], preferred_element_type=jnp.float32)        # [4t, 32]
    m = jnp.maximum(jnp.maximum(y[0:t], y[t:2 * t]),
                    jnp.maximum(y[2 * t:3 * t], y[3 * t:4 * t]))           # [t, 32]
    a2 = jnp.maximum(m + b2_ref[...], 0.0).astype(jnp.bfloat16)            # rows (pos, b)
    # TODO(synk): Dropout2d / F.dropout training-mode RNG masking not implemented
    # (eval-mode identity).

    # fc1 == x.view(-1,320) @ W1^T, decomposed per pooled position: 16 small
    # [Bt,32]@[32,128] MXU matmuls, so the [16*Bt, 32] activation never needs a
    # row->lane relayout inside the kernel.
    h = jnp.zeros((bt, LANES), jnp.float32)
    for p_i in range(n_pos):                       # unrolled, static slices
        h = h + jnp.dot(a2[p_i * bt:(p_i + 1) * bt], fw1_ref[p_i],
                        preferred_element_type=jnp.float32)
    h = jnp.maximum(h + fb1_ref[...], 0.0).astype(jnp.bfloat16)

    logits = jnp.dot(h, fw2_ref[...], preferred_element_type=jnp.float32) + fb2_ref[...]
    # log_softmax in f32; padded class columns carry a -1e30 bias so they vanish from
    # the sum.  Output stays f32 (so -1e30 stays finite); only cols 0..9 are consumed.
    mx = jnp.max(logits, axis=-1, keepdims=True)
    s = logits - mx
    lse = jnp.log(jnp.sum(jnp.exp(s), axis=-1, keepdims=True))
    o_ref[...] = (s - lse).astype(o_ref.dtype)


def _conv2_head(pp2, w2, b2, fw1, fb1, fw2, fb2, *, max_bt=64):
    _, n_pos, b, f = pp2.shape
    bt = _pick_tile(b, max_bt)
    b_pad = _round_up(b, bt)
    if b_pad != b:
        pp2 = jnp.pad(pp2, ((0, 0), (0, 0), (0, b_pad - b), (0, 0)))
    steps = b_pad // bt
    flops = 2 * b_pad * (4 * n_pos * f * C2_PAD + n_pos * C2_PAD * LANES + LANES * LANES)
    w_bytes = (f * C2_PAD * 2 + C2_PAD * 4 + n_pos * C2_PAD * LANES * 2
               + LANES * 4 + LANES * LANES * 2 + LANES * 4)
    bytes_accessed = 4 * n_pos * b_pad * f * 2 + b_pad * LANES * 4 + steps * w_bytes
    out = pl.pallas_call(
        conv2_head_kernel,
        out_shape=jax.ShapeDtypeStruct((b_pad, LANES), jnp.float32),
        grid=(b_pad // bt,),
        in_specs=[
            pl.BlockSpec((4, n_pos, bt, f), lambda i: (0, 0, i, 0)),
            pl.BlockSpec((f, C2_PAD), lambda i: (0, 0)),
            pl.BlockSpec((1, C2_PAD), lambda i: (0, 0)),
            pl.BlockSpec((n_pos, C2_PAD, LANES), lambda i: (0, 0, 0)),
            pl.BlockSpec((1, LANES), lambda i: (0, 0)),
            pl.BlockSpec((LANES, LANES), lambda i: (0, 0)),
            pl.BlockSpec((1, LANES), lambda i: (0, 0)),
        ],
        out_specs=pl.BlockSpec((bt, LANES), lambda i: (i, 0)),
        compiler_params=pltpu.CompilerParams(
            dimension_semantics=("parallel",),
            vmem_limit_bytes=VMEM_LIMIT),
        cost_estimate=pl.CostEstimate(flops=flops, transcendentals=b_pad * LANES,
                                      bytes_accessed=bytes_accessed),
    )(pp2, w2, b2, fw1, fb1, fw2, fb2)
    return out[:b, :10]


# ----------------------------------------------------------------------------
# XLA-side glue: pool-phase im2col as ONE fused gather per stage (no pad pass,
# no separate phase re-stack pass).
# ----------------------------------------------------------------------------

def _phase_patches(x, k):
    """[B,H,W,C] -> [4, B, PH, PW, K*K*C]; feature order (kh, kw, ci); the 4 leading
    slabs are the 2x2 pooling phases of the stride-1 conv output."""
    bsz, h, w, c = x.shape
    ph, pw = (h - k + 1) // 2, (w - k + 1) // 2
    slabs = []
    for py in (0, 1):
        for px in (0, 1):
            cols = [x[:, py + i: py + i + 2 * ph: 2, px + j: px + j + 2 * pw: 2, :]
                    for i in range(k) for j in range(k)]
            slabs.append(jnp.concatenate(cols, axis=-1))        # [B, PH, PW, K*K*C]
    return jnp.stack(slabs, axis=0)


def net_forward(x_nchw, params):
    bsz = x_nchw.shape[0]
    # NCHW with C=1 -> NHWC is a pure reshape (no transpose needed)
    x = x_nchw.reshape(bsz, 28, 28, 1).astype(jnp.bfloat16)

    # conv1 (1->10, k=5) + maxpool2 + relu
    pp1 = _phase_patches(x, 5).reshape(4, bsz * 144, F1)         # [4, B*144, 25]
    y1 = _conv1_stage(pp1, params["w1"], params["b1"])           # [B*144, 16] bf16
    y1 = y1.reshape(bsz, 12, 12, C1_PAD)[..., :10]               # real channels only

    # conv2 + Dropout2d(identity) + maxpool2 + relu + fc1 + relu + dropout(identity)
    # + fc2 + log_softmax, fused in one kernel.  Patch rows are reordered to
    # (phase, pos, batch) so the kernel's per-position fc1 matmuls see clean blocks.
    pp2 = _phase_patches(y1, 5)                                  # [4, B, 4, 4, 250]
    pp2 = jnp.transpose(pp2, (0, 2, 3, 1, 4)).reshape(4, POS, bsz, F2)
    return _conv2_head(pp2, params["w2"], params["b2"],
                       params["fw1"], params["fb1"],
                       params["fw2"], params["fb2"])             # [B, 10] f32


# ----------------------------------------------------------------------------
# Deterministic synthetic parameters (shapes from Net.__init__) + conversion
# ----------------------------------------------------------------------------

def init_params():
    key = jax.random.PRNGKey(0)
    ks = jax.random.split(key, 8)
    s = 0.1
    tp = {   # PyTorch-layout f32 reference parameters
        "w1": s * jax.random.normal(ks[0], (10, 1, 5, 5), jnp.float32),
        "b1": s * jax.random.normal(ks[1], (10,), jnp.float32),
        "w2": s * jax.random.normal(ks[2], (20, 10, 5, 5), jnp.float32),
        "b2": s * jax.random.normal(ks[3], (20,), jnp.float32),
        "fw1": s * jax.random.normal(ks[4], (50, 320), jnp.float32),
        "fb1": s * jax.random.normal(ks[5], (50,), jnp.float32),
        "fw2": s * jax.random.normal(ks[6], (10, 50), jnp.float32),
        "fb2": s * jax.random.normal(ks[7], (10,), jnp.float32),
    }

    def conv_gemm(w, c_pad):
        # [Cout,Cin,KH,KW] -> [KH*KW*Cin, Cout] in (kh,kw,ci) row order,
        # Cout zero-padded to c_pad, bf16.  K rows are NOT padded (Mosaic pads lanes).
        co, ci, kh, kw = w.shape
        g = jnp.transpose(w, (2, 3, 1, 0)).reshape(kh * kw * ci, co)
        g = jnp.pad(g, ((0, 0), (0, c_pad - co)))
        return g.astype(jnp.bfloat16)

    def pad_bias(v, width, fill=0.0):
        return jnp.full((1, width), fill, jnp.float32).at[0, :v.shape[0]].set(v)

    # fc1: fold torch's x.view(-1,320) (NCHW (c,h,w) order) + the 32-channel padding,
    # then split per pooled position (h,w) for the kernel's 16 K=32 matmuls.
    fw1 = tp["fw1"].T.reshape(20, 4, 4, 50)            # rows (c,h,w) -> [c,h,w,j]
    fw1 = jnp.transpose(fw1, (1, 2, 0, 3))             # [h,w,c,j]
    fw1 = jnp.pad(fw1, ((0, 0), (0, 0), (0, C2_PAD - 20), (0, LANES - 50)))
    fw1 = fw1.reshape(POS, C2_PAD, LANES).astype(jnp.bfloat16)

    fw2 = jnp.pad(tp["fw2"].T, ((0, LANES - 50), (0, LANES - 10))).astype(jnp.bfloat16)
    # Padded class columns get a very negative bias so they drop out of log_softmax.
    # Safe only while logits / the kernel output stay f32 (documented in the kernel).
    fb2 = jnp.full((1, LANES), -1e30, jnp.float32).at[0, :10].set(tp["fb2"])

    kp = {
        "w1": conv_gemm(tp["w1"], C1_PAD), "b1": pad_bias(tp["b1"], C1_PAD),
        "w2": conv_gemm(tp["w2"], C2_PAD), "b2": pad_bias(tp["b2"], C2_PAD),
        "fw1": fw1, "fb1": pad_bias(tp["fb1"], LANES),
        "fw2": fw2, "fb2": fb2,
    }
    return kp, tp


# ----------------------------------------------------------------------------
# Plain-JAX f32 reference of the PyTorch forward (correctness cross-check)
# ----------------------------------------------------------------------------

def _maxpool2_nchw(x):
    return lax.reduce_window(x, -jnp.inf, lax.max, (1, 1, 2, 2), (1, 1, 2, 2), "VALID")


def torch_reference(x, tp):
    dn = ("NCHW", "OIHW", "NCHW")
    x = lax.conv_general_dilated(x, tp["w1"], (1, 1), "VALID", dimension_numbers=dn)
    x = jnp.maximum(_maxpool2_nchw(x + tp["b1"][None, :, None, None]), 0.0)
    x = lax.conv_general_dilated(x, tp["w2"], (1, 1), "VALID", dimension_numbers=dn)
    x = jnp.maximum(_maxpool2_nchw(x + tp["b2"][None, :, None, None]), 0.0)
    x = x.reshape(x.shape[0], 320)
    x = jnp.maximum(x @ tp["fw1"].T + tp["fb1"], 0.0)
    x = x @ tp["fw2"].T + tp["fb2"]
    return jax.nn.log_softmax(x, axis=1)


if __name__ == "__main__":
    key = jax.random.PRNGKey(0)
    # MNIST-shaped input (28x28 is required by the x.view(-1, 320) in forward)
    x = jax.random.normal(key, (2, 1, 28, 28), jnp.float32)
    params, torch_params = init_params()

    out = jax.jit(net_forward)(x, params)
    out = jax.block_until_ready(out)

    assert out.shape == (2, 10)
    # rows of log_softmax must sum to ~1 in prob space
    assert bool(jnp.all(jnp.abs(jnp.sum(jnp.exp(out), axis=1) - 1.0) < 1e-3))
    # cross-check against a plain-JAX f32 reference of the PyTorch forward.
    # Tolerance tightened from 0.25; the floor is set by bf16 weights/activations
    # vs the f32 reference (~1e-2), so 0.08 still catches any layout/fold bug
    # (those produce O(0.5+) errors).
    ref = torch_reference(x, torch_params)
    assert bool(jnp.max(jnp.abs(out - ref)) < 0.08), "mismatch vs f32 reference"
    print("KERNEL_OK")
</pallas_src>

<mosaic_0001>
module attributes {stable_mosaic.version = 11 : i64} {
  func.func @conv_pool_relu_kernel(%arg0: i32, %arg1: memref<4x144x25xbf16, #tpu.memory_space<vmem>>, %arg2: memref<25x16xbf16, #tpu.memory_space<vmem>>, %arg3: memref<1x16xf32, #tpu.memory_space<vmem>>, %arg4: memref<144x16xbf16, #tpu.memory_space<vmem>>) attributes {dimension_semantics = [#tpu.dimension_semantics<parallel>], iteration_bounds = array<i64: 2>, scalar_prefetch = 0 : i64, scratch_operands = 0 : i64, tpu.core_type = #tpu.core_type<tc>, window_params = [{transform_indices = @transform_0, window_bounds = array<i64: 4, 144, 25>}, {pipeline_mode = #tpu.pipeline_mode<synchronous>, transform_indices = @transform_1, window_bounds = array<i64: 25, 16>}, {pipeline_mode = #tpu.pipeline_mode<synchronous>, transform_indices = @transform_2, window_bounds = array<i64: 1, 16>}, {transform_indices = @transform_3, window_bounds = array<i64: 144, 16>}]} {
    %c0 = arith.constant 0 : index
    %c0_0 = arith.constant 0 : index
    %c0_1 = arith.constant 0 : index
    %0 = vector.load %arg1[%c0, %c0_0, %c0_1] : memref<4x144x25xbf16, #tpu.memory_space<vmem>>, vector<4x144x25xbf16>
    %1 = vector.shape_cast %0 : vector<4x144x25xbf16> to vector<576x25xbf16>
    %c0_2 = arith.constant 0 : index
    %c0_3 = arith.constant 0 : index
    %2 = vector.load %arg2[%c0_2, %c0_3] : memref<25x16xbf16, #tpu.memory_space<vmem>>, vector<25x16xbf16>
    %cst = arith.constant dense<0.000000e+00> : vector<576x16xf32>
    %3 = tpu.matmul %1, %2, %cst {dimension_numbers = #tpu.dot_dimension_numbers<[1], [0], [0], [1], [0, 0, 1, 1], [], []>} : vector<576x25xbf16>, vector<25x16xbf16>, vector<576x16xf32> -> vector<576x16xf32>
    %4 = vector.extract_strided_slice %3 {offsets = [0, 0], sizes = [144, 16], strides = [1, 1]} : vector<576x16xf32> to vector<144x16xf32>
    %5 = vector.extract_strided_slice %3 {offsets = [144, 0], sizes = [144, 16], strides = [1, 1]} : vector<576x16xf32> to vector<144x16xf32>
    %6 = arith.maximumf %4, %5 : vector<144x16xf32>
    %7 = vector.extract_strided_slice %3 {offsets = [288, 0], sizes = [144, 16], strides = [1, 1]} : vector<576x16xf32> to vector<144x16xf32>
    %8 = vector.extract_strided_slice %3 {offsets = [432, 0], sizes = [144, 16], strides = [1, 1]} : vector<576x16xf32> to vector<144x16xf32>
    %9 = arith.maximumf %7, %8 : vector<144x16xf32>
    %10 = arith.maximumf %6, %9 : vector<144x16xf32>
    %c0_4 = arith.constant 0 : index
    %c0_5 = arith.constant 0 : index
    %11 = vector.load %arg3[%c0_4, %c0_5] : memref<1x16xf32, #tpu.memory_space<vmem>>, vector<1x16xf32>
    %12 = vector.broadcast %11 : vector<1x16xf32> to vector<144x16xf32>
    %13 = arith.addf %10, %12 : vector<144x16xf32>
    %cst_6 = arith.constant 0.000000e+00 : f32
    %14 = vector.broadcast %cst_6 : f32 to vector<144x16xf32>
    %15 = arith.maximumf %13, %14 : vector<144x16xf32>
    %16 = arith.truncf %15 : vector<144x16xf32> to vector<144x16xbf16>
    %c0_7 = arith.constant 0 : index
    %c0_8 = arith.constant 0 : index
    %17 = vector.load %arg4[%c0_7, %c0_8] : memref<144x16xbf16, #tpu.memory_space<vmem>>, vector<144x16xbf16>
    tpu.vector_store %arg4[%c0_7, %c0_8], %16 {strides = array<i32>} : memref<144x16xbf16, #tpu.memory_space<vmem>>, vector<144x16xbf16>,
    return
  }
  func.func @transform_0(%arg0: i32) -> (i32, i32, i32) {
    %c0_i32 = arith.constant 0 : i32
    %c0_i32_0 = arith.constant 0 : i32
    %c0_i32_1 = arith.constant 0 : i32
    return %c0_i32, %arg0, %c0_i32_0 : i32, i32, i32
  }
  func.func @transform_1(%arg0: i32) -> (i32, i32) {
    %c0_i32 = arith.constant 0 : i32
    %c0_i32_0 = arith.constant 0 : i32
    %c0_i32_1 = arith.constant 0 : i32
    return %c0_i32, %c0_i32_0 : i32, i32
  }
  func.func @transform_2(%arg0: i32) -> (i32, i32) {
    %c0_i32 = arith.constant 0 : i32
    %c0_i32_0 = arith.constant 0 : i32
    %c0_i32_1 = arith.constant 0 : i32
    return %c0_i32, %c0_i32_0 : i32, i32
  }
  func.func @transform_3(%arg0: i32) -> (i32, i32) {
    %c0_i32 = arith.constant 0 : i32
    %c0_i32_0 = arith.constant 0 : i32
    return %arg0, %c0_i32 : i32, i32
  }
}

module attributes {stable_mosaic.version = 11 : i64} {
  func.func @conv2_head_kernel(%arg0: i32, %arg1: memref<4x16x16x250xbf16, #tpu.memory_space<vmem>>, %arg2: memref<250x32xbf16, #tpu.memory_space<vmem>>, %arg3: memref<1x32xf32, #tpu.memory_space<vmem>>, %arg4: memref<16x32x128xbf16, #tpu.memory_space<vmem>>, %arg5: memref<1x128xf32, #tpu.memory_space<vmem>>, %arg6: memref<128x128xbf16, #tpu.memory_space<vmem>>, %arg7: memref<1x128xf32, #tpu.memory_space<vmem>>, %arg8: memref<16x128xf32, #tpu.memory_space<vmem>>) attributes {dimension_semantics = [#tpu.dimension_semantics<parallel>], iteration_bounds = array<i64: 1>, scalar_prefetch = 0 : i64, scratch_operands = 0 : i64, tpu.core_type = #tpu.core_type<tc>, window_params = [{transform_indices = @transform_0, window_bounds = array<i64: 4, 16, 16, 250>}, {pipeline_mode = #tpu.pipeline_mode<synchronous>, transform_indices = @transform_1, window_bounds = array<i64: 250, 32>}, {pipeline_mode = #tpu.pipeline_mode<synchronous>, transform_indices = @transform_2, window_bounds = array<i64: 1, 32>}, {pipeline_mode = #tpu.pipeline_mode<synchronous>, transform_indices = @transform_3, window_bounds = array<i64: 16, 32, 128>}, {pipeline_mode = #tpu.pipeline_mode<synchronous>, transform_indices = @transform_4, window_bounds = array<i64: 1, 128>}, {pipeline_mode = #tpu.pipeline_mode<synchronous>, transform_indices = @transform_5, window_bounds = array<i64: 128, 128>}, {pipeline_mode = #tpu.pipeline_mode<synchronous>, transform_indices = @transform_6, window_bounds = array<i64: 1, 128>}, {transform_indices = @transform_7, window_bounds = array<i64: 16, 128>}]} {
    %c0 = arith.constant 0 : index
    %c0_0 = arith.constant 0 : index
    %c0_1 = arith.constant 0 : index
    %c0_2 = arith.constant 0 : index
    %0 = vector.load %arg1[%c0, %c0_0, %c0_1, %c0_2] : memref<4x16x16x250xbf16, #tpu.memory_space<vmem>>, vector<4x16x16x250xbf16>
    %1 = vector.shape_cast %0 : vector<4x16x16x250xbf16> to vector<1024x250xbf16>
    %c0_3 = arith.constant 0 : index
    %c0_4 = arith.constant 0 : index
    %2 = vector.load %arg2[%c0_3, %c0_4] : memref<250x32xbf16, #tpu.memory_space<vmem>>, vector<250x32xbf16>
    %cst = arith.constant dense<0.000000e+00> : vector<1024x32xf32>
    %3 = tpu.matmul %1, %2, %cst {dimension_numbers = #tpu.dot_dimension_numbers<[1], [0], [0], [1], [0, 0, 1, 1], [], []>} : vector<1024x250xbf16>, vector<250x32xbf16>, vector<1024x32xf32> -> vector<1024x32xf32>
    %4 = vector.extract_strided_slice %3 {offsets = [0, 0], sizes = [256, 32], strides = [1, 1]} : vector<1024x32xf32> to vector<256x32xf32>
    %5 = vector.extract_strided_slice %3 {offsets = [256, 0], sizes = [256, 32], strides = [1, 1]} : vector<1024x32xf32> to vector<256x32xf32>
    %6 = arith.maximumf %4, %5 : vector<256x32xf32>
    %7 = vector.extract_strided_slice %3 {offsets = [512, 0], sizes = [256, 32], strides = [1, 1]} : vector<1024x32xf32> to vector<256x32xf32>
    %8 = vector.extract_strided_slice %3 {offsets = [768, 0], sizes = [256, 32], strides = [1, 1]} : vector<1024x32xf32> to vector<256x32xf32>
    %9 = arith.maximumf %7, %8 : vector<256x32xf32>
    %10 = arith.maximumf %6, %9 : vector<256x32xf32>
    %c0_5 = arith.constant 0 : index
    %c0_6 = arith.constant 0 : index
    %11 = vector.load %arg3[%c0_5, %c0_6] : memref<1x32xf32, #tpu.memory_space<vmem>>, vector<1x32xf32>
    %12 = vector.broadcast %11 : vector<1x32xf32> to vector<256x32xf32>
    %13 = arith.addf %10, %12 : vector<256x32xf32>
    %cst_7 = arith.constant 0.000000e+00 : f32
    %14 = vector.broadcast %cst_7 : f32 to vector<256x32xf32>
    %15 = arith.maximumf %13, %14 : vector<256x32xf32>
    %16 = arith.truncf %15 : vector<256x32xf32> to vector<256x32xbf16>
    %cst_8 = arith.constant 0.000000e+00 : f32
    %17 = vector.broadcast %cst_8 : f32 to vector<16x128xf32>
    %18 = vector.extract_strided_slice %16 {offsets = [0, 0], sizes = [16, 32], strides = [1, 1]} : vector<256x32xbf16> to vector<16x32xbf16>
    %c0_9 = arith.constant 0 : index
    %c0_10 = arith.constant 0 : index
    %c0_11 = arith.constant 0 : index
    %19 = vector.load %arg4[%c0_9, %c0_10, %c0_11] : memref<16x32x128xbf16, #tpu.memory_space<vmem>>, vector<1x32x128xbf16>
    %20 = vector.shape_cast %19 : vector<1x32x128xbf16> to vector<32x128xbf16>
    %cst_12 = arith.constant dense<0.000000e+00> : vector<16x128xf32>
    %21 = tpu.matmul %18, %20, %cst_12 {dimension_numbers = #tpu.dot_dimension_numbers<[1], [0], [0], [1], [0, 0, 1, 1], [], []>} : vector<16x32xbf16>, vector<32x128xbf16>, vector<16x128xf32> -> vector<16x128xf32>
    %22 = arith.addf %17, %21 : vector<16x128xf32>
    %23 = vector.extract_strided_slice %16 {offsets = [16, 0], sizes = [16, 32], strides = [1, 1]} : vector<256x32xbf16> to vector<16x32xbf16>
    %c1 = arith.constant 1 : index
    %c0_13 = arith.constant 0 : index
    %c0_14 = arith.constant 0 : index
    %24 = vector.load %arg4[%c1, %c0_13, %c0_14] : memref<16x32x128xbf16, #tpu.memory_space<vmem>>, vector<1x32x128xbf16>
    %25 = vector.shape_cast %24 : vector<1x32x128xbf16> to vector<32x128xbf16>
    %cst_15 = arith.constant dense<0.000000e+00> : vector<16x128xf32>
    %26 = tpu.matmul %23, %25, %cst_15 {dimension_numbers = #tpu.dot_dimension_numbers<[1], [0], [0], [1], [0, 0, 1, 1], [], []>} : vector<16x32xbf16>, vector<32x128xbf16>, vector<16x128xf32> -> vector<16x128xf32>
    %27 = arith.addf %22, %26 : vector<16x128xf32>
    %28 = vector.extract_strided_slice %16 {offsets = [32, 0], sizes = [16, 32], strides = [1, 1]} : vector<256x32xbf16> to vector<16x32xbf16>
    %c2 = arith.constant 2 : index
    %c0_16 = arith.constant 0 : index
    %c0_17 = arith.constant 0 : index
    %29 = vector.load %arg4[%c2, %c0_16, %c0_17] : memref<16x32x128xbf16, #tpu.memory_space<vmem>>, vector<1x32x128xbf16>
    %30 = vector.shape_cast %29 : vector<1x32x128xbf16> to vector<32x128xbf16>
    %cst_18 = arith.constant dense<0.000000e+00> : vector<16x128xf32>
    %31 = tpu.matmul %28, %30, %cst_18 {dimension_numbers = #tpu.dot_dimension_numbers<[1], [0], [0], [1], [0, 0, 1, 1], [], []>} : vector<16x32xbf16>, vector<32x128xbf16>, vector<16x128xf32> -> vector<16x128xf32>
    %32 = arith.addf %27, %31 : vector<16x128xf32>
    %33 = vector.extract_strided_slice %16 {offsets = [48, 0], sizes = [16, 32], strides = [1, 1]} : vector<256x32xbf16> to vector<16x32xbf16>
    %c3 = arith.constant 3 : index
    %c0_19 = arith.constant 0 : index
    %c0_20 = arith.constant 0 : index
    %34 = vector.load %arg4[%c3, %c0_19, %c0_20] : memref<16x32x128xbf16, #tpu.memory_space<vmem>>, vector<1x32x128xbf16>
    %35 = vector.shape_cast %34 : vector<1x32x128xbf16> to vector<32x128xbf16>
    %cst_21 = arith.constant dense<0.000000e+00> : vector<16x128xf32>
    %36 = tpu.matmul %33, %35, %cst_21 {dimension_numbers = #tpu.dot_dimension_numbers<[1], [0], [0], [1], [0, 0, 1, 1], [], []>} : vector<16x32xbf16>, vector<32x128xbf16>, vector<16x128xf32> -> vector<16x128xf32>
    %37 = arith.addf %32, %36 : vector<16x128xf32>
    %38 = vector.extract_strided_slice %16 {offsets = [64, 0], sizes = [16, 32], strides = [1, 1]} : vector<256x32xbf16> to vector<16x32xbf16>
    %c4 = arith.constant 4 : index
    %c0_22 = arith.constant 0 : index
    %c0_23 = arith.constant 0 : index
    %39 = vector.load %arg4[%c4, %c0_22, %c0_23] : memref<16x32x128xbf16, #tpu.memory_space<vmem>>, vector<1x32x128xbf16>
    %40 = vector.shape_cast %39 : vector<1x32x128xbf16> to vector<32x128xbf16>
    %cst_24 = arith.constant dense<0.000000e+00> : vector<16x128xf32>
    %41 = tpu.matmul %38, %40, %cst_24 {dimension_numbers = #tpu.dot_dimension_numbers<[1], [0], [0], [1], [0, 0, 1, 1], [], []>} : vector<16x32xbf16>, vector<32x128xbf16>, vector<16x128xf32> -> vector<16x128xf32>
    %42 = arith.addf %37, %41 : vector<16x128xf32>
    %43 = vector.extract_strided_slice %16 {offsets = [80, 0], sizes = [16, 32], strides = [1, 1]} : vector<256x32xbf16> to vector<16x32xbf16>
    %c5 = arith.constant 5 : index
    %c0_25 = arith.constant 0 : index
    %c0_26 = arith.constant 0 : index
    %44 = vector.load %arg4[%c5, %c0_25, %c0_26] : memref<16x32x128xbf16, #tpu.memory_space<vmem>>, vector<1x32x128xbf16>
    %45 = vector.shape_cast %44 : vector<1x32x128xbf16> to vector<32x128xbf16>
    %cst_27 = arith.constant dense<0.000000e+00> : vector<16x128xf32>
    %46 = tpu.matmul %43, %45, %cst_27 {dimension_numbers = #tpu.dot_dimension_numbers<[1], [0], [0], [1], [0, 0, 1, 1], [], []>} : vector<16x32xbf16>, vector<32x128xbf16>, vector<16x128xf32> -> vector<16x128xf32>
    %47 = arith.addf %42, %46 : vector<16x128xf32>
    %48 = vector.extract_strided_slice %16 {offsets = [96, 0], sizes = [16, 32], strides = [1, 1]} : vector<256x32xbf16> to vector<16x32xbf16>
    %c6 = arith.constant 6 : index
    %c0_28 = arith.constant 0 : index
    %c0_29 = arith.constant 0 : index
    %49 = vector.load %arg4[%c6, %c0_28, %c0_29] : memref<16x32x128xbf16, #tpu.memory_space<vmem>>, vector<1x32x128xbf16>
    %50 = vector.shape_cast %49 : vector<1x32x128xbf16> to vector<32x128xbf16>
    %cst_30 = arith.constant dense<0.000000e+00> : vector<16x128xf32>
    %51 = tpu.matmul %48, %50, %cst_30 {dimension_numbers = #tpu.dot_dimension_numbers<[1], [0], [0], [1], [0, 0, 1, 1], [], []>} : vector<16x32xbf16>, vector<32x128xbf16>, vector<16x128xf32> -> vector<16x128xf32>
    %52 = arith.addf %47, %51 : vector<16x128xf32>
    %53 = vector.extract_strided_slice %16 {offsets = [112, 0], sizes = [16, 32], strides = [1, 1]} : vector<256x32xbf16> to vector<16x32xbf16>
    %c7 = arith.constant 7 : index
    %c0_31 = arith.constant 0 : index
    %c0_32 = arith.constant 0 : index
    %54 = vector.load %arg4[%c7, %c0_31, %c0_32] : memref<16x32x128xbf16, #tpu.memory_space<vmem>>, vector<1x32x128xbf16>
    %55 = vector.shape_cast %54 : vector<1x32x128xbf16> to vector<32x128xbf16>
    %cst_33 = arith.constant dense<0.000000e+00> : vector<16x128xf32>
    %56 = tpu.matmul %53, %55, %cst_33 {dimension_numbers = #tpu.dot_dimension_numbers<[1], [0], [0], [1], [0, 0, 1, 1], [], []>} : vector<16x32xbf16>, vector<32x128xbf16>, vector<16x128xf32> -> vector<16x128xf32>
    %57 = arith.addf %52, %56 : vector<16x128xf32>
    %58 = vector.extract_strided_slice %16 {offsets = [128, 0], sizes = [16, 32], strides = [1, 1]} : vector<256x32xbf16> to vector<16x32xbf16>
    %c8 = arith.constant 8 : index
    %c0_34 = arith.constant 0 : index
    %c0_35 = arith.constant 0 : index
    %59 = vector.load %arg4[%c8, %c0_34, %c0_35] : memref<16x32x128xbf16, #tpu.memory_space<vmem>>, vector<1x32x128xbf16>
    %60 = vector.shape_cast %59 : vector<1x32x128xbf16> to vector<32x128xbf16>
    %cst_36 = arith.constant dense<0.000000e+00> : vector<16x128xf32>
    %61 = tpu.matmul %58, %60, %cst_36 {dimension_numbers = #tpu.dot_dimension_numbers<[1], [0], [0], [1], [0, 0, 1, 1], [], []>} : vector<16x32xbf16>, vector<32x128xbf16>, vector<16x128xf32> -> vector<16x128xf32>
    %62 = arith.addf %57, %61 : vector<16x128xf32>
    %63 = vector.extract_strided_slice %16 {offsets = [144, 0], sizes = [16, 32], strides = [1, 1]} : vector<256x32xbf16> to vector<16x32xbf16>
    %c9 = arith.constant 9 : index
    %c0_37 = arith.constant 0 : index
    %c0_38 = arith.constant 0 : index
    %64 = vector.load %arg4[%c9, %c0_37, %c0_38] : memref<16x32x128xbf16, #tpu.memory_space<vmem>>, vector<1x32x128xbf16>
    %65 = vector.shape_cast %64 : vector<1x32x128xbf16> to vector<32x128xbf16>
    %cst_39 = arith.constant dense<0.000000e+00> : vector<16x128xf32>
    %66 = tpu.matmul %63, %65, %cst_39 {dimension_numbers = #tpu.dot_dimension_numbers<[1], [0], [0], [1], [0, 0, 1, 1], [], []>} : vector<16x32xbf16>, vector<32x128xbf16>, vector<16x128xf32> -> vector<16x128xf32>
    %67 = arith.addf %62, %66 : vector<16x128xf32>
    %68 = vector.extract_strided_slice %16 {offsets = [160, 0], sizes = [16, 32], strides = [1, 1]} : vector<256x32xbf16> to vector<16x32xbf16>
    %c10 = arith.constant 10 : index
    %c0_40 = arith.constant 0 : index
    %c0_41 = arith.constant 0 : index
    %69 = vector.load %arg4[%c10, %c0_40, %c0_41] : memref<16x32x128xbf16, #tpu.memory_space<vmem>>, vector<1x32x128xbf16>
    %70 = vector.shape_cast %69 : vector<1x32x128xbf16> to vector<32x128xbf16>
    %cst_42 = arith.constant dense<0.000000e+00> : vector<16x128xf32>
    %71 = tpu.matmul %68, %70, %cst_42 {dimension_numbers = #tpu.dot_dimension_numbers<[1], [0], [0], [1], [0, 0, 1, 1], [], []>} : vector<16x32xbf16>, vector<32x128xbf16>, vector<16x128xf32> -> vector<16x128xf32>
    %72 = arith.addf %67, %71 : vector<16x128xf32>
    %73 = vector.extract_strided_slice %16 {offsets = [176, 0], sizes = [16, 32], strides = [1, 1]} : vector<256x32xbf16> to vector<16x32xbf16>
    %c11 = arith.constant 11 : index
    %c0_43 = arith.constant 0 : index
    %c0_44 = arith.constant 0 : index
    %74 = vector.load %arg4[%c11, %c0_43, %c0_44] : memref<16x32x128xbf16, #tpu.memory_space<vmem>>, vector<1x32x128xbf16>
    %75 = vector.shape_cast %74 : vector<1x32x128xbf16> to vector<32x128xbf16>
    %cst_45 = arith.constant dense<0.000000e+00> : vector<16x128xf32>
    %76 = tpu.matmul %73, %75, %cst_45 {dimension_numbers = #tpu.dot_dimension_numbers<[1], [0], [0], [1], [0, 0, 1, 1], [], []>} : vector<16x32xbf16>, vector<32x128xbf16>, vector<16x128xf32> -> vector<16x128xf32>
    %77 = arith.addf %72, %76 : vector<16x128xf32>
    %78 = vector.extract_strided_slice %16 {offsets = [192, 0], sizes = [16, 32], strides = [1, 1]} : vector<256x32xbf16> to vector<16x32xbf16>
    %c12 = arith.constant 12 : index
    %c0_46 = arith.constant 0 : index
    %c0_47 = arith.constant 0 : index
    %79 = vector.load %arg4[%c12, %c0_46, %c0_47] : memref<16x32x128xbf16, #tpu.memory_space<vmem>>, vector<1x32x128xbf16>
    %80 = vector.shape_cast %79 : vector<1x32x128xbf16> to vector<32x128xbf16>
    %cst_48 = arith.constant dense<0.000000e+00> : vector<16x128xf32>
    %81 = tpu.matmul %78, %80, %cst_48 {dimension_numbers = #tpu.dot_dimension_numbers<[1], [0], [0], [1], [0, 0, 1, 1], [], []>} : vector<16x32xbf16>, vector<32x128xbf16>, vector<16x128xf32> -> vector<16x128xf32>
    %82 = arith.addf %77, %81 : vector<16x128xf32>
    %83 = vector.extract_strided_slice %16 {offsets = [208, 0], sizes = [16, 32], strides = [1, 1]} : vector<256x32xbf16> to vector<16x32xbf16>
    %c13 = arith.constant 13 : index
    %c0_49 = arith.constant 0 : index
    %c0_50 = arith.constant 0 : index
    %84 = vector.load %arg4[%c13, %c0_49, %c0_50] : memref<16x32x128xbf16, #tpu.memory_space<vmem>>, vector<1x32x128xbf16>
    %85 = vector.shape_cast %84 : vector<1x32x128xbf16> to vector<32x128xbf16>
    %cst_51 = arith.constant dense<0.000000e+00> : vector<16x128xf32>
    %86 = tpu.matmul %83, %85, %cst_51 {dimension_numbers = #tpu.dot_dimension_numbers<[1], [0], [0], [1], [0, 0, 1, 1], [], []>} : vector<16x32xbf16>, vector<32x128xbf16>, vector<16x128xf32> -> vector<16x128xf32>
    %87 = arith.addf %82, %86 : vector<16x128xf32>
    %88 = vector.extract_strided_slice %16 {offsets = [224, 0], sizes = [16, 32], strides = [1, 1]} : vector<256x32xbf16> to vector<16x32xbf16>
    %c14 = arith.constant 14 : index
    %c0_52 = arith.constant 0 : index
    %c0_53 = arith.constant 0 : index
    %89 = vector.load %arg4[%c14, %c0_52, %c0_53] : memref<16x32x128xbf16, #tpu.memory_space<vmem>>, vector<1x32x128xbf16>
    %90 = vector.shape_cast %89 : vector<1x32x128xbf16> to vector<32x128xbf16>
    %cst_54 = arith.constant dense<0.000000e+00> : vector<16x128xf32>
    %91 = tpu.matmul %88, %90, %cst_54 {dimension_numbers = #tpu.dot_dimension_numbers<[1], [0], [0], [1], [0, 0, 1, 1], [], []>} : vector<16x32xbf16>, vector<32x128xbf16>, vector<16x128xf32> -> vector<16x128xf32>
    %92 = arith.addf %87, %91 : vector<16x128xf32>
    %93 = vector.extract_strided_slice %16 {offsets = [240, 0], sizes = [16, 32], strides = [1, 1]} : vector<256x32xbf16> to vector<16x32xbf16>
    %c15 = arith.constant 15 : index
    %c0_55 = arith.constant 0 : index
    %c0_56 = arith.constant 0 : index
    %94 = vector.load %arg4[%c15, %c0_55, %c0_56] : memref<16x32x128xbf16, #tpu.memory_space<vmem>>, vector<1x32x128xbf16>
    %95 = vector.shape_cast %94 : vector<1x32x128xbf16> to vector<32x128xbf16>
    %cst_57 = arith.constant dense<0.000000e+00> : vector<16x128xf32>
    %96 = tpu.matmul %93, %95, %cst_57 {dimension_numbers = #tpu.dot_dimension_numbers<[1], [0], [0], [1], [0, 0, 1, 1], [], []>} : vector<16x32xbf16>, vector<32x128xbf16>, vector<16x128xf32> -> vector<16x128xf32>
    %97 = arith.addf %92, %96 : vector<16x128xf32>
    %c0_58 = arith.constant 0 : index
    %c0_59 = arith.constant 0 : index
    %98 = vector.load %arg5[%c0_58, %c0_59] : memref<1x128xf32, #tpu.memory_space<vmem>>, vector<1x128xf32>
    %99 = vector.broadcast %98 : vector<1x128xf32> to vector<16x128xf32>
    %100 = arith.addf %97, %99 : vector<16x128xf32>
    %cst_60 = arith.constant 0.000000e+00 : f32
    %101 = vector.broadcast %cst_60 : f32 to vector<16x128xf32>
    %102 = arith.maximumf %100, %101 : vector<16x128xf32>
    %103 = arith.truncf %102 : vector<16x128xf32> to vector<16x128xbf16>
    %c0_61 = arith.constant 0 : index
    %c0_62 = arith.constant 0 : index
    %104 = vector.load %arg6[%c0_61, %c0_62] : memref<128x128xbf16, #tpu.memory_space<vmem>>, vector<128x128xbf16>
    %cst_63 = arith.constant dense<0.000000e+00> : vector<16x128xf32>
    %105 = tpu.matmul %103, %104, %cst_63 {dimension_numbers = #tpu.dot_dimension_numbers<[1], [0], [0], [1], [0, 0, 1, 1], [], []>} : vector<16x128xbf16>, vector<128x128xbf16>, vector<16x128xf32> -> vector<16x128xf32>
    %c0_64 = arith.constant 0 : index
    %c0_65 = arith.constant 0 : index
    %106 = vector.load %arg7[%c0_64, %c0_65] : memref<1x128xf32, #tpu.memory_space<vmem>>, vector<1x128xf32>
    %107 = vector.broadcast %106 : vector<1x128xf32> to vector<16x128xf32>
    %108 = arith.addf %105, %107 : vector<16x128xf32>
    %cst_66 = arith.constant dense<0xFF800000> : vector<16xf32>
    %109 = vector.multi_reduction <maximumf>, %108, %cst_66 [1] : vector<16x128xf32> to vector<16xf32>
    %110 = vector.shape_cast %109 : vector<16xf32> to vector<16x1xf32>
    %111 = vector.broadcast %110 : vector<16x1xf32> to vector<16x128xf32>
    %112 = arith.subf %108, %111 : vector<16x128xf32>
    %113 = math.exp %112 : vector<16x128xf32>
    %cst_67 = arith.constant dense<0.000000e+00> : vector<16xf32>
    %114 = vector.multi_reduction <add>, %113, %cst_67 [1] : vector<16x128xf32> to vector<16xf32>
    %115 = vector.shape_cast %114 : vector<16xf32> to vector<16x1xf32>
    %116 = math.log %115 : vector<16x1xf32>
    %117 = vector.broadcast %116 : vector<16x1xf32> to vector<16x128xf32>
    %118 = arith.subf %112, %117 : vector<16x128xf32>
    %c0_68 = arith.constant 0 : index
    %c0_69 = arith.constant 0 : index
    %119 = vector.load %arg8[%c0_68, %c0_69] : memref<16x128xf32, #tpu.memory_space<vmem>>, vector<16x128xf32>
    tpu.vector_store %arg8[%c0_68, %c0_69], %118 {strides = array<i32>} : memref<16x128xf32, #tpu.memory_space<vmem>>, vector<16x128xf32>,
    return
  }
  func.func @transform_0(%arg0: i32) -> (i32, i32, i32, i32) {
    %c0_i32 = arith.constant 0 : i32
    %c0_i32_0 = arith.constant 0 : i32
    %c0_i32_1 = arith.constant 0 : i32
    %c0_i32_2 = arith.constant 0 : i32
    return %c0_i32, %c0_i32_0, %arg0, %c0_i32_1 : i32, i32, i32, i32
  }
  func.func @transform_1(%arg0: i32) -> (i32, i32) {
    %c0_i32 = arith.constant 0 : i32
    %c0_i32_0 = arith.constant 0 : i32
    %c0_i32_1 = arith.constant 0 : i32
    return %c0_i32, %c0_i32_0 : i32, i32
  }
  func.func @transform_2(%arg0: i32) -> (i32, i32) {
    %c0_i32 = arith.constant 0 : i32
    %c0_i32_0 = arith.constant 0 : i32
    %c0_i32_1 = arith.constant 0 : i32
    return %c0_i32, %c0_i32_0 : i32, i32
  }
  func.func @transform_3(%arg0: i32) -> (i32, i32, i32) {
    %c0_i32 = arith.constant 0 : i32
    %c0_i32_0 = arith.constant 0 : i32
    %c0_i32_1 = arith.constant 0 : i32
    %c0_i32_2 = arith.constant 0 : i32
    return %c0_i32, %c0_i32_0, %c0_i32_1 : i32, i32, i32
  }
  func.func @transform_4(%arg0: i32) -> (i32, i32) {
    %c0_i32 = arith.constant 0 : i32
    %c0_i32_0 = arith.constant 0 : i32
    %c0_i32_1 = arith.constant 0 : i32
    return %c0_i32, %c0_i32_0 : i32, i32
  }
  func.func @transform_5(%arg0: i32) -> (i32, i32) {
    %c0_i32 = arith.constant 0 : i32
    %c0_i32_0 = arith.constant 0 : i32
    %c0_i32_1 = arith.constant 0 : i32
    return %c0_i32, %c0_i32_0 : i32, i32
  }
  func.func @transform_6(%arg0: i32) -> (i32, i32) {
    %c0_i32 = arith.constant 0 : i32
    %c0_i32_0 = arith.constant 0 : i32
    %c0_i32_1 = arith.constant 0 : i32
    return %c0_i32, %c0_i32_0 : i32, i32
  }
  func.func @transform_7(%arg0: i32) -> (i32, i32) {
    %c0_i32 = arith.constant 0 : i32
    %c0_i32_0 = arith.constant 0 : i32
    return %arg0, %c0_i32 : i32, i32
  }
}

</mosaic_0001>

<bundles_post_ra>
// kernel: net_forward.2
= control target key start
LH: loop header
LB: loop body
LE: loop exit
PB: predicated region body
PF: predicated region fallthrough
CT: control target
= control target key end

     0   :  { %s1803_s12 = smov 0   ;;  %s1805_s13 = smov 0   ;;  %s2162_s0 = inlined_call_operand.vmem [shape: bf16[4,288,25], index: 0, kind: input, shape index: {}]   ;;  %s2163_s1 = inlined_call_operand.vmem [shape: bf16[25,16], index: 1, kind: input, shape index: {}]   ;;  %s2164_s2 = inlined_call_operand.vmem [shape: f32[1,16], index: 2, kind: input, shape index: {}]   ;;  %s2165_s3 = inlined_call_operand.vmem [shape: bf16[288,16], index: 3, kind: output, shape index: {}]  }
   0x1   :  { %s1807_s14 = smov 0  }
   0x2 LB: > { %s1454_s15 = sadd.s32 4294967295, %s1780_s14   ;;  %s1820_s16 = sadd.s32 1, %s1780_s14   ;;  %s1780_s14 = sphi %s1807_s14, %s2168_s14   ;;  %s1776_s13 = sphi %s1805_s13, %s2167_s13   ;;  %s1772_s12 = sphi %s1803_s12, %s2166_s12  }
   0x3   : > { %s17_s17 = ssub.s32 %s1780_s14, %s1820_s16  ;;  %s20_s18 = sadd.s32 1, %s1776_s13 }
   0x4   : > { %p18_p0 = scmp.eq.s32.totalorder %s17_s17, 0  ;;  %p27_p1 = scmp.ne.s32.totalorder %s1776_s13, %s1772_s12 }
   0x5   : > { %p28_p2 = scmp.eq.s32.totalorder %s1780_s14, 0  ;;  %p1457_p4 = scmp.ge.s32.totalorder %s1780_s14, 2 }
   0x6   : > { %s1829_s19 = scalar_select %p18_p0, %s1776_s13, %s20_s18  }
   0x7   : > { %p29_p3 = por %p28_p2, %p27_p1  ;;  %127 = sbr.rel (%p1457_p4) target bundleno = 37 (0x25), region = 24 }
   0xe   : > { %130 = sbr.rel (!%p29_p3) target bundleno = 37 (0x25), region = 28  ;;  %s132_s20 = sand.u32 (%p29_p3), 1, %s1776_s13  }
   0xf   : > { %s1556_s21 = smul.u32 (%p29_p3), 72, %s1780_s14 }
  0x10   : > { %s1693_s22 = smul.u32 (%p29_p3), 288, %s132_s20 }
  0x11   : > { %s1837_s25 = scalar_lea.vmem (%p29_p3), %s2162_s0, %s1556_s21 }
  0x12   : > { %v153_v0 = vld [vmem:[%s1837_s25] sm:$0xff] (%p29_p3)   ;;  %v157_v1 = vld [vmem:[%s1837_s25 + $0x8] sm:$0xff] (%p29_p3)   ;;  %v161_v2 = vld [vmem:[%s1837_s25 + $0x10] sm:$0xff] (%p29_p3)   ;;  %s1842_s26 = scalar_lea.vmem (%p29_p3), [#allocation2], %s1693_s22 }
  0x13   : > { %154 = vst [vmem:[%s1842_s26] sm:$0xff] (%p29_p3), %v153_v0   ;;  %158 = vst [vmem:[%s1842_s26 + $0x8] sm:$0xff] (%p29_p3), %v157_v1   ;;  %v165_v3 = vld [vmem:[%s1837_s25 + $0x18] sm:$0xff] (%p29_p3)   ;;  %v169_v4 = vld [vmem:[%s1837_s25 + $0x20] sm:$0xff] (%p29_p3)  }
  0x14   : > { %162 = vst [vmem:[%s1842_s26 + $0x10] sm:$0xff] (%p29_p3), %v161_v2   ;;  %v173_v5 = vld [vmem:[%s1837_s25 + $0x28] sm:$0xff] (%p29_p3)   ;;  %166 = vst [vmem:[%s1842_s26 + $0x18] sm:$0xff] (%p29_p3), %v165_v3   ;;  %v177_v6 = vld [vmem:[%s1837_s25 + $0x30] sm:$0xff] (%p29_p3)  }
  0x15   : > { %170 = vst [vmem:[%s1842_s26 + $0x20] sm:$0xff] %v169_v4   ;;  %174 = vst [vmem:[%s1842_s26 + $0x28] sm:$0xff] %v173_v5   ;;  %v181_v7 = vld [vmem:[%s1837_s25 + $0x38] sm:$0xff]   ;;  %v185_v8 = vld [vmem:[%s1837_s25 + $0x40] sm:$0xff]  }
  0x16   : > { %178 = vst [vmem:[%s1842_s26 + $0x30] sm:$0xff] %v177_v6   ;;  %182 = vst [vmem:[%s1842_s26 + $0x38] sm:$0xff] %v181_v7   ;;  %v189_v9 = vld [vmem:[%s1837_s25 + $0x90] sm:$0xff]   ;;  %v193_v10 = vld [vmem:[%s1837_s25 + $0x98] sm:$0xff]  }
  0x17   : > { %186 = vst [vmem:[%s1842_s26 + $0x40] sm:$0xff] %v185_v8   ;;  %v197_v11 = vld [vmem:[%s1837_s25 + $0xa0] sm:$0xff]   ;;  %190 = vst [vmem:[%s1842_s26 + $0x48] sm:$0xff] %v189_v9   ;;  %v201_v12 = vld [vmem:[%s1837_s25 + $0xa8] sm:$0xff]  }
  0x18   : > { %194 = vst [vmem:[%s1842_s26 + $0x50] sm:$0xff] %v193_v10   ;;  %198 = vst [vmem:[%s1842_s26 + $0x58] sm:$0xff] %v197_v11   ;;  %v205_v13 = vld [vmem:[%s1837_s25 + $0xb0] sm:$0xff]   ;;  %v209_v14 = vld [vmem:[%s1837_s25 + $0xb8] sm:$0xff]  }
  0x19   : > { %202 = vst [vmem:[%s1842_s26 + $0x60] sm:$0xff] %v201_v12   ;;  %206 = vst [vmem:[%s1842_s26 + $0x68] sm:$0xff] %v205_v13   ;;  %v213_v15 = vld [vmem:[%s1837_s25 + $0xc0] sm:$0xff]   ;;  %v217_v16 = vld [vmem:[%s1837_s25 + $0xc8] sm:$0xff]  }
  0x1a   : > { %210 = vst [vmem:[%s1842_s26 + $0x70] sm:$0xff] %v209_v14   ;;  %v221_v17 = vld [vmem:[%s1837_s25 + $0xd0] sm:$0xff]   ;;  %214 = vst [vmem:[%s1842_s26 + $0x78] sm:$0xff] %v213_v15   ;;  %v225_v18 = vld [vmem:[%s1837_s25 + $0x120] sm:$0xff]  }
  0x1b   : > { %218 = vst [vmem:[%s1842_s26 + $0x80] sm:$0xff] %v217_v16   ;;  %222 = vst [vmem:[%s1842_s26 + $0x88] sm:$0xff] %v221_v17   ;;  %v229_v19 = vld [vmem:[%s1837_s25 + $0x128] sm:$0xff]   ;;  %v233_v20 = vld [vmem:[%s1837_s25 + $0x130] sm:$0xff]  }
  0x1c   : > { %226 = vst [vmem:[%s1842_s26 + $0x90] sm:$0xff] %v225_v18   ;;  %230 = vst [vmem:[%s1842_s26 + $0x98] sm:$0xff] %v229_v19   ;;  %v237_v21 = vld [vmem:[%s1837_s25 + $0x138] sm:$0xff]   ;;  %v241_v22 = vld [vmem:[%s1837_s25 + $0x140] sm:$0xff]  }
  0x1d   : > { %234 = vst [vmem:[%s1842_s26 + $0xa0] sm:$0xff] %v233_v20   ;;  %v245_v23 = vld [vmem:[%s1837_s25 + $0x148] sm:$0xff]   ;;  %238 = vst [vmem:[%s1842_s26 + $0xa8] sm:$0xff] %v237_v21   ;;  %v249_v24 = vld [vmem:[%s1837_s25 + $0x150] sm:$0xff]  }
  0x1e   : > { %242 = vst [vmem:[%s1842_s26 + $0xb0] sm:$0xff] %v241_v22   ;;  %246 = vst [vmem:[%s1842_s26 + $0xb8] sm:$0xff] %v245_v23   ;;  %v253_v25 = vld [vmem:[%s1837_s25 + $0x158] sm:$0xff]   ;;  %v257_v26 = vld [vmem:[%s1837_s25 + $0x160] sm:$0xff]  }
  0x1f   : > { %250 = vst [vmem:[%s1842_s26 + $0xc0] sm:$0xff] %v249_v24   ;;  %254 = vst [vmem:[%s1842_s26 + $0xc8] sm:$0xff] %v253_v25   ;;  %v261_v27 = vld [vmem:[%s1837_s25 + $0x1b0] sm:$0xff]   ;;  %v265_v28 = vld [vmem:[%s1837_s25 + $0x1b8] sm:$0xff]  }
  0x20   : > { %258 = vst [vmem:[%s1842_s26 + $0xd0] sm:$0xff] %v257_v26   ;;  %v269_v29 = vld [vmem:[%s1837_s25 + $0x1c0] sm:$0xff]   ;;  %262 = vst [vmem:[%s1842_s26 + $0xd8] sm:$0xff] %v261_v27   ;;  %v273_v30 = vld [vmem:[%s1837_s25 + $0x1c8] sm:$0xff]  }
  0x21   : > { %266 = vst [vmem:[%s1842_s26 + $0xe0] sm:$0xff] %v265_v28   ;;  %270 = vst [vmem:[%s1842_s26 + $0xe8] sm:$0xff] %v269_v29   ;;  %v277_v31 = vld [vmem:[%s1837_s25 + $0x1d0] sm:$0xff]   ;;  %v281_v32 = vld [vmem:[%s1837_s25 + $0x1d8] sm:$0xff]  }
  0x22   : > { %274 = vst [vmem:[%s1842_s26 + $0xf0] sm:$0xff] %v273_v30   ;;  %278 = vst [vmem:[%s1842_s26 + $0xf8] sm:$0xff] %v277_v31   ;;  %v285_v33 = vld [vmem:[%s1837_s25 + $0x1e0] sm:$0xff]   ;;  %v289_v34 = vld [vmem:[%s1837_s25 + $0x1e8] sm:$0xff]  }
  0x23   : > { %282 = vst [vmem:[%s1842_s26 + $0x100] sm:$0xff] %v281_v32   ;;  %v293_v35 = vld [vmem:[%s1837_s25 + $0x1f0] sm:$0xff]   ;;  %286 = vst [vmem:[%s1842_s26 + $0x108] sm:$0xff] %v285_v33  }
  0x24   : > { %290 = vst [vmem:[%s1842_s26 + $0x110] sm:$0xff] %v289_v34   ;;  %294 = vst [vmem:[%s1842_s26 + $0x118] sm:$0xff] %v293_v35  }
  0x25 PF: > { %p1459_p5 = scmp.ge.s32.totalorder %s1780_s14, 1  ;;  %p462_p6 = scmp.lt.s32.totalorder %s1780_s14, 3 }
  0x27   : > { %p463_p7 = pnand %p1459_p5, %p462_p6 }
  0x28   : > { %v1720_v36 = vld [vmem:[%s2163_s1] sm:$0xff] (!%p463_p7)   ;;  %vm876_vm0 = vcmask (!%p463_p7), 1043456   ;;  %v1721_v37 = vld [vmem:[%s2163_s1 + $0x8] sm:$0x1f] (!%p463_p7)   ;;  %vm877_vm1 = vcmask (!%p463_p7), 1044480   ;;  %s469_s4 = sand.u32 (!%p463_p7), 1, %s1772_s12  }
  0x29   : > { %466 = sbr.rel (%p463_p7) target bundleno = 340 (0x154), region = 69  ;;  %1613 = vmatprep.subr.bf16.mxu0 (!%p463_p7), %v1720_v36  ;;  %1689 = vmatprep.subr.bf16.mxu1 (!%p463_p7), %v1720_v36  ;;  %v1782_v38 = vmov (!%p463_p7), 65535   ;;  %vm767_vm2 = vcmask (!%p463_p7), 203776   ;;  %vm1373_vm3 = vcmask (!%p463_p7), 125952  }
  0x2a   : > { %1614 = vmatpush3.bf16.msra.mxu0 (!%p463_p7), %v1720_v36  ;;  %1691 = vmatpush3.bf16.msra.mxu1 (!%p463_p7), %v1720_v36  ;;  %v878_v39 = vsel (!%p463_p7), %vm876_vm0, 4294967295, %v1782_v38  ;;  %s1694_s5 = smul.u32 (!%p463_p7), 288, %s469_s4 }
  0x2b   : > { %v879_v40 = vsel (!%p463_p7), %vm877_vm1, %v878_v39, 0  ;;  %s493_s7 = smul.u32 (!%p463_p7), 18, %s1454_s15 }
  0x2c   : > { %v881_v41 = vand.u32 (!%p463_p7), %v1721_v37, %v879_v40  ;;  %s1922_s6 = scalar_lea.vmem (!%p463_p7), [#allocation2], %s1694_s5 }
  0x2d   : > { %v1722_v42 = vld [vmem:[%s1922_s6] sm:$0xff] (!%p463_p7)   ;;  %v1723_v43 = vld [vmem:[%s1922_s6 + $0x90] sm:$0xff] (!%p463_p7)   ;;  %v1724_v44 = vld [vmem:[%s1922_s6 + $0x8] sm:$0xff] (!%p463_p7)   ;;  %p494_p8 = scmp.lt.s32.totalorder (!%p463_p7), %s493_s7, 35 }
  0x2e   : > { %1615 = vmatprep.subr.bf16.mxu0 (!%p463_p7), %v881_v41  ;;  %1690 = vmatprep.subr.bf16.mxu1 (!%p463_p7), %v881_v41  ;;  %v1725_v45 = vld [vmem:[%s1922_s6 + $0x98] sm:$0xff] (!%p463_p7)   ;;  %v1726_v46 = vld [vmem:[%s1922_s6 + $0x10] sm:$0xff] (!%p463_p7)   ;;  %v1727_v47 = vld [vmem:[%s1922_s6 + $0xa0] sm:$0xff] (!%p463_p7)  }
  0x2f   : > { %1616 = vmatpush3.bf16.msra.mxu0 (!%p463_p7), %v881_v41  ;;  %1692 = vmatpush3.bf16.msra.mxu1 (!%p463_p7), %v881_v41  ;;  %v1728_v48 = vld [vmem:[%s1922_s6 + $0x18] sm:$0xff] (!%p463_p7)   ;;  %v1729_v49 = vld [vmem:[%s1922_s6 + $0xa8] sm:$0xff] (!%p463_p7)   ;;  %v1730_v50 = vld [vmem:[%s1922_s6 + $0x20] sm:$0xff] (!%p463_p7)  }
  0x30   : > { %1617 = vmatprep.mubr.msk.bf16.mxu0 %vm767_vm2, %v1722_v42  ;;  %1653 = vmatprep.mubr.msk.bf16.mxu1 %vm767_vm2, %v1723_v43  ;;  %v1731_v51 = vld [vmem:[%s1922_s6 + $0xb0] sm:$0xff]   ;;  %v1732_v52 = vld [vmem:[%s1922_s6 + $0x28] sm:$0xff]   ;;  %v1733_v53 = vld [vmem:[%s1922_s6 + $0xb8] sm:$0xff]   ;;  %s2170_s7 = smov (!%p494_p8, %s493_s7), 35 }
  0x31   : > { %v1734_v54 = vld [vmem:[%s1922_s6 + $0x30] sm:$0xff]   ;;  %v1735_v55 = vld [vmem:[%s1922_s6 + $0xc0] sm:$0xff]   ;;  %v1736_v56 = vld [vmem:[%s1922_s6 + $0x38] sm:$0xff]   ;;  %s1460_s10 = sshll.u32 %s2170_s7, 2 }
  0x32   : > { %1618 = vmatmul.mubr.msk.bf16.vlgmr.msra.gmra.mrb[0].mxu0 %vm767_vm2, %v1724_v44  ;;  %1654 = vmatmul.mubr.msk.bf16.vlgmr.msra.gmra.mrb[0].mxu1 %vm767_vm2, %v1725_v45  ;;  %v1737_v57 = vld [vmem:[%s1922_s6 + $0xc8] sm:$0xff]   ;;  %v1738_v58 = vld [vmem:[%s1922_s6 + $0x40] sm:$0xff]   ;;  %v1739_v59 = vld [vmem:[%s1922_s6 + $0xd0] sm:$0xff]   ;;  %s2068_s14 = scalar_lea.vmem %s2165_s3, %s1460_s10 }
  0x33   : > { %1621 = vmatprep.mubr.msk.bf16.mxu0 %vm767_vm2, %v1726_v46  ;;  %1657 = vmatprep.mubr.msk.bf16.mxu1 %vm767_vm2, %v1727_v47  ;;  %v1740_v60 = vld [vmem:[%s1922_s6 + $0x48] sm:$0xff]   ;;  %v1741_v61 = vld [vmem:[%s1922_s6 + $0xd8] sm:$0xff]   ;;  %v1742_v62 = vld [vmem:[%s1922_s6 + $0x50] sm:$0xff]  }
  0x34   : > { %v1743_v63 = vld [vmem:[%s1922_s6 + $0xe0] sm:$0xff]   ;;  %v1744_v0 = vld [vmem:[%s1922_s6 + $0x58] sm:$0xff]   ;;  %v1745_v1 = vld [vmem:[%s1922_s6 + $0xe8] sm:$0xff]  }
  0x35   : > { %v1746_v2 = vld [vmem:[%s1922_s6 + $0x60] sm:$0xff]   ;;  %v1747_v3 = vld [vmem:[%s1922_s6 + $0xf0] sm:$0xff]   ;;  %v1748_v4 = vld [vmem:[%s1922_s6 + $0x68] sm:$0xff]  }
  0x36   : > { %v1749_v5 = vld [vmem:[%s1922_s6 + $0xf8] sm:$0xff]   ;;  %v1750_v6 = vld [vmem:[%s1922_s6 + $0x70] sm:$0xff]   ;;  %v1751_v7 = vld [vmem:[%s1922_s6 + $0x100] sm:$0xff]  }
  0x37   : > { %v1752_v8 = vld [vmem:[%s1922_s6 + $0x78] sm:$0xff]   ;;  %v1753_v9 = vld [vmem:[%s1922_s6 + $0x108] sm:$0xff]   ;;  %v1754_v10 = vld [vmem:[%s1922_s6 + $0x80] sm:$0xff]  }
  0x38   : > { %v1755_v11 = vld [vmem:[%s1922_s6 + $0x110] sm:$0xff]   ;;  %v1756_v12 = vld [vmem:[%s1922_s6 + $0x88] sm:$0xff]   ;;  %v1757_v13 = vld [vmem:[%s1922_s6 + $0x118] sm:$0xff]  }
  0x3a   : > { %1622 = vmatmul.mubr.msk.bf16.gmra.mrb[4].mxu0 %vm767_vm2, %v1728_v48  ;;  %1658 = vmatmul.mubr.msk.bf16.gmra.mrb[4].mxu1 %vm767_vm2, %v1729_v49 }
  0x3b   : > { %1625 = vmatprep.mubr.msk.bf16.mxu0 %vm767_vm2, %v1730_v50  ;;  %1661 = vmatprep.mubr.msk.bf16.mxu1 %vm767_vm2, %v1731_v51 }
  0x42   : > { %1626 = vmatmul.mubr.msk.bf16.gmra.mrb[8].mxu0 %vm767_vm2, %v1732_v52  ;;  %1662 = vmatmul.mubr.msk.bf16.gmra.mrb[8].mxu1 %vm767_vm2, %v1733_v53  ;;  %v2057_v52 = vld [vmem:[%s2164_s2] ss:$0 sm:$0xff] }
  0x43   : > { %1629 = vmatprep.mubr.msk.bf16.mxu0 %vm767_vm2, %v1734_v54  ;;  %1665 = vmatprep.mubr.msk.bf16.mxu1 %vm767_vm2, %v1735_v55 }
  0x4a   : > { %1630 = vmatmul.mubr.msk.bf16.gmra.mrb[12].mxu0 %vm767_vm2, %v1736_v56  ;;  %1666 = vmatmul.mubr.msk.bf16.gmra.mrb[12].mxu1 %vm767_vm2, %v1737_v57 }
  0x4b   : > { %1633 = vmatprep.mubr.msk.bf16.mxu0 %vm767_vm2, %v1738_v58  ;;  %1669 = vmatprep.mubr.msk.bf16.mxu1 %vm767_vm2, %v1739_v59 }
  0x52   : > { %1634 = vmatmul.mubr.msk.bf16.gmra.mrb[16].mxu0 %vm767_vm2, %v1740_v60  ;;  %1670 = vmatmul.mubr.msk.bf16.gmra.mrb[16].mxu1 %vm767_vm2, %v1741_v61 }
  0x53   : > { %1637 = vmatprep.mubr.msk.bf16.mxu0 %vm767_vm2, %v1742_v62  ;;  %1673 = vmatprep.mubr.msk.bf16.mxu1 %vm767_vm2, %v1743_v63 }
  0x5a   : > { %1638 = vmatmul.mubr.msk.bf16.gmra.mrb[20].mxu0 %vm767_vm2, %v1744_v0  ;;  %1674 = vmatmul.mubr.msk.bf16.gmra.mrb[20].mxu1 %vm767_vm2, %v1745_v1 }
  0x5b   : > { %1641 = vmatprep.mubr.msk.bf16.mxu0 %vm767_vm2, %v1746_v2  ;;  %1677 = vmatprep.mubr.msk.bf16.mxu1 %vm767_vm2, %v1747_v3 }
  0x62   : > { %1642 = vmatmul.mubr.msk.bf16.gmra.mrb[24].mxu0 %vm767_vm2, %v1748_v4  ;;  %1678 = vmatmul.mubr.msk.bf16.gmra.mrb[24].mxu1 %vm767_vm2, %v1749_v5 }
  0x63   : > { %1645 = vmatprep.mubr.msk.bf16.mxu0 %vm767_vm2, %v1750_v6  ;;  %1681 = vmatprep.mubr.msk.bf16.mxu1 %vm767_vm2, %v1751_v7 }
  0x6a   : > { %1646 = vmatmul.mubr.msk.bf16.gmra.mrb[28].mxu0 %vm767_vm2, %v1752_v8  ;;  %1682 = vmatmul.mubr.msk.bf16.gmra.mrb[28].mxu1 %vm767_vm2, %v1753_v9 }
  0x6b   : > { %1649 = vmatprep.mubr.msk.bf16.mxu0 %vm767_vm2, %v1754_v10  ;;  %1685 = vmatprep.mubr.msk.bf16.mxu1 %vm767_vm2, %v1755_v11 }
  0x72   : > { %1650 = vmatmul.mubr.msk.bf16.gmra.mrb[32].mxu0 %vm767_vm2, %v1756_v12  ;;  %1686 = vmatmul.mubr.msk.bf16.gmra.mrb[32].mxu1 %vm767_vm2, %v1757_v13 }
 0x105   : > { %v1996_v14 = vpop.f32.mrb[0].mxu0  ;;  %v1998_v15 = vpop.f32.mrb[0].mxu1 }
 0x106   : > { %v917_v16 = vpop.f32.mrb[1].mxu0  ;;  %v1061_v17 = vpop.f32.mrb[1].mxu1 }
 0x107   : > { %v2000_v18 = vpop.f32.mrb[2].mxu0  ;;  %v2002_v19 = vpop.f32.mrb[2].mxu1 }
 0x108   : > { %v920_v20 = vpop.f32.mrb[3].mxu0  ;;  %v1064_v21 = vpop.f32.mrb[3].mxu1 }
 0x10d   : > { %v2004_v22 = vpop.f32.mrb[4].mxu0  ;;  %v2006_v23 = vpop.f32.mrb[4].mxu1 }
 0x10e   : > { %v933_v24 = vpop.f32.mrb[5].mxu0  ;;  %v1077_v25 = vpop.f32.mrb[5].mxu1 }
 0x10f   : > { %v2008_v26 = vpop.f32.mrb[6].mxu0  ;;  %v2010_v27 = vpop.f32.mrb[6].mxu1 }
 0x110   : > { %v2012_v28 = vpop.f32.mrb[7].mxu0  ;;  %v2014_v29 = vpop.f32.mrb[7].mxu1 }
 0x115   : > { %v2016_v30 = vpop.f32.mrb[8].mxu0  ;;  %v2018_v31 = vpop.f32.mrb[8].mxu1 }
 0x116   : > { %v2020_v32 = vpop.f32.mrb[9].mxu0  ;;  %v2022_v33 = vpop.f32.mrb[9].mxu1 }
 0x117   : > { %v2024_v34 = vpop.f32.mrb[10].mxu0  ;;  %v2026_v35 = vpop.f32.mrb[10].mxu1 }
 0x118   : > { %v2028_v36 = vpop.f32.mrb[11].mxu0  ;;  %v2030_v37 = vpop.f32.mrb[11].mxu1 }
 0x11d   : > { %v2032_v38 = vpop.f32.mrb[12].mxu0  ;;  %v2034_v39 = vpop.f32.mrb[12].mxu1 }
 0x11e   : > { %v2036_v40 = vpop.f32.mrb[13].mxu0  ;;  %v2038_v41 = vpop.f32.mrb[13].mxu1 }
 0x11f   : > { %v2042_v42 = vpop.f32.mrb[14].mxu0  ;;  %v2044_v43 = vpop.f32.mrb[14].mxu1 }
 0x120   : > { %v2046_v44 = vpop.f32.mrb[15].mxu0  ;;  %v2048_v45 = vpop.f32.mrb[15].mxu1 }
 0x125   : > { %v1635_v46 = vpop.f32.mrb[16].mxu0  ;;  %v1671_v47 = vpop.f32.mrb[16].mxu1 }
 0x126   : > { %v1204_v48 = vmax.f32 %v917_v16, %v1635_v46  ;;  %v1222_v49 = vmax.f32 %v1061_v17, %v1671_v47  ;;  %v2050_v50 = vpop.f32.mrb[17].mxu0  ;;  %v2052_v51 = vpop.f32.mrb[17].mxu1 }
 0x127   : > { %v1636_v53 = vpop.f32.mrb[18].mxu0  ;;  %v1672_v54 = vpop.f32.mrb[18].mxu1 }
 0x128   : > { %v1240_v55 = vmax.f32 %v1204_v48, %v1222_v49  ;;  %v1205_v56 = vmax.f32 %v920_v20, %v1636_v53  ;;  %v1223_v57 = vmax.f32 %v1064_v21, %v1672_v54  ;;  %v2059_v58 = vpop.f32.mrb[19].mxu0  ;;  %v2061_v59 = vpop.f32.mrb[19].mxu1 }
 0x12a   : > { %v1265_v60 = vadd.f32 %v2057_v52, %v1240_v55  ;;  %v1241_v61 = vmax.f32 %v1205_v56, %v1223_v57 }
 0x12c   : > { %v1283_v62 = vmax.f32 %v1265_v60, 0.0  ;;  %v1266_v63 = vadd.f32 %v2057_v52, %v1241_v61 }
 0x12d   : > { %v1639_v0 = vpop.f32.mrb[20].mxu0  ;;  %v1675_v1 = vpop.f32.mrb[20].mxu1 }
 0x12e   : > { %v1557_v2 = vpack.c.bf16 %v1283_v62, %v1283_v62  ;;  %v1284_v3 = vmax.f32 %v1266_v63, 0.0  ;;  %v1208_v4 = vmax.f32 %v933_v24, %v1639_v0  ;;  %v1226_v5 = vmax.f32 %v1077_v25, %v1675_v1  ;;  %v997_v6 = vpop.f32.mrb[21].mxu0  ;;  %v1141_v7 = vpop.f32.mrb[21].mxu1 }
 0x12f   : > { %v1206_v8 = vmax.f32 %v1996_v14, %v997_v6  ;;  %v1224_v9 = vmax.f32 %v1998_v15, %v1141_v7  ;;  %v1640_v10 = vpop.f32.mrb[22].mxu0  ;;  %v1676_v11 = vpop.f32.mrb[22].mxu1 }
 0x130   : > { %1374 = vst.msk [vmem:[%s2068_s14] sm:$0xf] %vm1373_vm3, %v1557_v2  ;;  %v1558_v12 = vpack.c.bf16 %v1284_v3, %v1284_v3  ;;  %v1244_v13 = vmax.f32 %v1208_v4, %v1226_v5  ;;  %v1209_v16 = vmax.f32 %v2012_v28, %v1640_v10  ;;  %v1227_v17 = vmax.f32 %v2014_v29, %v1676_v11  ;;  %v1000_v20 = vpop.f32.mrb[23].mxu0  ;;  %v1144_v21 = vpop.f32.mrb[23].mxu1 }
 0x131   : > { %v1242_v24 = vmax.f32 %v1206_v8, %v1224_v9  ;;  %v1207_v25 = vmax.f32 %v2000_v18, %v1000_v20  ;;  %v1225_v46 = vmax.f32 %v2002_v19, %v1144_v21 }
 0x132   : > { %1375 = vst.msk [vmem:[%s2068_s14 + $0x4] sm:$0xf] %vm1373_vm3, %v1558_v12  ;;  %v1269_v14 = vadd.f32 %v2057_v52, %v1244_v13  ;;  %v1245_v15 = vmax.f32 %v1209_v16, %v1227_v17 }
 0x133   : > { %v1267_v47 = vadd.f32 %v2057_v52, %v1242_v24  ;;  %v1243_v48 = vmax.f32 %v1207_v25, %v1225_v46 }
 0x134   : > { %v1287_v49 = vmax.f32 %v1269_v14, 0.0  ;;  %v1270_v28 = vadd.f32 %v2057_v52, %v1245_v15 }
 0x135   : > { %v1285_v53 = vmax.f32 %v1267_v47, 0.0  ;;  %v1268_v29 = vadd.f32 %v2057_v52, %v1243_v48  ;;  %v1643_v54 = vpop.f32.mrb[24].mxu0  ;;  %v1679_v55 = vpop.f32.mrb[24].mxu1 }
 0x136   : > { %v1561_v18 = vpack.c.bf16 %v1287_v49, %v1287_v49  ;;  %v1288_v56 = vmax.f32 %v1270_v28, 0.0  ;;  %v1212_v19 = vmax.f32 %v2020_v32, %v1643_v54  ;;  %v1230_v57 = vmax.f32 %v2022_v33, %v1679_v55  ;;  %v1013_v60 = vpop.f32.mrb[25].mxu0  ;;  %v1157_v61 = vpop.f32.mrb[25].mxu1 }
 0x137   : > { %v1559_v62 = vpack.c.bf16 %v1285_v53, %v1285_v53  ;;  %v1286_v63 = vmax.f32 %v1268_v29, 0.0  ;;  %v1210_v0 = vmax.f32 %v2004_v22, %v1013_v60  ;;  %v1228_v1 = vmax.f32 %v2006_v23, %v1157_v61  ;;  %v1644_v2 = vpop.f32.mrb[26].mxu0  ;;  %v1680_v3 = vpop.f32.mrb[26].mxu1 }
 0x138   : > { %1378 = vst.msk [vmem:[%s2068_s14 + $0x10] sm:$0xf] %vm1373_vm3, %v1561_v18  ;;  %v1562_v4 = vpack.c.bf16 %v1288_v56, %v1288_v56  ;;  %v1248_v5 = vmax.f32 %v1212_v19, %v1230_v57  ;;  %v1213_v32 = vmax.f32 %v2028_v36, %v1644_v2  ;;  %v1231_v33 = vmax.f32 %v2030_v37, %v1680_v3  ;;  %v1016_v6 = vpop.f32.mrb[27].mxu0  ;;  %v1160_v7 = vpop.f32.mrb[27].mxu1 }
 0x139   : > { %1376 = vst.msk [vmem:[%s2068_s14 + $0x8] sm:$0xf] %vm1373_vm3, %v1559_v62  ;;  %v1560_v8 = vpack.c.bf16 %v1286_v63, %v1286_v63  ;;  %v1246_v22 = vmax.f32 %v1210_v0, %v1228_v1  ;;  %v1211_v9 = vmax.f32 %v2008_v26, %v1016_v6  ;;  %v1229_v23 = vmax.f32 %v2010_v27, %v1160_v7 }
 0x13a   : > { %1379 = vst.msk [vmem:[%s2068_s14 + $0x14] sm:$0xf] %vm1373_vm3, %v1562_v4  ;;  %v1273_v10 = vadd.f32 %v2057_v52, %v1248_v5  ;;  %v1249_v11 = vmax.f32 %v1213_v32, %v1231_v33 }
 0x13b   : > { %1377 = vst.msk [vmem:[%s2068_s14 + $0xc] sm:$0xf] %vm1373_vm3, %v1560_v8  ;;  %v1271_v36 = vadd.f32 %v2057_v52, %v1246_v22  ;;  %v1247_v37 = vmax.f32 %v1211_v9, %v1229_v23 }
 0x13c   : > { %v1291_v12 = vmax.f32 %v1273_v10, 0.0  ;;  %v1274_v13 = vadd.f32 %v2057_v52, %v1249_v11 }
 0x13d   : > { %v1289_v16 = vmax.f32 %v1271_v36, 0.0  ;;  %v1272_v17 = vadd.f32 %v2057_v52, %v1247_v37  ;;  %v1647_v26 = vpop.f32.mrb[28].mxu0  ;;  %v1683_v20 = vpop.f32.mrb[28].mxu1 }
 0x13e   : > { %v1565_v27 = vpack.c.bf16 %v1291_v12, %v1291_v12  ;;  %v1292_v21 = vmax.f32 %v1274_v13, 0.0  ;;  %v1216_v24 = vmax.f32 %v2036_v40, %v1647_v26  ;;  %v1234_v25 = vmax.f32 %v2038_v41, %v1683_v20  ;;  %v1029_v46 = vpop.f32.mrb[29].mxu0  ;;  %v1173_v14 = vpop.f32.mrb[29].mxu1 }
 0x13f   : > { %v1563_v15 = vpack.c.bf16 %v1289_v16, %v1289_v16  ;;  %v1290_v47 = vmax.f32 %v1272_v17, 0.0  ;;  %v1214_v48 = vmax.f32 %v2016_v30, %v1029_v46  ;;  %v1232_v49 = vmax.f32 %v2018_v31, %v1173_v14  ;;  %v1648_v28 = vpop.f32.mrb[30].mxu0  ;;  %v1684_v53 = vpop.f32.mrb[30].mxu1 }
 0x140   : > { %1382 = vst.msk [vmem:[%s2068_s14 + $0x20] sm:$0xf] %vm1373_vm3, %v1565_v27  ;;  %v1566_v29 = vpack.c.bf16 %v1292_v21, %v1292_v21  ;;  %v1252_v54 = vmax.f32 %v1216_v24, %v1234_v25  ;;  %v1217_v40 = vmax.f32 %v2046_v44, %v1648_v28  ;;  %v1235_v41 = vmax.f32 %v2048_v45, %v1684_v53  ;;  %v1032_v55 = vpop.f32.mrb[31].mxu0  ;;  %v1176_v18 = vpop.f32.mrb[31].mxu1 }
 0x141   : > { %1380 = vst.msk [vmem:[%s2068_s14 + $0x18] sm:$0xf] %vm1373_vm3, %v1563_v15  ;;  %v1564_v56 = vpack.c.bf16 %v1290_v47, %v1290_v47  ;;  %v1250_v30 = vmax.f32 %v1214_v48, %v1232_v49  ;;  %v1215_v19 = vmax.f32 %v2024_v34, %v1032_v55  ;;  %v1233_v31 = vmax.f32 %v2026_v35, %v1176_v18 }
 0x142   : > { %1383 = vst.msk [vmem:[%s2068_s14 + $0x24] sm:$0xf] %vm1373_vm3, %v1566_v29  ;;  %v1277_v57 = vadd.f32 %v2057_v52, %v1252_v54  ;;  %v1253_v60 = vmax.f32 %v1217_v40, %v1235_v41 }
 0x143   : > { %1381 = vst.msk [vmem:[%s2068_s14 + $0x1c] sm:$0xf] %vm1373_vm3, %v1564_v56  ;;  %v1275_v44 = vadd.f32 %v2057_v52, %v1250_v30  ;;  %v1251_v45 = vmax.f32 %v1215_v19, %v1233_v31 }
 0x144   : > { %v1295_v61 = vmax.f32 %v1277_v57, 0.0  ;;  %v1278_v62 = vadd.f32 %v2057_v52, %v1253_v60 }
 0x145   : > { %v1293_v63 = vmax.f32 %v1275_v44, 0.0  ;;  %v1276_v0 = vadd.f32 %v2057_v52, %v1251_v45  ;;  %v1651_v34 = vpop.f32.mrb[32].mxu0  ;;  %v1687_v1 = vpop.f32.mrb[32].mxu1 }
 0x146   : > { %v1569_v35 = vpack.c.bf16 %v1295_v61, %v1295_v61  ;;  %v1296_v2 = vmax.f32 %v1278_v62, 0.0  ;;  %v1220_v3 = vmax.f32 %v2050_v50, %v1651_v34  ;;  %v1238_v4 = vmax.f32 %v2052_v51, %v1687_v1  ;;  %v1045_v5 = vpop.f32.mrb[33].mxu0  ;;  %v1189_v32 = vpop.f32.mrb[33].mxu1 }
 0x147   : > { %v1567_v33 = vpack.c.bf16 %v1293_v63, %v1293_v63  ;;  %v1294_v6 = vmax.f32 %v1276_v0, 0.0  ;;  %v1218_v7 = vmax.f32 %v2032_v38, %v1045_v5  ;;  %v1236_v8 = vmax.f32 %v2034_v39, %v1189_v32  ;;  %v1652_v22 = vpop.f32.mrb[34].mxu0  ;;  %v1688_v9 = vpop.f32.mrb[34].mxu1 }
 0x148   : > { %1386 = vst.msk [vmem:[%s2068_s14 + $0x30] sm:$0xf] %vm1373_vm3, %v1569_v35  ;;  %v1570_v23 = vpack.c.bf16 %v1296_v2, %v1296_v2  ;;  %v1256_v10 = vmax.f32 %v1220_v3, %v1238_v4  ;;  %v1221_v50 = vmax.f32 %v2059_v58, %v1652_v22  ;;  %v1239_v51 = vmax.f32 %v2061_v59, %v1688_v9  ;;  %v1048_v11 = vpop.f32.mrb[35].mxu0  ;;  %v1192_v36 = vpop.f32.mrb[35].mxu1 }
 0x149   : > { %1384 = vst.msk [vmem:[%s2068_s14 + $0x28] sm:$0xf] %vm1373_vm3, %v1567_v33  ;;  %v1568_v37 = vpack.c.bf16 %v1294_v6, %v1294_v6  ;;  %v1254_v38 = vmax.f32 %v1218_v7, %v1236_v8  ;;  %v1219_v12 = vmax.f32 %v2042_v42, %v1048_v11  ;;  %v1237_v39 = vmax.f32 %v2044_v43, %v1192_v36 }
 0x14a   : > { %1387 = vst.msk [vmem:[%s2068_s14 + $0x34] sm:$0xf] %vm1373_vm3, %v1570_v23  ;;  %v1281_v13 = vadd.f32 %v2057_v52, %v1256_v10  ;;  %v1257_v16 = vmax.f32 %v1221_v50, %v1239_v51 }
 0x14b   : > { %1385 = vst.msk [vmem:[%s2068_s14 + $0x2c] sm:$0xf] %vm1373_vm3, %v1568_v37  ;;  %v1279_v58 = vadd.f32 %v2057_v52, %v1254_v38  ;;  %v1255_v59 = vmax.f32 %v1219_v12, %v1237_v39 }
 0x14c   : > { %v1299_v17 = vmax.f32 %v1281_v13, 0.0  ;;  %v1282_v26 = vadd.f32 %v2057_v52, %v1257_v16 }
 0x14d   : > { %v1297_v42 = vmax.f32 %v1279_v58, 0.0  ;;  %v1280_v20 = vadd.f32 %v2057_v52, %v1255_v59 }
 0x14e   : > { %v1573_v43 = vpack.c.bf16 %v1299_v17, %v1299_v17  ;;  %v1300_v27 = vmax.f32 %v1282_v26, 0.0 }
 0x14f   : > { %v1571_v21 = vpack.c.bf16 %v1297_v42, %v1297_v42  ;;  %v1298_v24 = vmax.f32 %v1280_v20, 0.0 }
 0x150   : > { %1390 = vst.msk [vmem:[%s2068_s14 + $0x40] sm:$0xf] %vm1373_vm3, %v1573_v43  ;;  %v1574_v25 = vpack.c.bf16 %v1300_v27, %v1300_v27 }
 0x151   : > { %1388 = vst.msk [vmem:[%s2068_s14 + $0x38] sm:$0xf] %vm1373_vm3, %v1571_v21  ;;  %v1572_v46 = vpack.c.bf16 %v1298_v24, %v1298_v24 }
 0x152   : > { %1391 = vst.msk [vmem:[%s2068_s14 + $0x44] sm:$0xf] %vm1373_vm3, %v1574_v25 }
 0x153   : > { %1389 = vst.msk [vmem:[%s2068_s14 + $0x3c] sm:$0xf] %vm1373_vm3, %v1572_v46 }
 0x154 PF: > { %p10_p9 = scmp.ge.s32.totalorder %s1820_s16, 4   ;;  %s2166_s12 = smov %s1776_s13 }
 0x155   : > { %s2167_s13 = smov %s1829_s19  ;;  %s2168_s14 = smov %s1820_s16 }
 0x156   :  { %12 = sbr.rel (!%p10_p9) target bundleno = 2 (0x2), region = 108 }

// kernel: net_forward.3
= control target key start
LH: loop header
LB: loop body
LE: loop exit
PB: predicated region body
PF: predicated region fallthrough
CT: control target
= control target key end

     0   :  { %v3760_v0 = vmov 0   ;;  %vm858_vm0 = vcmask 998400   ;;  %vm1051_vm1 = vcmask 1044480   ;;  %vm3762_vm2 = vmmov 0   ;;  %s4992_s1 = inlined_call_operand.vmem [shape: bf16[250,32], index: 1, kind: input, shape index: {}]   ;;  %s4993_s0 = inlined_call_operand.vmem [shape: bf16[4,16,16,250], index: 0, kind: input, shape index: {}]   ;;  %s4994_s3 = inlined_call_operand.vmem [shape: bf16[16,32,128], index: 3, kind: input, shape index: {}]   ;;  %s4995_s2 = inlined_call_operand.vmem [shape: f32[1,32], index: 2, kind: input, shape index: {}]   ;;  %s4996_s5 = inlined_call_operand.vmem [shape: bf16[128,128], index: 5, kind: input, shape index: {}]   ;;  %s4997_s4 = inlined_call_operand.vmem [shape: f32[1,128], index: 4, kind: input, shape index: {}]   ;;  %s4998_s6 = inlined_call_operand.vmem [shape: f32[1,128], index: 6, kind: input, shape index: {}]   ;;  %s4999_s7 = inlined_call_operand.vmem [shape: f32[16,128], index: 7, kind: output, shape index: {}]  }
   0x1   :  { %1055 = vmatprep.subr.bf16.mxu0 %v3760_v0  ;;  %v3504_v1 = vld [vmem:[%s4992_s1] sm:$0xff]   ;;  %3469 = vmatprep.subr.bf16.mxu1 %v3760_v0  ;;  %v3505_v2 = vld [vmem:[%s4992_s1 + $0x8] sm:$0xff]   ;;  %v3506_v3 = vld [vmem:[%s4992_s1 + $0x10] sm:$0xff]   ;;  %vm1804_vm3 = vcmask 261120  }
   0x2   :  { %1056 = vmatpush1.bf16.msra.mxu0 %v3504_v1  ;;  %3485 = vmatpush1.bf16.msra.mxu1 %v3504_v1  ;;  %v3507_v4 = vld [vmem:[%s4992_s1 + $0x18] sm:$0xff]   ;;  %v3508_v5 = vld [vmem:[%s4992_s1 + $0x20] sm:$0xff]   ;;  %v3509_v7 = vld [vmem:[%s4992_s1 + $0x28] sm:$0xff]  }
   0x3   :  { %1057 = vmatprep.subr.bf16.mxu0 %v3760_v0  ;;  %3470 = vmatprep.subr.bf16.mxu1 %v3760_v0  ;;  %v3522_v6 = vld [vmem:[%s4993_s0 + $0x4] ss:$8 sps:$4 sm:$0xff]   ;;  %v3510_v8 = vld [vmem:[%s4992_s1 + $0x30] sm:$0xff]   ;;  %v3511_v9 = vld [vmem:[%s4992_s1 + $0x38] sm:$0xff]  }
   0x4   :  { %3081 = vmatprep.mubr.msk.bf16.mxu0 %vm858_vm0, %v3522_v6  ;;  %v3512_v10 = vld [vmem:[%s4992_s1 + $0x40] sm:$0xff]   ;;  %v3513_v12 = vld [vmem:[%s4992_s1 + $0x48] sm:$0xff]   ;;  %v3514_v13 = vld [vmem:[%s4992_s1 + $0x50] sm:$0xff]  }
   0x5   :  { %v3552_v11 = vld [vmem:[%s4993_s0 + $0x2a4] ss:$8 sps:$4 sm:$0xff]   ;;  %v3515_v14 = vld [vmem:[%s4992_s1 + $0x58] sm:$0xff]   ;;  %v3518_v17 = vld [vmem:[%s4992_s1 + $0x70] sm:$0xff]  }
   0x6   :  { %1058 = vmatpush1.bf16.msra.mxu0 %v3505_v2  ;;  %3486 = vmatpush1.bf16.msra.mxu1 %v3505_v2  ;;  %v3516_v15 = vld [vmem:[%s4992_s1 + $0x60] sm:$0xff]   ;;  %v3517_v16 = vld [vmem:[%s4992_s1 + $0x68] sm:$0xff]   ;;  %v3519_v18 = vld [vmem:[%s4992_s1 + $0x78] sm:$0x1f]  }
   0x7   :  { %1059 = vmatprep.subr.bf16.mxu0 %v3760_v0  ;;  %3471 = vmatprep.subr.bf16.mxu1 %v3760_v0  ;;  %v1053_v19 = vsel %vm1051_vm1, %v3519_v18, 0  ;;  %v3520_v20 = vld [vmem:[%s4993_s0] ss:$8 sps:$4 sm:$0xff]   ;;  %v3523_v22 = vld [vmem:[%s4993_s0 + $0x14] ss:$8 sps:$4 sm:$0xff]  }
   0x8   :  { %3123 = vmatprep.mubr.msk.bf16.mxu1 %vm858_vm0, %v3552_v11  ;;  %v3550_v21 = vld [vmem:[%s4993_s0 + $0x2a0] ss:$8 sps:$4 sm:$0xff]   ;;  %v3556_v23 = vld [vmem:[%s4993_s0 + $0x2b4] ss:$8 sps:$4 sm:$0xff]   ;;  %v3525_v24 = vld [vmem:[%s4993_s0 + $0x10] ss:$8 sps:$4 sm:$0xff]  }
   0x9   :  { %v3558_v25 = vld [vmem:[%s4993_s0 + $0x2b0] ss:$8 sps:$4 sm:$0xff]   ;;  %v3526_v26 = vld [vmem:[%s4993_s0 + $0x24] ss:$8 sps:$4 sm:$0xff]   ;;  %v3528_v28 = vld [vmem:[%s4993_s0 + $0x20] ss:$8 sps:$4 sm:$0xff]  }
   0xa   :  { %1060 = vmatpush1.bf16.msra.mxu0 %v3506_v3  ;;  %3487 = vmatpush1.bf16.msra.mxu1 %v3506_v3  ;;  %v3562_v27 = vld [vmem:[%s4993_s0 + $0x2c4] ss:$8 sps:$4 sm:$0xff]   ;;  %v3564_v29 = vld [vmem:[%s4993_s0 + $0x2c0] ss:$8 sps:$4 sm:$0xff]   ;;  %v3529_v30 = vld [vmem:[%s4993_s0 + $0x34] ss:$8 sps:$4 sm:$0xff]  }
   0xb   :  { %1061 = vmatprep.subr.bf16.mxu0 %v3760_v0  ;;  %3472 = vmatprep.subr.bf16.mxu1 %v3760_v0  ;;  %v3568_v31 = vld [vmem:[%s4993_s0 + $0x2d4] ss:$8 sps:$4 sm:$0xff]   ;;  %v3531_v32 = vld [vmem:[%s4993_s0 + $0x30] ss:$8 sps:$4 sm:$0xff]   ;;  %v3532_v34 = vld [vmem:[%s4993_s0 + $0x44] ss:$8 sps:$4 sm:$0xff]  }
   0xc   :  { %v3570_v33 = vld [vmem:[%s4993_s0 + $0x2d0] ss:$8 sps:$4 sm:$0xff]   ;;  %v3574_v35 = vld [vmem:[%s4993_s0 + $0x2e4] ss:$8 sps:$4 sm:$0xff]   ;;  %v3534_v36 = vld [vmem:[%s4993_s0 + $0x40] ss:$8 sps:$4 sm:$0xff]  }
   0xd   :  { %v3576_v37 = vld [vmem:[%s4993_s0 + $0x2e0] ss:$8 sps:$4 sm:$0xff]   ;;  %v3535_v38 = vld [vmem:[%s4993_s0 + $0x54] ss:$8 sps:$4 sm:$0xff]   ;;  %v3537_v40 = vld [vmem:[%s4993_s0 + $0x50] ss:$8 sps:$4 sm:$0xff]  }
   0xe   :  { %1062 = vmatpush1.bf16.msra.mxu0 %v3507_v4  ;;  %3488 = vmatpush1.bf16.msra.mxu1 %v3507_v4  ;;  %v3580_v39 = vld [vmem:[%s4993_s0 + $0x2f4] ss:$8 sps:$4 sm:$0xff]   ;;  %v3582_v41 = vld [vmem:[%s4993_s0 + $0x2f0] ss:$8 sps:$4 sm:$0xff]   ;;  %v3538_v42 = vld [vmem:[%s4993_s0 + $0x64] ss:$8 sps:$4 sm:$0xff]  }
   0xf   :  { %1063 = vmatprep.subr.bf16.mxu0 %v3760_v0  ;;  %3473 = vmatprep.subr.bf16.mxu1 %v3760_v0  ;;  %v3586_v43 = vld [vmem:[%s4993_s0 + $0x304] ss:$8 sps:$4 sm:$0xff]   ;;  %v3540_v44 = vld [vmem:[%s4993_s0 + $0x60] ss:$8 sps:$4 sm:$0xff]   ;;  %v3541_v46 = vld [vmem:[%s4993_s0 + $0x74] ss:$8 sps:$4 sm:$0xff]  }
  0x10   :  { %v3588_v45 = vld [vmem:[%s4993_s0 + $0x300] ss:$8 sps:$4 sm:$0xff]   ;;  %v3592_v47 = vld [vmem:[%s4993_s0 + $0x314] ss:$8 sps:$4 sm:$0xff]   ;;  %v3543_v48 = vld [vmem:[%s4993_s0 + $0x70] ss:$8 sps:$4 sm:$0xff]  }
  0x11   :  { %v3594_v49 = vld [vmem:[%s4993_s0 + $0x310] ss:$8 sps:$4 sm:$0xff]   ;;  %v3544_v50 = vld [vmem:[%s4993_s0 + $0x84] ss:$8 sps:$4 sm:$0xff]   ;;  %v3546_v52 = vld [vmem:[%s4993_s0 + $0x80] ss:$8 sps:$4 sm:$0xff]  }
  0x12   :  { %1064 = vmatpush1.bf16.msra.mxu0 %v3508_v5  ;;  %3489 = vmatpush1.bf16.msra.mxu1 %v3508_v5  ;;  %v3598_v51 = vld [vmem:[%s4993_s0 + $0x324] ss:$8 sps:$4 sm:$0xff]   ;;  %v3600_v53 = vld [vmem:[%s4993_s0 + $0x320] ss:$8 sps:$4 sm:$0xff]   ;;  %v3547_v54 = vld [vmem:[%s4993_s0 + $0x94] ss:$8 sps:$4 sm:$0xff]  }
  0x13   :  { %1065 = vmatprep.subr.bf16.mxu0 %v3760_v0  ;;  %3474 = vmatprep.subr.bf16.mxu1 %v3760_v0  ;;  %v3604_v55 = vld [vmem:[%s4993_s0 + $0x334] ss:$8 sps:$4 sm:$0xff]   ;;  %v3549_v56 = vld [vmem:[%s4993_s0 + $0x90] ss:$8 sps:$4 sm:$0xff]   ;;  %v3553_v58 = vld [vmem:[%s4993_s0 + $0xa4] ss:$8 sps:$4 sm:$0xff]  }
  0x14   :  { %v3606_v57 = vld [vmem:[%s4993_s0 + $0x330] ss:$8 sps:$4 sm:$0xff]   ;;  %v3610_v59 = vld [vmem:[%s4993_s0 + $0x344] ss:$8 sps:$4 sm:$0xff]   ;;  %v3555_v60 = vld [vmem:[%s4993_s0 + $0xa0] ss:$8 sps:$4 sm:$0xff]  }
  0x15   :  { %v3612_v61 = vld [vmem:[%s4993_s0 + $0x340] ss:$8 sps:$4 sm:$0xff]   ;;  %v3559_v62 = vld [vmem:[%s4993_s0 + $0xb4] ss:$8 sps:$4 sm:$0xff]   ;;  %v3618_v1 = vld [vmem:[%s4993_s0 + $0x350] ss:$8 sps:$4 sm:$0xff]  }
  0x16   :  { %1066 = vmatpush1.bf16.msra.mxu0 %v3509_v7  ;;  %3490 = vmatpush1.bf16.msra.mxu1 %v3509_v7  ;;  %v3616_v63 = vld [vmem:[%s4993_s0 + $0x354] ss:$8 sps:$4 sm:$0xff]   ;;  %v3565_v2 = vld [vmem:[%s4993_s0 + $0xc4] ss:$8 sps:$4 sm:$0xff]   ;;  %v3567_v4 = vld [vmem:[%s4993_s0 + $0xc0] ss:$8 sps:$4 sm:$0xff]  }
  0x17   :  { %1067 = vmatprep.subr.bf16.mxu0 %v3760_v0  ;;  %3475 = vmatprep.subr.bf16.mxu1 %v3760_v0  ;;  %v3622_v3 = vld [vmem:[%s4993_s0 + $0x364] ss:$8 sps:$4 sm:$0xff]   ;;  %v3624_v5 = vld [vmem:[%s4993_s0 + $0x360] ss:$8 sps:$4 sm:$0xff]   ;;  %v3571_v6 = vld [vmem:[%s4993_s0 + $0xd4] ss:$8 sps:$4 sm:$0xff]  }
  0x18   :  { %v3628_v7 = vld [vmem:[%s4993_s0 + $0x374] ss:$8 sps:$4 sm:$0xff]   ;;  %v3634_v11 = vld [vmem:[%s4993_s0 + $0x384] ss:$8 sps:$4 sm:$0xff]  }
  0x19   :  { %v3589_v18 = vld [vmem:[%s4993_s0 + $0x104] ss:$8 sps:$4 sm:$0xff]  }
  0x1a   :  { %1068 = vmatpush1.bf16.msra.mxu0 %v3510_v8  ;;  %3491 = vmatpush1.bf16.msra.mxu1 %v3510_v8  ;;  %v3573_v8 = vld [vmem:[%s4993_s0 + $0xd0] ss:$8 sps:$4 sm:$0xff]  }
  0x1b   :  { %1069 = vmatprep.subr.bf16.mxu0 %v3760_v0  ;;  %3476 = vmatprep.subr.bf16.mxu1 %v3760_v0 }
  0x1e   :  { %1070 = vmatpush1.bf16.msra.mxu0 %v3511_v9  ;;  %3492 = vmatpush1.bf16.msra.mxu1 %v3511_v9  ;;  %v3630_v9 = vld [vmem:[%s4993_s0 + $0x370] ss:$8 sps:$4 sm:$0xff]  }
  0x1f   :  { %1071 = vmatprep.subr.bf16.mxu0 %v3760_v0  ;;  %3477 = vmatprep.subr.bf16.mxu1 %v3760_v0 }
  0x22   :  { %1072 = vmatpush1.bf16.msra.mxu0 %v3512_v10  ;;  %3493 = vmatpush1.bf16.msra.mxu1 %v3512_v10  ;;  %v3577_v10 = vld [vmem:[%s4993_s0 + $0xe4] ss:$8 sps:$4 sm:$0xff]  }
  0x23   :  { %1073 = vmatprep.subr.bf16.mxu0 %v3760_v0  ;;  %3478 = vmatprep.subr.bf16.mxu1 %v3760_v0 }
  0x26   :  { %1074 = vmatpush1.bf16.msra.mxu0 %v3513_v12  ;;  %3494 = vmatpush1.bf16.msra.mxu1 %v3513_v12  ;;  %v3579_v12 = vld [vmem:[%s4993_s0 + $0xe0] ss:$8 sps:$4 sm:$0xff]  }
  0x27   :  { %1075 = vmatprep.subr.bf16.mxu0 %v3760_v0  ;;  %3479 = vmatprep.subr.bf16.mxu1 %v3760_v0 }
  0x2a   :  { %1076 = vmatpush1.bf16.msra.mxu0 %v3514_v13  ;;  %3495 = vmatpush1.bf16.msra.mxu1 %v3514_v13  ;;  %v3636_v13 = vld [vmem:[%s4993_s0 + $0x380] ss:$8 sps:$4 sm:$0xff]  }
  0x2b   :  { %1077 = vmatprep.subr.bf16.mxu0 %v3760_v0  ;;  %3480 = vmatprep.subr.bf16.mxu1 %v3760_v0 }
  0x2e   :  { %1078 = vmatpush1.bf16.msra.mxu0 %v3515_v14  ;;  %3496 = vmatpush1.bf16.msra.mxu1 %v3515_v14  ;;  %v3583_v14 = vld [vmem:[%s4993_s0 + $0xf4] ss:$8 sps:$4 sm:$0xff]  }
  0x2f   :  { %1079 = vmatprep.subr.bf16.mxu0 %v3760_v0  ;;  %3481 = vmatprep.subr.bf16.mxu1 %v3760_v0 }
  0x32   :  { %1080 = vmatpush1.bf16.msra.mxu0 %v3516_v15  ;;  %3497 = vmatpush1.bf16.msra.mxu1 %v3516_v15  ;;  %v3640_v15 = vld [vmem:[%s4993_s0 + $0x394] ss:$8 sps:$4 sm:$0xff]  }
  0x33   :  { %1081 = vmatprep.subr.bf16.mxu0 %v3760_v0  ;;  %3482 = vmatprep.subr.bf16.mxu1 %v3760_v0 }
  0x36   :  { %1082 = vmatpush1.bf16.msra.mxu0 %v3517_v16  ;;  %3498 = vmatpush1.bf16.msra.mxu1 %v3517_v16  ;;  %v3585_v16 = vld [vmem:[%s4993_s0 + $0xf0] ss:$8 sps:$4 sm:$0xff]  }
  0x37   :  { %1083 = vmatprep.subr.bf16.mxu0 %v3760_v0  ;;  %3483 = vmatprep.subr.bf16.mxu1 %v3760_v0 }
  0x3a   :  { %1084 = vmatpush1.bf16.msra.mxu0 %v3518_v17  ;;  %3499 = vmatpush1.bf16.msra.mxu1 %v3518_v17  ;;  %v3642_v17 = vld [vmem:[%s4993_s0 + $0x390] ss:$8 sps:$4 sm:$0xff]  }
  0x3b   :  { %1085 = vmatprep.subr.bf16.mxu0 %v3760_v0  ;;  %3484 = vmatprep.subr.bf16.mxu1 %v3760_v0  ;;  %v3561_v0 = vld [vmem:[%s4993_s0 + $0xb0] ss:$8 sps:$4 sm:$0xff]  }
  0x3e   :  { %1086 = vmatpush1.bf16.msra.mxu0 %v1053_v19  ;;  %3500 = vmatpush1.bf16.msra.mxu1 %v1053_v19  ;;  %v3646_v19 = vld [vmem:[%s4993_s0 + $0x3a4] ss:$8 sps:$4 sm:$0xff]  }
  0x41   :  { %1088 = vmatmul.mubr.bf16.vlgmr.msra.gmra.mrb[0].mxu0 %v3520_v20  ;;  %1424 = vmatmul.mubr.bf16.vlgmr.msra.gmra.mrb[0].mxu1 %v3550_v21  ;;  %v3591_v20 = vld [vmem:[%s4993_s0 + $0x100] ss:$8 sps:$4 sm:$0xff]  }
  0x42   :  { %3082 = vmatprep.mubr.msk.bf16.mxu0 %vm858_vm0, %v3523_v22  ;;  %3124 = vmatprep.mubr.msk.bf16.mxu1 %vm858_vm0, %v3556_v23  ;;  %v3648_v21 = vld [vmem:[%s4993_s0 + $0x3a0] ss:$8 sps:$4 sm:$0xff]   ;;  %v3595_v22 = vld [vmem:[%s4993_s0 + $0x114] ss:$8 sps:$4 sm:$0xff]  }
  0x43   :  { %v3652_v23 = vld [vmem:[%s4993_s0 + $0x3b4] ss:$8 sps:$4 sm:$0xff]  }
  0x49   :  { %1096 = vmatmul.mubr.bf16.gmra.mrb[4].mxu0 %v3525_v24  ;;  %1432 = vmatmul.mubr.bf16.gmra.mrb[4].mxu1 %v3558_v25  ;;  %v3597_v24 = vld [vmem:[%s4993_s0 + $0x110] ss:$8 sps:$4 sm:$0xff]  }
  0x4a   :  { %3083 = vmatprep.mubr.msk.bf16.mxu0 %vm858_vm0, %v3526_v26  ;;  %3125 = vmatprep.mubr.msk.bf16.mxu1 %vm858_vm0, %v3562_v27  ;;  %v3654_v25 = vld [vmem:[%s4993_s0 + $0x3b0] ss:$8 sps:$4 sm:$0xff]   ;;  %v3601_v26 = vld [vmem:[%s4993_s0 + $0x124] ss:$8 sps:$4 sm:$0xff]  }
  0x4b   :  { %v3658_v27 = vld [vmem:[%s4993_s0 + $0x3c4] ss:$8 sps:$4 sm:$0xff]  }
  0x51   :  { %1104 = vmatmul.mubr.bf16.gmra.mrb[8].mxu0 %v3528_v28  ;;  %1440 = vmatmul.mubr.bf16.gmra.mrb[8].mxu1 %v3564_v29  ;;  %v3603_v28 = vld [vmem:[%s4993_s0 + $0x120] ss:$8 sps:$4 sm:$0xff]  }
  0x52   :  { %3084 = vmatprep.mubr.msk.bf16.mxu0 %vm858_vm0, %v3529_v30  ;;  %3126 = vmatprep.mubr.msk.bf16.mxu1 %vm858_vm0, %v3568_v31  ;;  %v3660_v29 = vld [vmem:[%s4993_s0 + $0x3c0] ss:$8 sps:$4 sm:$0xff]   ;;  %v3607_v30 = vld [vmem:[%s4993_s0 + $0x134] ss:$8 sps:$4 sm:$0xff]  }
  0x53   :  { %v3664_v31 = vld [vmem:[%s4993_s0 + $0x3d4] ss:$8 sps:$4 sm:$0xff]  }
  0x59   :  { %1112 = vmatmul.mubr.bf16.gmra.mrb[12].mxu0 %v3531_v32  ;;  %1448 = vmatmul.mubr.bf16.gmra.mrb[12].mxu1 %v3570_v33  ;;  %v3609_v32 = vld [vmem:[%s4993_s0 + $0x130] ss:$8 sps:$4 sm:$0xff]  }
  0x5a   :  { %3085 = vmatprep.mubr.msk.bf16.mxu0 %vm858_vm0, %v3532_v34  ;;  %3127 = vmatprep.mubr.msk.bf16.mxu1 %vm858_vm0, %v3574_v35  ;;  %v3666_v33 = vld [vmem:[%s4993_s0 + $0x3d0] ss:$8 sps:$4 sm:$0xff]   ;;  %v3613_v34 = vld [vmem:[%s4993_s0 + $0x144] ss:$8 sps:$4 sm:$0xff]  }
  0x5b   :  { %v3670_v35 = vld [vmem:[%s4993_s0 + $0x3e4] ss:$8 sps:$4 sm:$0xff]  }
  0x61   :  { %1120 = vmatmul.mubr.bf16.gmra.mrb[16].mxu0 %v3534_v36  ;;  %1456 = vmatmul.mubr.bf16.gmra.mrb[16].mxu1 %v3576_v37  ;;  %v3615_v36 = vld [vmem:[%s4993_s0 + $0x140] ss:$8 sps:$4 sm:$0xff]  }
  0x62   :  { %3086 = vmatprep.mubr.msk.bf16.mxu0 %vm858_vm0, %v3535_v38  ;;  %3128 = vmatprep.mubr.msk.bf16.mxu1 %vm858_vm0, %v3580_v39  ;;  %v3672_v37 = vld [vmem:[%s4993_s0 + $0x3e0] ss:$8 sps:$4 sm:$0xff]   ;;  %v3619_v38 = vld [vmem:[%s4993_s0 + $0x154] ss:$8 sps:$4 sm:$0xff]  }
  0x63   :  { %v3676_v39 = vld [vmem:[%s4993_s0 + $0x3f4] ss:$8 sps:$4 sm:$0xff]  }
  0x69   :  { %1128 = vmatmul.mubr.bf16.gmra.mrb[20].mxu0 %v3537_v40  ;;  %1464 = vmatmul.mubr.bf16.gmra.mrb[20].mxu1 %v3582_v41  ;;  %v3621_v40 = vld [vmem:[%s4993_s0 + $0x150] ss:$8 sps:$4 sm:$0xff]  }
  0x6a   :  { %3087 = vmatprep.mubr.msk.bf16.mxu0 %vm858_vm0, %v3538_v42  ;;  %3129 = vmatprep.mubr.msk.bf16.mxu1 %vm858_vm0, %v3586_v43  ;;  %v3678_v41 = vld [vmem:[%s4993_s0 + $0x3f0] ss:$8 sps:$4 sm:$0xff]   ;;  %v3625_v42 = vld [vmem:[%s4993_s0 + $0x164] ss:$8 sps:$4 sm:$0xff]   ;;  %v3627_v43 = vld [vmem:[%s4993_s0 + $0x160] ss:$8 sps:$4 sm:$0xff]  }
  0x71   :  { %1136 = vmatmul.mubr.bf16.gmra.mrb[24].mxu0 %v3540_v44  ;;  %1472 = vmatmul.mubr.bf16.gmra.mrb[24].mxu1 %v3588_v45  ;;  %v3631_v44 = vld [vmem:[%s4993_s0 + $0x174] ss:$8 sps:$4 sm:$0xff]   ;;  %v3633_v45 = vld [vmem:[%s4993_s0 + $0x170] ss:$8 sps:$4 sm:$0xff]  }
  0x72   :  { %3088 = vmatprep.mubr.msk.bf16.mxu0 %vm858_vm0, %v3541_v46  ;;  %3130 = vmatprep.mubr.msk.bf16.mxu1 %vm858_vm0, %v3592_v47  ;;  %v3637_v46 = vld [vmem:[%s4993_s0 + $0x184] ss:$8 sps:$4 sm:$0xff]   ;;  %v5000_v47 = vmov 0.0  }
  0x73   :  { %3321 = vmatprep.subr.bf16.mxu1 %v5000_v47 }
  0x79   :  { %1144 = vmatmul.mubr.bf16.gmra.mrb[28].mxu0 %v3543_v48  ;;  %1480 = vmatmul.mubr.bf16.gmra.mrb[28].mxu1 %v3594_v49  ;;  %v3706_v48 = vld [vmem:[%s4994_s3 + $0x10] sm:$0xff]   ;;  %v3639_v49 = vld [vmem:[%s4993_s0 + $0x180] ss:$8 sps:$4 sm:$0xff]  }
  0x7a   :  { %3089 = vmatprep.mubr.msk.bf16.mxu0 %vm858_vm0, %v3544_v50  ;;  %3131 = vmatprep.mubr.msk.bf16.mxu1 %vm858_vm0, %v3598_v51  ;;  %v3643_v50 = vld [vmem:[%s4993_s0 + $0x194] ss:$8 sps:$4 sm:$0xff]   ;;  %v3645_v51 = vld [vmem:[%s4993_s0 + $0x190] ss:$8 sps:$4 sm:$0xff]  }
  0x7b   :  { %3322 = vmatpush3.bf16.msra.mxu1 %v3706_v48  ;;  %v3685_v48 = vld [vmem:[%s4993_s0 + $0x214] ss:$8 sps:$4 sm:$0xff]  }
  0x7c   :  { %3323 = vmatprep.subr.bf16.mxu1 %v5000_v47 }
  0x81   :  { %1152 = vmatmul.mubr.bf16.gmra.mrb[32].mxu0 %v3546_v52  ;;  %1488 = vmatmul.mubr.bf16.gmra.mrb[32].mxu1 %v3600_v53  ;;  %v3649_v52 = vld [vmem:[%s4993_s0 + $0x1a4] ss:$8 sps:$4 sm:$0xff]   ;;  %v3651_v53 = vld [vmem:[%s4993_s0 + $0x1a0] ss:$8 sps:$4 sm:$0xff]  }
  0x82   :  { %3090 = vmatprep.mubr.msk.bf16.mxu0 %vm858_vm0, %v3547_v54  ;;  %3132 = vmatprep.mubr.msk.bf16.mxu1 %vm858_vm0, %v3604_v55  ;;  %v3655_v54 = vld [vmem:[%s4993_s0 + $0x1b4] ss:$8 sps:$4 sm:$0xff]  }
  0x89   :  { %1160 = vmatmul.mubr.bf16.gmra.mrb[36].mxu0 %v3549_v56  ;;  %1496 = vmatmul.mubr.bf16.gmra.mrb[36].mxu1 %v3606_v57  ;;  %v3657_v57 = vld [vmem:[%s4993_s0 + $0x1b0] ss:$8 sps:$4 sm:$0xff]  }
  0x8a   :  { %3091 = vmatprep.mubr.msk.bf16.mxu0 %vm858_vm0, %v3553_v58  ;;  %3133 = vmatprep.mubr.msk.bf16.mxu1 %vm858_vm0, %v3610_v59  ;;  %v3661_v59 = vld [vmem:[%s4993_s0 + $0x1c4] ss:$8 sps:$4 sm:$0xff]  }
  0x91   :  { %1168 = vmatmul.mubr.bf16.gmra.mrb[40].mxu0 %v3555_v60  ;;  %1504 = vmatmul.mubr.bf16.gmra.mrb[40].mxu1 %v3612_v61 }
  0x92   :  { %3092 = vmatprep.mubr.msk.bf16.mxu0 %vm858_vm0, %v3559_v62  ;;  %3134 = vmatprep.mubr.msk.bf16.mxu1 %vm858_vm0, %v3616_v63  ;;  %v3663_v63 = vld [vmem:[%s4993_s0 + $0x1c0] ss:$8 sps:$4 sm:$0xff]  }
  0x99   :  { %1176 = vmatmul.mubr.bf16.gmra.mrb[44].mxu0 %v3561_v0  ;;  %1512 = vmatmul.mubr.bf16.gmra.mrb[44].mxu1 %v3618_v1  ;;  %v3667_v1 = vld [vmem:[%s4993_s0 + $0x1d4] ss:$8 sps:$4 sm:$0xff]  }
  0x9a   :  { %3093 = vmatprep.mubr.msk.bf16.mxu0 %vm858_vm0, %v3565_v2  ;;  %3135 = vmatprep.mubr.msk.bf16.mxu1 %vm858_vm0, %v3622_v3 }
  0xa1   :  { %1184 = vmatmul.mubr.bf16.gmra.mrb[48].mxu0 %v3567_v4  ;;  %1520 = vmatmul.mubr.bf16.gmra.mrb[48].mxu1 %v3624_v5 }
  0xa2   :  { %3094 = vmatprep.mubr.msk.bf16.mxu0 %vm858_vm0, %v3571_v6  ;;  %3136 = vmatprep.mubr.msk.bf16.mxu1 %vm858_vm0, %v3628_v7 }
  0xa9   :  { %1192 = vmatmul.mubr.bf16.gmra.mrb[52].mxu0 %v3573_v8  ;;  %1528 = vmatmul.mubr.bf16.gmra.mrb[52].mxu1 %v3630_v9  ;;  %v3669_v8 = vld [vmem:[%s4993_s0 + $0x1d0] ss:$8 sps:$4 sm:$0xff]  }
  0xaa   :  { %3095 = vmatprep.mubr.msk.bf16.mxu0 %vm858_vm0, %v3577_v10  ;;  %3137 = vmatprep.mubr.msk.bf16.mxu1 %vm858_vm0, %v3634_v11  ;;  %v3673_v11 = vld [vmem:[%s4993_s0 + $0x1e4] ss:$8 sps:$4 sm:$0xff]  }
  0xb1   :  { %1200 = vmatmul.mubr.bf16.gmra.mrb[56].mxu0 %v3579_v12  ;;  %1536 = vmatmul.mubr.bf16.gmra.mrb[56].mxu1 %v3636_v13 }
  0xb2   :  { %3096 = vmatprep.mubr.msk.bf16.mxu0 %vm858_vm0, %v3583_v14  ;;  %3138 = vmatprep.mubr.msk.bf16.mxu1 %vm858_vm0, %v3640_v15 }
  0xb9   :  { %1208 = vmatmul.mubr.bf16.gmra.mrb[60].mxu0 %v3585_v16  ;;  %1544 = vmatmul.mubr.bf16.gmra.mrb[60].mxu1 %v3642_v17 }
  0xba   :  { %3097 = vmatprep.mubr.msk.bf16.mxu0 %vm858_vm0, %v3589_v18  ;;  %3139 = vmatprep.mubr.msk.bf16.mxu1 %vm858_vm0, %v3646_v19 }
  0xc1   :  { %1216 = vmatmul.mubr.bf16.gmra.mrb[64].mxu0 %v3591_v20  ;;  %1552 = vmatmul.mubr.bf16.gmra.mrb[64].mxu1 %v3648_v21 }
  0xc2   :  { %3098 = vmatprep.mubr.msk.bf16.mxu0 %vm858_vm0, %v3595_v22  ;;  %3140 = vmatprep.mubr.msk.bf16.mxu1 %vm858_vm0, %v3652_v23  ;;  %v3675_v22 = vld [vmem:[%s4993_s0 + $0x1e0] ss:$8 sps:$4 sm:$0xff]  }
  0xc9   :  { %1224 = vmatmul.mubr.bf16.gmra.mrb[68].mxu0 %v3597_v24  ;;  %1560 = vmatmul.mubr.bf16.gmra.mrb[68].mxu1 %v3654_v25  ;;  %v3679_v25 = vld [vmem:[%s4993_s0 + $0x1f4] ss:$8 sps:$4 sm:$0xff]  }
  0xca   :  { %3099 = vmatprep.mubr.msk.bf16.mxu0 %vm858_vm0, %v3601_v26  ;;  %3141 = vmatprep.mubr.msk.bf16.mxu1 %vm858_vm0, %v3658_v27 }
  0xd1   :  { %1232 = vmatmul.mubr.bf16.gmra.mrb[72].mxu0 %v3603_v28  ;;  %1568 = vmatmul.mubr.bf16.gmra.mrb[72].mxu1 %v3660_v29 }
  0xd2   :  { %3100 = vmatprep.mubr.msk.bf16.mxu0 %vm858_vm0, %v3607_v30  ;;  %3142 = vmatprep.mubr.msk.bf16.mxu1 %vm858_vm0, %v3664_v31 }
  0xd9   :  { %1240 = vmatmul.mubr.bf16.gmra.mrb[76].mxu0 %v3609_v32  ;;  %1576 = vmatmul.mubr.bf16.gmra.mrb[76].mxu1 %v3666_v33 }
  0xda   :  { %3101 = vmatprep.mubr.msk.bf16.mxu0 %vm858_vm0, %v3613_v34  ;;  %3143 = vmatprep.mubr.msk.bf16.mxu1 %vm858_vm0, %v3670_v35  ;;  %v3681_v34 = vld [vmem:[%s4993_s0 + $0x1f0] ss:$8 sps:$4 sm:$0xff]  }
  0xe1   :  { %1248 = vmatmul.mubr.bf16.gmra.mrb[80].mxu0 %v3615_v36  ;;  %1584 = vmatmul.mubr.bf16.gmra.mrb[80].mxu1 %v3672_v37  ;;  %v3682_v37 = vld [vmem:[%s4993_s0 + $0x204] ss:$8 sps:$4 sm:$0xff]  }
  0xe2   :  { %3102 = vmatprep.mubr.msk.bf16.mxu0 %vm858_vm0, %v3619_v38  ;;  %3144 = vmatprep.mubr.msk.bf16.mxu1 %vm858_vm0, %v3676_v39 }
  0xe9   :  { %1256 = vmatmul.mubr.bf16.gmra.mrb[84].mxu0 %v3621_v40  ;;  %1592 = vmatmul.mubr.bf16.gmra.mrb[84].mxu1 %v3678_v41 }
  0xea   :  { %3103 = vmatprep.mubr.msk.bf16.mxu0 %vm858_vm0, %v3625_v42 }
  0xf1   :  { %1264 = vmatmul.mubr.bf16.gmra.mrb[88].mxu0 %v3627_v43 }
  0xf2   :  { %3104 = vmatprep.mubr.msk.bf16.mxu0 %vm858_vm0, %v3631_v44  ;;  %v3684_v44 = vld [vmem:[%s4993_s0 + $0x200] ss:$8 sps:$4 sm:$0xff]  }
  0xf9   :  { %1272 = vmatmul.mubr.bf16.gmra.mrb[92].mxu0 %v3633_v45 }
  0xfa   :  { %3105 = vmatprep.mubr.msk.bf16.mxu0 %vm858_vm0, %v3637_v46 }
 0x101   :  { %1280 = vmatmul.mubr.bf16.gmra.mrb[96].mxu0 %v3639_v49 }
 0x102   :  { %3106 = vmatprep.mubr.msk.bf16.mxu0 %vm858_vm0, %v3643_v50 }
 0x109   :  { %1288 = vmatmul.mubr.bf16.gmra.mrb[100].mxu0 %v3645_v51 }
 0x10a   :  { %3107 = vmatprep.mubr.msk.bf16.mxu0 %vm858_vm0, %v3649_v52 }
 0x111   :  { %1296 = vmatmul.mubr.bf16.gmra.mrb[104].mxu0 %v3651_v53 }
 0x112   :  { %3108 = vmatprep.mubr.msk.bf16.mxu0 %vm858_vm0, %v3655_v54 }
 0x114   :  { %v4235_v55 = vpop.f32.mrb[0].mxu0  ;;  %v4256_v3 = vpop.f32.mrb[0].mxu1 }
 0x115   :  { %v1091_v56 = vpop.f32.mrb[1].mxu0  ;;  %v1427_v4 = vpop.f32.mrb[1].mxu1 }
 0x116   :  { %v4240_v58 = vpop.f32.mrb[2].mxu0  ;;  %v4261_v6 = vpop.f32.mrb[2].mxu1  ;;  %v3687_v56 = vld [vmem:[%s4993_s0 + $0x210] ss:$8 sps:$4 sm:$0xff]  }
 0x117   :  { %v1094_v60 = vpop.f32.mrb[3].mxu0  ;;  %v1430_v9 = vpop.f32.mrb[3].mxu1 }
 0x118   :  { %v3688_v60 = vld [vmem:[%s4993_s0 + $0x224] ss:$8 sps:$4 sm:$0xff]  }
 0x119   :  { %1304 = vmatmul.mubr.bf16.gmra.mrb[108].mxu0 %v3657_v57 }
 0x11a   :  { %3109 = vmatprep.mubr.msk.bf16.mxu0 %vm858_vm0, %v3661_v59 }
 0x11c   :  { %v4246_v61 = vpop.f32.mrb[4].mxu0  ;;  %v4271_v12 = vpop.f32.mrb[4].mxu1 }
 0x11d   :  { %5033 = vst [vmem:[#allocation2_spill] sm:$0xff] %v4246_v61  ;;  %v1099_v62 = vpop.f32.mrb[5].mxu0  ;;  %v1435_v14 = vpop.f32.mrb[5].mxu1 }
 0x11e   :  { %v4251_v0 = vpop.f32.mrb[6].mxu0  ;;  %v4273_v15 = vpop.f32.mrb[6].mxu1 }
 0x11f   :  { %5034 = vst [vmem:[#allocation3_spill] sm:$0xff] %v4251_v0  ;;  %v1102_v2 = vpop.f32.mrb[7].mxu0  ;;  %v1438_v16 = vpop.f32.mrb[7].mxu1  ;;  %v5067_v0 = vmov 0.0  }
 0x120   :  { %3325 = vmatprep.mubr.msk.bf16.mxu1 %vm3762_vm2, %v5067_v0 }
 0x121   :  { %1312 = vmatmul.mubr.bf16.gmra.mrb[112].mxu0 %v3663_v63 }
 0x122   :  { %3110 = vmatprep.mubr.msk.bf16.mxu0 %vm858_vm0, %v3667_v1 }
 0x124   :  { %v4259_v5 = vpop.f32.mrb[8].mxu0  ;;  %v4276_v17 = vpop.f32.mrb[8].mxu1 }
 0x125   :  { %5035 = vst [vmem:[#allocation4_spill] sm:$0xff] %v4259_v5  ;;  %v1107_v7 = vpop.f32.mrb[9].mxu0  ;;  %v1443_v18 = vpop.f32.mrb[9].mxu1 }
 0x126   :  { %v4266_v10 = vpop.f32.mrb[10].mxu0  ;;  %v4280_v20 = vpop.f32.mrb[10].mxu1 }
 0x127   :  { %5036 = vst [vmem:[#allocation5_spill] sm:$0xff] %v4266_v10  ;;  %v1110_v13 = vpop.f32.mrb[11].mxu0  ;;  %v1446_v23 = vpop.f32.mrb[11].mxu1 }
 0x128   :  { %v3691_v13 = vld [vmem:[%s4993_s0 + $0x234] ss:$8 sps:$4 sm:$0xff]  }
 0x129   :  { %1320 = vmatmul.mubr.bf16.gmra.mrb[116].mxu0 %v3669_v8  ;;  %v3690_v8 = vld [vmem:[%s4993_s0 + $0x220] ss:$8 sps:$4 sm:$0xff]  }
 0x12a   :  { %3111 = vmatprep.mubr.msk.bf16.mxu0 %vm858_vm0, %v3673_v11 }
 0x12c   :  { %v4278_v19 = vpop.f32.mrb[12].mxu0  ;;  %v4290_v26 = vpop.f32.mrb[12].mxu1 }
 0x12d   :  { %5037 = vst [vmem:[#allocation6_spill] sm:$0xff] %v4278_v19  ;;  %v1115_v21 = vpop.f32.mrb[13].mxu0  ;;  %v1451_v28 = vpop.f32.mrb[13].mxu1 }
 0x12e   :  { %v4285_v24 = vpop.f32.mrb[14].mxu0  ;;  %v4292_v29 = vpop.f32.mrb[14].mxu1  ;;  %v3713_v21 = vld [vmem:[%s4994_s3 + $0x18] sm:$0xff]  }
 0x12f   :  { %5038 = vst [vmem:[#allocation7_spill] sm:$0xff] %v4285_v24  ;;  %v1118_v27 = vpop.f32.mrb[15].mxu0  ;;  %v1454_v30 = vpop.f32.mrb[15].mxu1  ;;  %3324 = vmatpush3.bf16.msra.mxu1 %v3713_v21 }
 0x130   :  { %3329 = vmatprep.subr.bf16.mxu1 %v5000_v47  ;;  %v3693_v27 = vld [vmem:[%s4993_s0 + $0x230] ss:$8 sps:$4 sm:$0xff]  }
 0x131   :  { %1328 = vmatmul.mubr.bf16.gmra.mrb[120].mxu0 %v3675_v22 }
 0x132   :  { %3112 = vmatprep.mubr.msk.bf16.mxu0 %vm858_vm0, %v3679_v25 }
 0x134   :  { %v4295_v31 = vpop.f32.mrb[16].mxu0  ;;  %v4297_v32 = vpop.f32.mrb[16].mxu1 }
 0x135   :  { %5039 = vst [vmem:[#allocation8_spill] sm:$0xff] %v4295_v31  ;;  %v1123_v33 = vpop.f32.mrb[17].mxu0  ;;  %v1459_v35 = vpop.f32.mrb[17].mxu1 }
 0x136   :  { %v4302_v36 = vpop.f32.mrb[18].mxu0  ;;  %v4307_v38 = vpop.f32.mrb[18].mxu1  ;;  %v3694_v33 = vld [vmem:[%s4993_s0 + $0x244] ss:$8 sps:$4 sm:$0xff]  }
 0x137   :  { %5040 = vst [vmem:[#allocation9_spill] sm:$0xff] %v4302_v36  ;;  %v1126_v39 = vpop.f32.mrb[19].mxu0  ;;  %v1462_v40 = vpop.f32.mrb[19].mxu1 }
 0x139   :  { %1336 = vmatmul.mubr.bf16.gmra.mrb[124].mxu0 %v3681_v34 }
 0x13a   :  { %3113 = vmatprep.mubr.msk.bf16.mxu0 %vm858_vm0, %v3682_v37 }
 0x13c   :  { %v4310_v41 = vpop.f32.mrb[20].mxu0  ;;  %v4312_v42 = vpop.f32.mrb[20].mxu1 }
 0x13d   :  { %5041 = vst [vmem:[#allocation10_spill] sm:$0xff] %v4310_v41  ;;  %v1131_v43 = vpop.f32.mrb[21].mxu0  ;;  %v1467_v45 = vpop.f32.mrb[21].mxu1 }
 0x13e   :  { %v4317_v46 = vpop.f32.mrb[22].mxu0  ;;  %v4322_v49 = vpop.f32.mrb[22].mxu1 }
 0x13f   :  { %v1134_v50 = vpop.f32.mrb[23].mxu0  ;;  %v1470_v51 = vpop.f32.mrb[23].mxu1 }
 0x140   :  { %v3697_v50 = vld [vmem:[%s4993_s0 + $0x254] ss:$8 sps:$4 sm:$0xff]  }
 0x141   :  { %1344 = vmatmul.mubr.bf16.gmra.mrb[128].mxu0 %v3684_v44  ;;  %v3696_v44 = vld [vmem:[%s4993_s0 + $0x240] ss:$8 sps:$4 sm:$0xff]  }
 0x142   :  { %3114 = vmatprep.mubr.msk.bf16.mxu0 %vm858_vm0, %v3685_v48 }
 0x144   :  { %v4325_v52 = vpop.f32.mrb[24].mxu0  ;;  %v4327_v53 = vpop.f32.mrb[24].mxu1 }
 0x145   :  { %v1139_v54 = vpop.f32.mrb[25].mxu0  ;;  %v1475_v57 = vpop.f32.mrb[25].mxu1 }
 0x146   :  { %v4332_v59 = vpop.f32.mrb[26].mxu0  ;;  %v4337_v62 = vpop.f32.mrb[26].mxu1 }
 0x147   :  { %v1142_v63 = vpop.f32.mrb[27].mxu0  ;;  %v1478_v1 = vpop.f32.mrb[27].mxu1 }
 0x148   :  { %v3699_v1 = vld [vmem:[%s4993_s0 + $0x250] ss:$8 sps:$4 sm:$0xff]  }
 0x149   :  { %1352 = vmatmul.mubr.bf16.gmra.mrb[132].mxu0 %v3687_v56 }
 0x14a   :  { %3115 = vmatprep.mubr.msk.bf16.mxu0 %vm858_vm0, %v3688_v60 }
 0x14c   :  { %v4340_v2 = vpop.f32.mrb[28].mxu0  ;;  %v4342_v4 = vpop.f32.mrb[28].mxu1 }
 0x14d   :  { %v1147_v7 = vpop.f32.mrb[29].mxu0  ;;  %v1483_v9 = vpop.f32.mrb[29].mxu1 }
 0x14e   :  { %v4347_v11 = vpop.f32.mrb[30].mxu0  ;;  %v4352_v14 = vpop.f32.mrb[30].mxu1  ;;  %v3700_v9 = vld [vmem:[%s4993_s0 + $0x264] ss:$8 sps:$4 sm:$0xff]  }
 0x14f   :  { %5042 = vst [vmem:[#allocation11_spill] sm:$0xff] %v4352_v14  ;;  %v1150_v16 = vpop.f32.mrb[31].mxu0  ;;  %v1486_v18 = vpop.f32.mrb[31].mxu1 }
 0x151   :  { %1360 = vmatmul.mubr.bf16.gmra.mrb[136].mxu0 %v3690_v8 }
 0x152   :  { %3116 = vmatprep.mubr.msk.bf16.mxu0 %vm858_vm0, %v3691_v13 }
 0x154   :  { %v4359_v22 = vpop.f32.mrb[32].mxu0  ;;  %v4361_v23 = vpop.f32.mrb[32].mxu1 }
 0x155   :  { %5043 = vst [vmem:[#allocation12_spill] sm:$0xff] %v4359_v22  ;;  %5044 = vst [vmem:[#allocation13_spill] sm:$0xff] %v4361_v23  ;;  %v1155_v25 = vpop.f32.mrb[33].mxu0  ;;  %v1491_v28 = vpop.f32.mrb[33].mxu1 }
 0x156   :  { %v4366_v30 = vpop.f32.mrb[34].mxu0  ;;  %v4371_v34 = vpop.f32.mrb[34].mxu1  ;;  %v3702_v28 = vld [vmem:[%s4993_s0 + $0x260] ss:$8 sps:$4 sm:$0xff]  }
 0x157   :  { %5045 = vst [vmem:[#allocation14_spill] sm:$0xff] %v4366_v30  ;;  %5046 = vst [vmem:[#allocation15_spill] sm:$0xff] %v4371_v34  ;;  %v1158_v35 = vpop.f32.mrb[35].mxu0  ;;  %v1494_v37 = vpop.f32.mrb[35].mxu1 }
 0x158   :  { %v3703_v37 = vld [vmem:[%s4993_s0 + $0x274] ss:$8 sps:$4 sm:$0xff]  }
 0x159   :  { %1368 = vmatmul.mubr.bf16.gmra.mrb[140].mxu0 %v3693_v27 }
 0x15a   :  { %3117 = vmatprep.mubr.msk.bf16.mxu0 %vm858_vm0, %v3694_v33 }
 0x15c   :  { %v4374_v39 = vpop.f32.mrb[36].mxu0  ;;  %v4376_v40 = vpop.f32.mrb[36].mxu1 }
 0x15d   :  { %5047 = vst [vmem:[#allocation16_spill] sm:$0xff] %v4374_v39  ;;  %5048 = vst [vmem:[#allocation17_spill] sm:$0xff] %v4376_v40  ;;  %v1163_v43 = vpop.f32.mrb[37].mxu0  ;;  %v1499_v45 = vpop.f32.mrb[37].mxu1 }
 0x15e   :  { %v4381_v48 = vpop.f32.mrb[38].mxu0  ;;  %v4386_v51 = vpop.f32.mrb[38].mxu1 }
 0x15f   :  { %5049 = vst [vmem:[#allocation18_spill] sm:$0xff] %v4381_v48  ;;  %5050 = vst [vmem:[#allocation19_spill] sm:$0xff] %v4386_v51  ;;  %v1166_v54 = vpop.f32.mrb[39].mxu0  ;;  %v1502_v56 = vpop.f32.mrb[39].mxu1 }
 0x161   :  { %1376 = vmatmul.mubr.bf16.gmra.mrb[144].mxu0 %v3696_v44 }
 0x162   :  { %3118 = vmatprep.mubr.msk.bf16.mxu0 %vm858_vm0, %v3697_v50 }
 0x164   :  { %v4389_v57 = vpop.f32.mrb[40].mxu0  ;;  %v4391_v60 = vpop.f32.mrb[40].mxu1 }
 0x165   :  { %5051 = vst [vmem:[#allocation20_spill] sm:$0xff] %v4391_v60  ;;  %v1171_v63 = vpop.f32.mrb[41].mxu0  ;;  %v1507_v7 = vpop.f32.mrb[41].mxu1 }
 0x166   :  { %v4396_v8 = vpop.f32.mrb[42].mxu0  ;;  %v4401_v13 = vpop.f32.mrb[42].mxu1  ;;  %v3705_v63 = vld [vmem:[%s4993_s0 + $0x270] ss:$8 sps:$4 sm:$0xff]  }
 0x167   :  { %5052 = vst [vmem:[#allocation21_spill] sm:$0xff] %v4401_v13  ;;  %v1174_v16 = vpop.f32.mrb[43].mxu0  ;;  %v1510_v18 = vpop.f32.mrb[43].mxu1 }
 0x169   :  { %1384 = vmatmul.mubr.bf16.gmra.mrb[148].mxu0 %v3699_v1 }
 0x16a   :  { %3119 = vmatprep.mubr.msk.bf16.mxu0 %vm858_vm0, %v3700_v9  ;;  %v3707_v9 = vld [vmem:[%s4993_s0 + $0x284] ss:$8 sps:$4 sm:$0xff]  }
 0x16c   :  { %v4404_v21 = vpop.f32.mrb[44].mxu0  ;;  %v4406_v25 = vpop.f32.mrb[44].mxu1 }
 0x16d   :  { %5053 = vst [vmem:[#allocation22_spill] sm:$0xff] %v4406_v25  ;;  %v1179_v27 = vpop.f32.mrb[45].mxu0  ;;  %v1515_v33 = vpop.f32.mrb[45].mxu1 }
 0x16e   :  { %v4411_v35 = vpop.f32.mrb[46].mxu0  ;;  %v4416_v43 = vpop.f32.mrb[46].mxu1 }
 0x16f   :  { %5054 = vst [vmem:[#allocation23_spill] sm:$0xff] %v4416_v43  ;;  %v1182_v44 = vpop.f32.mrb[47].mxu0  ;;  %v1518_v45 = vpop.f32.mrb[47].mxu1 }
 0x170   :  { %v3709_v44 = vld [vmem:[%s4993_s0 + $0x280] ss:$8 sps:$4 sm:$0xff]  }
 0x171   :  { %1392 = vmatmul.mubr.bf16.gmra.mrb[152].mxu0 %v3702_v28 }
 0x172   :  { %3120 = vmatprep.mubr.msk.bf16.mxu0 %vm858_vm0, %v3703_v37 }
 0x174   :  { %v4419_v50 = vpop.f32.mrb[48].mxu0  ;;  %v4421_v54 = vpop.f32.mrb[48].mxu1 }
 0x175   :  { %5055 = vst [vmem:[#allocation24_spill] sm:$0xff] %v4421_v54  ;;  %v1187_v56 = vpop.f32.mrb[49].mxu0  ;;  %v1523_v1 = vpop.f32.mrb[49].mxu1 }
 0x176   :  { %v4426_v7 = vpop.f32.mrb[50].mxu0  ;;  %v4431_v16 = vpop.f32.mrb[50].mxu1  ;;  %v3710_v1 = vld [vmem:[%s4993_s0 + $0x294] ss:$8 sps:$4 sm:$0xff]  }
 0x177   :  { %5056 = vst [vmem:[#allocation25_spill] sm:$0xff] %v4431_v16  ;;  %v1190_v18 = vpop.f32.mrb[51].mxu0  ;;  %v1526_v27 = vpop.f32.mrb[51].mxu1 }
 0x179   :  { %1400 = vmatmul.mubr.bf16.gmra.mrb[156].mxu0 %v3705_v63 }
 0x17a   :  { %3121 = vmatprep.mubr.msk.bf16.mxu0 %vm858_vm0, %v3707_v9 }
 0x17c   :  { %v4434_v28 = vpop.f32.mrb[52].mxu0  ;;  %v4436_v33 = vpop.f32.mrb[52].mxu1 }
 0x17d   :  { %5057 = vst [vmem:[#allocation26_spill] sm:$0xff] %v4436_v33  ;;  %v1195_v37 = vpop.f32.mrb[53].mxu0  ;;  %v1531_v45 = vpop.f32.mrb[53].mxu1 }
 0x17e   :  { %v4441_v56 = vpop.f32.mrb[54].mxu0  ;;  %v4446_v18 = vpop.f32.mrb[54].mxu1  ;;  %v3712_v45 = vld [vmem:[%s4993_s0 + $0x290] ss:$8 sps:$4 sm:$0xff]  }
 0x17f   :  { %5058 = vst [vmem:[#allocation27_spill] sm:$0xff] %v4446_v18  ;;  %v1198_v63 = vpop.f32.mrb[55].mxu0  ;;  %v1534_v9 = vpop.f32.mrb[55].mxu1 }
 0x181   :  { %1408 = vmatmul.mubr.bf16.gmra.mrb[160].mxu0 %v3709_v44 }
 0x182   :  { %3122 = vmatprep.mubr.msk.bf16.mxu0 %vm858_vm0, %v3710_v1 }
 0x184   :  { %v4449_v27 = vpop.f32.mrb[56].mxu0  ;;  %v4451_v37 = vpop.f32.mrb[56].mxu1 }
 0x185   :  { %5059 = vst [vmem:[#allocation28_spill] sm:$0xff] %v4451_v37  ;;  %v1203_v47 = vpop.f32.mrb[57].mxu0  ;;  %v1539_v33 = vpop.f32.mrb[57].mxu1 }
 0x186   :  { %v4456_v16 = vpop.f32.mrb[58].mxu0  ;;  %v4458_v54 = vpop.f32.mrb[58].mxu1 }
 0x187   :  { %5060 = vst [vmem:[#allocation29_spill] sm:$0xff] %v4458_v54  ;;  %v1206_v18 = vpop.f32.mrb[59].mxu0  ;;  %v1542_v63 = vpop.f32.mrb[59].mxu1 }
 0x189   :  { %1416 = vmatmul.mubr.bf16.gmra.mrb[164].mxu0 %v3712_v45 }
 0x18c   :  { %v4460_v44 = vpop.f32.mrb[60].mxu0  ;;  %v4462_v1 = vpop.f32.mrb[60].mxu1 }
 0x18d   :  { %5061 = vst [vmem:[#allocation30_spill] sm:$0xff] %v4462_v1  ;;  %v1211_v9 = vpop.f32.mrb[61].mxu0  ;;  %v1547_v43 = vpop.f32.mrb[61].mxu1 }
 0x18e   :  { %v4464_v37 = vpop.f32.mrb[62].mxu0  ;;  %v4466_v47 = vpop.f32.mrb[62].mxu1 }
 0x18f   :  { %5062 = vst [vmem:[#allocation31_spill] sm:$0xff] %v4466_v47  ;;  %v1214_v25 = vpop.f32.mrb[63].mxu0  ;;  %v1550_v13 = vpop.f32.mrb[63].mxu1 }
 0x194   :  { %v4468_v33 = vpop.f32.mrb[64].mxu0  ;;  %v4470_v60 = vpop.f32.mrb[64].mxu1 }
 0x195   :  { %v1219_v45 = vpop.f32.mrb[65].mxu0  ;;  %v1555_v1 = vpop.f32.mrb[65].mxu1 }
 0x196   :  { %v4476_v9 = vpop.f32.mrb[66].mxu0  ;;  %v4478_v43 = vpop.f32.mrb[66].mxu1 }
 0x197   :  { %v1222_v13 = vpop.f32.mrb[67].mxu0  ;;  %v1558_v54 = vpop.f32.mrb[67].mxu1 }
 0x19c   :  { %v4484_v51 = vpop.f32.mrb[68].mxu0  ;;  %v4486_v18 = vpop.f32.mrb[68].mxu1 }
 0x19d   :  { %5063 = vst [vmem:[#allocation32_spill] sm:$0xff] %v4484_v51  ;;  %v1227_v1 = vpop.f32.mrb[69].mxu0  ;;  %v1563_v40 = vpop.f32.mrb[69].mxu1 }
 0x19e   :  { %v4492_v34 = vpop.f32.mrb[70].mxu0  ;;  %v4494_v25 = vpop.f32.mrb[70].mxu1 }
 0x19f   :  { %5064 = vst [vmem:[#allocation33_spill] sm:$0xff] %v4492_v34  ;;  %v1230_v54 = vpop.f32.mrb[71].mxu0  ;;  %v1566_v23 = vpop.f32.mrb[71].mxu1 }
 0x1a4   :  { %v4500_v14 = vpop.f32.mrb[72].mxu0  ;;  %v4502_v45 = vpop.f32.mrb[72].mxu1 }
 0x1a5   :  { %5065 = vst [vmem:[#allocation34_spill] sm:$0xff] %v4500_v14  ;;  %v1235_v40 = vpop.f32.mrb[73].mxu0  ;;  %v1571_v51 = vpop.f32.mrb[73].mxu1 }
 0x1a6   :  { %v4508_v61 = vpop.f32.mrb[74].mxu0  ;;  %v4510_v13 = vpop.f32.mrb[74].mxu1 }
 0x1a7   :  { %5066 = vst [vmem:[#allocation35_spill] sm:$0xff] %v4508_v61  ;;  %v1238_v23 = vpop.f32.mrb[75].mxu0  ;;  %v1574_v34 = vpop.f32.mrb[75].mxu1 }
 0x1ac   :  { %v4518_v40 = vpop.f32.mrb[76].mxu0  ;;  %v4520_v1 = vpop.f32.mrb[76].mxu1 }
 0x1ad   :  { %5068 = vst [vmem:[#allocation36_spill] sm:$0xff] %v4518_v40  ;;  %v1243_v63 = vpop.f32.mrb[77].mxu0  ;;  %v1579_v23 = vpop.f32.mrb[77].mxu1 }
 0x1ae   :  { %v4526_v61 = vpop.f32.mrb[78].mxu0  ;;  %v4528_v47 = vpop.f32.mrb[78].mxu1 }
 0x1af   :  { %5069 = vst [vmem:[#allocation37_spill] sm:$0xff] %v4526_v61  ;;  %v1246_v0 = vpop.f32.mrb[79].mxu0  ;;  %v1582_v14 = vpop.f32.mrb[79].mxu1 }
 0x1b4   :  { %v4534_v5 = vpop.f32.mrb[80].mxu0  ;;  %v4536_v51 = vpop.f32.mrb[80].mxu1 }
 0x1b5   :  { %5070 = vst [vmem:[#allocation38_spill] sm:$0xff] %v4534_v5  ;;  %v1251_v23 = vpop.f32.mrb[81].mxu0  ;;  %v1587_v40 = vpop.f32.mrb[81].mxu1 }
 0x1b6   :  { %v4542_v19 = vpop.f32.mrb[82].mxu0  ;;  %v4544_v34 = vpop.f32.mrb[82].mxu1 }
 0x1b7   :  { %5071 = vst [vmem:[#allocation39_spill] sm:$0xff] %v4542_v19  ;;  %v1254_v14 = vpop.f32.mrb[83].mxu0  ;;  %v1590_v61 = vpop.f32.mrb[83].mxu1 }
 0x1bc   :  { %v4550_v24 = vpop.f32.mrb[84].mxu0  ;;  %v4552_v63 = vpop.f32.mrb[84].mxu1 }
 0x1bd   :  { %5072 = vst [vmem:[#allocation40_spill] sm:$0xff] %v4550_v24  ;;  %v1259_v40 = vpop.f32.mrb[85].mxu0  ;;  %v1595_v5 = vpop.f32.mrb[85].mxu1 }
 0x1be   :  { %v4558_v31 = vpop.f32.mrb[86].mxu0  ;;  %v4560_v0 = vpop.f32.mrb[86].mxu1 }
 0x1bf   :  { %5073 = vst [vmem:[#allocation41_spill] sm:$0xff] %v4558_v31  ;;  %v1262_v61 = vpop.f32.mrb[87].mxu0  ;;  %v1598_v19 = vpop.f32.mrb[87].mxu1 }
 0x1c4   :  { %v4566_v36 = vpop.f32.mrb[88].mxu0 }
 0x1c5   :  { %5074 = vst [vmem:[#allocation42_spill] sm:$0xff] %v4566_v36  ;;  %v1267_v23 = vpop.f32.mrb[89].mxu0 }
 0x1c6   :  { %v4570_v54 = vpop.f32.mrb[90].mxu0 }
 0x1c7   :  { %5075 = vst [vmem:[#allocation43_spill] sm:$0xff] %v4570_v54  ;;  %v1270_v24 = vpop.f32.mrb[91].mxu0 }
 0x1cc   :  { %v4574_v41 = vpop.f32.mrb[92].mxu0 }
 0x1cd   :  { %5076 = vst [vmem:[#allocation44_spill] sm:$0xff] %v4574_v41  ;;  %v1275_v14 = vpop.f32.mrb[93].mxu0 }
 0x1ce   :  { %v4578_v10 = vpop.f32.mrb[94].mxu0  ;;  %v5082_v14 = vmax.f32 %v4256_v3, %v4470_v60 }
 0x1cf   :  { %5077 = vst [vmem:[#allocation45_spill] sm:$0xff] %v4578_v10  ;;  %v1278_v31 = vpop.f32.mrb[95].mxu0 }
 0x1d4   :  { %v4582_v40 = vpop.f32.mrb[96].mxu0 }
 0x1d5   :  { %5078 = vst [vmem:[#allocation46_spill] sm:$0xff] %v4582_v40  ;;  %v1283_v36 = vpop.f32.mrb[97].mxu0 }
 0x1d6   :  { %v4586_v5 = vpop.f32.mrb[98].mxu0 }
 0x1d7   :  { %5079 = vst [vmem:[#allocation47_spill] sm:$0xff] %v4586_v5  ;;  %v1286_v54 = vpop.f32.mrb[99].mxu0 }
 0x1d8   :  { %v4602_v54 = vld [vmem:[%s4995_s2] ss:$0 sm:$0xff] }
 0x1dc   :  { %v4590_v61 = vpop.f32.mrb[100].mxu0 }
 0x1dd   :  { %5080 = vst [vmem:[#allocation48_spill] sm:$0xff] %v4590_v61  ;;  %v1291_v41 = vpop.f32.mrb[101].mxu0 }
 0x1de   :  { %v4594_v19 = vpop.f32.mrb[102].mxu0 }
 0x1df   :  { %5081 = vst [vmem:[#allocation49_spill] sm:$0xff] %v4594_v19  ;;  %v1294_v10 = vpop.f32.mrb[103].mxu0 }
 0x1e0   :  { %v5083_v10 = vmax.f32 %v4261_v6, %v4478_v43  ;;  %v5085_v43 = vmax.f32 %v4273_v15, %v4494_v25  ;;  %v5087_v25 = vmax.f32 %v4280_v20, %v4510_v13  ;;  %v5089_v13 = vmax.f32 %v4292_v29, %v4528_v47 }
 0x1e1   :  { %v5091_v47 = vmax.f32 %v4307_v38, %v4544_v34  ;;  %v5093_v34 = vmax.f32 %v4322_v49, %v4560_v0  ;;  %v5095_v0 = vmax.f32 %v4240_v58, %v4476_v9  ;;  %v5100_v9 = vld [vmem:[#allocation3_spill] sm:$0xff] }
 0x1e4   :  { %v1297_v23 = vpop.f32.mrb[104].mxu0 }
 0x1e5   :  { %v1620_v36 = vmax.f32 %v4389_v57, %v1297_v23  ;;  %v1299_v40 = vpop.f32.mrb[105].mxu0 }
 0x1e6   :  { %v1300_v24 = vpop.f32.mrb[106].mxu0 }
 0x1e7   :  { %v1684_v41 = vmax.f32 %v1620_v36, %v5082_v14  ;;  %v1621_v61 = vmax.f32 %v4396_v8, %v1300_v24  ;;  %v1302_v39 = vpop.f32.mrb[107].mxu0 }
 0x1e8   :  { %v5084_v39 = vmax.f32 %v4271_v12, %v4486_v18 }
 0x1e9   :  { %v1723_v31 = vadd.f32 %v4602_v54, %v1684_v41  ;;  %v1685_v57 = vmax.f32 %v1621_v61, %v5083_v10 }
 0x1eb   :  { %v1724_v40 = vadd.f32 %v4602_v54, %v1685_v57  ;;  %v1755_v19 = vmax.f32 %v1723_v31, 0.0 }
 0x1ec   :  { %v1305_v23 = vpop.f32.mrb[108].mxu0 }
 0x1ed   :  { %v1756_v48 = vmax.f32 %v1724_v40, 0.0  ;;  %v1622_v5 = vmax.f32 %v4404_v21, %v1305_v23  ;;  %v1307_v30 = vpop.f32.mrb[109].mxu0 }
 0x1ee   :  { %v1308_v22 = vpop.f32.mrb[110].mxu0 }
 0x1ef   :  { %v4614_v3 = vpack.c.bf16 %v1756_v48, %v1755_v19  ;;  %v1686_v60 = vmax.f32 %v1622_v5, %v5084_v39  ;;  %v1623_v8 = vmax.f32 %v4411_v35, %v1308_v22  ;;  %v1310_v24 = vpop.f32.mrb[111].mxu0  ;;  %v5086_v22 = vmax.f32 %v4276_v17, %v4502_v45 }
 0x1f1   :  { %v1725_v6 = vadd.f32 %v4602_v54, %v1686_v60  ;;  %v1687_v61 = vmax.f32 %v1623_v8, %v5085_v43 }
 0x1f3   :  { %v1726_v14 = vadd.f32 %v4602_v54, %v1687_v61  ;;  %v1757_v30 = vmax.f32 %v1725_v6, 0.0 }
 0x1f4   :  { %v1313_v21 = vpop.f32.mrb[112].mxu0 }
 0x1f5   :  { %v1758_v31 = vmax.f32 %v1726_v14, 0.0  ;;  %v1624_v48 = vmax.f32 %v4419_v50, %v1313_v21  ;;  %v1315_v19 = vpop.f32.mrb[113].mxu0 }
 0x1f6   :  { %v1316_v36 = vpop.f32.mrb[114].mxu0 }
 0x1f7   :  { %v4626_v12 = vpack.c.bf16 %v1758_v31, %v1757_v30  ;;  %v1688_v35 = vmax.f32 %v1624_v48, %v5086_v22  ;;  %v1625_v18 = vmax.f32 %v4426_v7, %v1316_v36  ;;  %v1318_v5 = vpop.f32.mrb[115].mxu0  ;;  %v5088_v7 = vmax.f32 %v4290_v26, %v4520_v1 }
 0x1f9   :  { %v1727_v15 = vadd.f32 %v4602_v54, %v1688_v35  ;;  %v1689_v41 = vmax.f32 %v1625_v18, %v5087_v25 }
 0x1fb   :  { %v1728_v10 = vadd.f32 %v4602_v54, %v1689_v41  ;;  %v1759_v57 = vmax.f32 %v1727_v15, 0.0 }
 0x1fc   :  { %v1321_v50 = vpop.f32.mrb[116].mxu0 }
 0x1fd   :  { %v1760_v40 = vmax.f32 %v1728_v10, 0.0  ;;  %v1626_v23 = vmax.f32 %v4434_v28, %v1321_v50  ;;  %v1323_v39 = vpop.f32.mrb[117].mxu0 }
 0x1fe   :  { %v1324_v60 = vpop.f32.mrb[118].mxu0 }
 0x1ff   :  { %v4638_v17 = vpack.c.bf16 %v1760_v40, %v1759_v57  ;;  %v1690_v45 = vmax.f32 %v1626_v23, %v5088_v7  ;;  %v1627_v8 = vmax.f32 %v4441_v56, %v1324_v60  ;;  %v1326_v24 = vpop.f32.mrb[119].mxu0  ;;  %v5090_v56 = vmax.f32 %v4297_v32, %v4536_v51 }
 0x201   :  { %v1729_v20 = vadd.f32 %v4602_v54, %v1690_v45  ;;  %v1691_v6 = vmax.f32 %v1627_v8, %v5089_v13 }
 0x203   :  { %v1730_v43 = vadd.f32 %v4602_v54, %v1691_v6  ;;  %v1761_v61 = vmax.f32 %v1729_v20, 0.0 }
 0x204   :  { %v1329_v28 = vpop.f32.mrb[120].mxu0 }
 0x205   :  { %v1762_v14 = vmax.f32 %v1730_v43, 0.0  ;;  %v1628_v21 = vmax.f32 %v4449_v27, %v1329_v28  ;;  %v1331_v30 = vpop.f32.mrb[121].mxu0 }
 0x206   :  { %v1332_v31 = vpop.f32.mrb[122].mxu0  ;;  %v5099_v30 = vld [vmem:[#allocation11_spill] sm:$0xff] }
 0x207   :  { %v4650_v26 = vpack.c.bf16 %v1762_v14, %v1761_v61  ;;  %v1692_v1 = vmax.f32 %v1628_v21, %v5090_v56  ;;  %v1629_v48 = vmax.f32 %v4456_v16, %v1332_v31  ;;  %v1334_v19 = vpop.f32.mrb[123].mxu0  ;;  %v5092_v16 = vmax.f32 %v4312_v42, %v4552_v63  ;;  %v5097_v14 = vld [vmem:[#allocation32_spill] sm:$0xff] }
 0x209   :  { %v1731_v29 = vadd.f32 %v4602_v54, %v1692_v1  ;;  %v1693_v36 = vmax.f32 %v1629_v48, %v5091_v47  ;;  %v5101_v1 = vld [vmem:[#allocation33_spill] sm:$0xff] }
 0x20a   :  { %v5102_v48 = vmax.f32 %v5100_v9, %v5101_v1 }
 0x20b   :  { %v1732_v22 = vadd.f32 %v4602_v54, %v1693_v36  ;;  %v1763_v35 = vmax.f32 %v1731_v29, 0.0 }
 0x20c   :  { %v1337_v27 = vpop.f32.mrb[124].mxu0 }
 0x20d   :  { %v1764_v18 = vmax.f32 %v1732_v22, 0.0  ;;  %v1630_v5 = vmax.f32 %v4460_v44, %v1337_v27  ;;  %v1339_v15 = vpop.f32.mrb[125].mxu0  ;;  %v5103_v22 = vld [vmem:[#allocation13_spill] sm:$0xff] }
 0x20e   :  { %v1340_v25 = vpop.f32.mrb[126].mxu0 }
 0x20f   :  { %v4662_v32 = vpack.c.bf16 %v1764_v18, %v1763_v35  ;;  %v1694_v51 = vmax.f32 %v1630_v5, %v5092_v16  ;;  %v1631_v41 = vmax.f32 %v4464_v37, %v1340_v25  ;;  %v1342_v10 = vpop.f32.mrb[127].mxu0  ;;  %v5094_v37 = vmax.f32 %v4235_v55, %v4468_v33  ;;  %v5096_v33 = vld [vmem:[#allocation2_spill] sm:$0xff]  ;;  %v5104_v25 = vld [vmem:[#allocation4_spill] sm:$0xff] }
 0x210   :  { %v3714_v5 = vld [vmem:[%s4994_s3] sm:$0xff]   ;;  %v5107_v10 = vld [vmem:[#allocation15_spill] sm:$0xff] }
 0x211   :  { %v1733_v38 = vadd.f32 %v4602_v54, %v1694_v51  ;;  %v1695_v50 = vmax.f32 %v1631_v41, %v5093_v34  ;;  %v5105_v16 = vld [vmem:[#allocation34_spill] sm:$0xff] }
 0x212   :  { %v5106_v51 = vmax.f32 %v5104_v25, %v5105_v16 }
 0x213   :  { %v1734_v57 = vadd.f32 %v4602_v54, %v1695_v50  ;;  %v1765_v40 = vmax.f32 %v1733_v38, 0.0 }
 0x214   :  { %v1345_v44 = vpop.f32.mrb[128].mxu0 }
 0x215   :  { %v1766_v23 = vmax.f32 %v1734_v57, 0.0  ;;  %v1632_v39 = vmax.f32 %v1345_v44, %v4327_v53  ;;  %v1347_v60 = vpop.f32.mrb[129].mxu0  ;;  %v5108_v57 = vld [vmem:[#allocation5_spill] sm:$0xff]  ;;  %v5109_v44 = vld [vmem:[#allocation35_spill] sm:$0xff] }
 0x216   :  { %v1348_v7 = vpop.f32.mrb[130].mxu0  ;;  %v5111_v60 = vmov 0.0  }
 0x217   :  { %v4674_v42 = vpack.c.bf16 %v1766_v23, %v1765_v40  ;;  %v1664_v63 = vmax.f32 %v5094_v37, %v1632_v39  ;;  %v1633_v45 = vmax.f32 %v1348_v7, %v4337_v62  ;;  %v1350_v8 = vpop.f32.mrb[131].mxu0  ;;  %v5098_v62 = vmax.f32 %v5096_v33, %v5097_v14  ;;  %v3715_v39 = vld [vmem:[%s4994_s3 + $0x8] sm:$0xff]  }
 0x218   :  { %v5110_v40 = vmax.f32 %v5108_v57, %v5109_v44  ;;  %v5112_v8 = vld [vmem:[#allocation17_spill] sm:$0xff] }
 0x219   :  { %v1703_v49 = vadd.f32 %v4602_v54, %v1664_v63  ;;  %v1665_v24 = vmax.f32 %v5095_v0, %v1633_v45 }
 0x21b   :  { %v1704_v20 = vadd.f32 %v4602_v54, %v1665_v24  ;;  %v1735_v13 = vmax.f32 %v1703_v49, 0.0 }
 0x21c   :  { %v1353_v53 = vpop.f32.mrb[132].mxu0 }
 0x21d   :  { %v1736_v6 = vmax.f32 %v1704_v20, 0.0  ;;  %v1634_v43 = vmax.f32 %v1353_v53, %v4342_v4  ;;  %v1355_v28 = vpop.f32.mrb[133].mxu0  ;;  %v3716_v20 = vld [vmem:[%s4994_s3 + $0x20] sm:$0xff]  }
 0x21e   :  { %v1356_v61 = vpop.f32.mrb[134].mxu0 }
 0x21f   :  { %v1767_v55 = vpack.c.bf16 %v1736_v6, %v1735_v13  ;;  %v1666_v21 = vmax.f32 %v5098_v62, %v1634_v43  ;;  %v1635_v31 = vmax.f32 %v1356_v61, %v5099_v30  ;;  %v1358_v56 = vpop.f32.mrb[135].mxu0  ;;  %v5113_v13 = vld [vmem:[#allocation6_spill] sm:$0xff]  ;;  %v5114_v6 = vld [vmem:[#allocation36_spill] sm:$0xff]  ;;  %v5116_v61 = vld [vmem:[#allocation19_spill] sm:$0xff] }
 0x220   :  { %v5115_v43 = vmax.f32 %v5113_v13, %v5114_v6  ;;  %v5118_v30 = vld [vmem:[#allocation37_spill] sm:$0xff] }
 0x221   :  { %v1705_v58 = vadd.f32 %v4602_v54, %v1666_v21  ;;  %v1667_v19 = vmax.f32 %v5102_v48, %v1635_v31  ;;  %v5117_v21 = vld [vmem:[#allocation7_spill] sm:$0xff] }
 0x222   :  { %v5119_v31 = vmax.f32 %v5117_v21, %v5118_v30 }
 0x223   :  { %v1706_v29 = vadd.f32 %v4602_v54, %v1667_v19  ;;  %v1737_v4 = vmax.f32 %v1705_v58, 0.0  ;;  %v3717_v58 = vld [vmem:[%s4994_s3 + $0x28] sm:$0xff]  }
 0x224   :  { %v1361_v47 = vpop.f32.mrb[136].mxu0 }
 0x225   :  { %v1738_v36 = vmax.f32 %v1706_v29, 0.0  ;;  %v1636_v27 = vmax.f32 %v1361_v47, %v5103_v22  ;;  %v1363_v35 = vpop.f32.mrb[137].mxu0  ;;  %v5120_v29 = vld [vmem:[#allocation20_spill] sm:$0xff] }
 0x226   :  { %v1364_v18 = vpop.f32.mrb[138].mxu0  ;;  %v5122_v35 = vld [vmem:[#allocation38_spill] sm:$0xff] }
 0x227   :  { %v1768_v15 = vpack.c.bf16 %v1738_v36, %v1737_v4  ;;  %v1668_v41 = vmax.f32 %v5106_v51, %v1636_v27  ;;  %v1637_v38 = vmax.f32 %v1364_v18, %v5107_v10  ;;  %v1366_v34 = vpop.f32.mrb[139].mxu0  ;;  %v3718_v36 = vld [vmem:[%s4994_s3 + $0x30] sm:$0xff]   ;;  %v5126_v10 = vld [vmem:[#allocation39_spill] sm:$0xff] }
 0x228   :  { %v5121_v27 = vld [vmem:[#allocation8_spill] sm:$0xff] }
 0x229   :  { %v1707_v50 = vadd.f32 %v4602_v54, %v1668_v41  ;;  %v1669_v23 = vmax.f32 %v5110_v40, %v1637_v38  ;;  %3326 = vmatmul.mubr.msk.bf16.vlgmr.msra.gmra.mrb[88].mxu1 %vm1804_vm3, %v1768_v15  ;;  %v5123_v18 = vmax.f32 %v5121_v27, %v5122_v35  ;;  %v5124_v15 = vld [vmem:[#allocation21_spill] sm:$0xff]  ;;  %v5139_v27 = vld [vmem:[#allocation43_spill] sm:$0xff] }
 0x22a   :  { %3330 = vmatpush3.bf16.msra.mxu1 %v3714_v5  ;;  %3333 = vmatprep.mubr.msk.bf16.mxu1 %vm3762_vm2, %v5111_v60  ;;  %v5125_v41 = vld [vmem:[#allocation9_spill] sm:$0xff]  ;;  %v5140_v35 = vmax.f32 %v4332_v59, %v5139_v27  ;;  %v3728_v27 = vld [vmem:[%s4994_s3 + $0x80] sm:$0xff]  }
 0x22b   :  { %v1708_v7 = vadd.f32 %v4602_v54, %v1669_v23  ;;  %3331 = vmatprep.subr.bf16.mxu1 %v5111_v60  ;;  %v1739_v63 = vmax.f32 %v1707_v50, 0.0  ;;  %v5127_v38 = vmax.f32 %v5125_v41, %v5126_v10  ;;  %v3719_v50 = vld [vmem:[%s4994_s3 + $0x38] sm:$0xff]  }
 0x22c   :  { %v1369_v37 = vpop.f32.mrb[140].mxu0 }
 0x22d   :  { %v1740_v45 = vmax.f32 %v1708_v7, 0.0  ;;  %v1638_v49 = vmax.f32 %v1369_v37, %v5112_v8  ;;  %v1371_v0 = vpop.f32.mrb[141].mxu0 }
 0x22e   :  { %3332 = vmatpush3.bf16.msra.mxu1 %v3715_v39  ;;  %v1372_v24 = vpop.f32.mrb[142].mxu0  ;;  %v5128_v39 = vld [vmem:[#allocation22_spill] sm:$0xff]  ;;  %v5130_v0 = vld [vmem:[#allocation40_spill] sm:$0xff] }
 0x22f   :  { %v1769_v53 = vpack.c.bf16 %v1740_v45, %v1739_v63  ;;  %v1670_v28 = vmax.f32 %v5115_v43, %v1638_v49  ;;  %v1639_v33 = vmax.f32 %v1372_v24, %v5116_v61  ;;  %3337 = vmatprep.subr.bf16.mxu1 %v5111_v60  ;;  %v1374_v14 = vpop.f32.mrb[143].mxu0  ;;  %v3720_v45 = vld [vmem:[%s4994_s3 + $0x40] sm:$0xff]  }
 0x230   :  { %v5129_v49 = vld [vmem:[#allocation10_spill] sm:$0xff]  ;;  %v3721_v14 = vld [vmem:[%s4994_s3 + $0x48] sm:$0xff]  }
 0x231   :  { %v1709_v62 = vadd.f32 %v4602_v54, %v1670_v28  ;;  %v1671_v56 = vmax.f32 %v5119_v31, %v1639_v33  ;;  %3334 = vmatmul.mubr.msk.bf16.vlgmr.msra.gmra.mrb[92].mxu1 %vm1804_vm3, %v1767_v55  ;;  %v5131_v24 = vmax.f32 %v5129_v49, %v5130_v0  ;;  %v5133_v28 = vld [vmem:[#allocation41_spill] sm:$0xff] }
 0x232   :  { %3338 = vmatpush3.bf16.msra.mxu1 %v3716_v20  ;;  %3341 = vmatprep.mubr.msk.bf16.mxu1 %vm3762_vm2, %v5111_v60  ;;  %v5134_v61 = vmax.f32 %v4317_v46, %v5133_v28  ;;  %v5148_v28 = vld [vmem:[#allocation12_spill] sm:$0xff] }
 0x233   :  { %v1710_v9 = vadd.f32 %v4602_v54, %v1671_v56  ;;  %3339 = vmatprep.subr.bf16.mxu1 %v5111_v60  ;;  %v1741_v48 = vmax.f32 %v1709_v62, 0.0  ;;  %v5135_v56 = vld [vmem:[#allocation24_spill] sm:$0xff] }
 0x234   :  { %v1377_v1 = vpop.f32.mrb[144].mxu0 }
 0x235   :  { %v1742_v19 = vmax.f32 %v1710_v9, 0.0  ;;  %v1640_v47 = vmax.f32 %v1377_v1, %v5120_v29  ;;  %v1379_v4 = vpop.f32.mrb[145].mxu0  ;;  %v3722_v1 = vld [vmem:[%s4994_s3 + $0x50] sm:$0xff]  }
 0x236   :  { %3340 = vmatpush3.bf16.msra.mxu1 %v3717_v58  ;;  %v1380_v55 = vpop.f32.mrb[146].mxu0  ;;  %v5138_v4 = vld [vmem:[#allocation25_spill] sm:$0xff] }
 0x237   :  { %v1770_v22 = vpack.c.bf16 %v1742_v19, %v1741_v48  ;;  %v1672_v5 = vmax.f32 %v5123_v18, %v1640_v47  ;;  %v1641_v25 = vmax.f32 %v1380_v55, %v5124_v15  ;;  %3345 = vmatprep.subr.bf16.mxu1 %v5111_v60  ;;  %v1382_v16 = vpop.f32.mrb[147].mxu0  ;;  %v5136_v19 = vld [vmem:[#allocation42_spill] sm:$0xff] }
 0x238   :  { %v5137_v29 = vmax.f32 %v4325_v52, %v5136_v19 }
 0x239   :  { %v1711_v51 = vadd.f32 %v4602_v54, %v1672_v5  ;;  %v1673_v34 = vmax.f32 %v5127_v38, %v1641_v25  ;;  %3342 = vmatmul.mubr.msk.bf16.vlgmr.msra.gmra.mrb[96].mxu1 %vm1804_vm3, %v1769_v53  ;;  %v5132_v53 = vld [vmem:[#allocation23_spill] sm:$0xff]  ;;  %v3723_v5 = vld [vmem:[%s4994_s3 + $0x58] sm:$0xff]   ;;  %v3724_v38 = vld [vmem:[%s4994_s3 + $0x60] sm:$0xff]  }
 0x23a   :  { %3346 = vmatpush3.bf16.msra.mxu1 %v3718_v36  ;;  %3349 = vmatprep.mubr.msk.bf16.mxu1 %vm3762_vm2, %v5111_v60 }
 0x23b   :  { %v1712_v57 = vadd.f32 %v4602_v54, %v1673_v34  ;;  %3347 = vmatprep.subr.bf16.mxu1 %v5111_v60  ;;  %v1743_v40 = vmax.f32 %v1711_v51, 0.0  ;;  %v5141_v51 = vld [vmem:[#allocation26_spill] sm:$0xff] }
 0x23c   :  { %v1385_v44 = vpop.f32.mrb[148].mxu0 }
 0x23d   :  { %v1744_v23 = vmax.f32 %v1712_v57, 0.0  ;;  %v1642_v7 = vmax.f32 %v1385_v44, %v5128_v39  ;;  %v1387_v37 = vpop.f32.mrb[149].mxu0 }
 0x23e   :  { %3348 = vmatpush3.bf16.msra.mxu1 %v3719_v50  ;;  %v1388_v63 = vpop.f32.mrb[150].mxu0  ;;  %v5142_v50 = vld [vmem:[#allocation44_spill] sm:$0xff]  ;;  %v5145_v37 = vld [vmem:[#allocation45_spill] sm:$0xff] }
 0x23f   :  { %v1771_v8 = vpack.c.bf16 %v1744_v23, %v1743_v40  ;;  %v1674_v20 = vmax.f32 %v5131_v24, %v1642_v7  ;;  %v1643_v13 = vmax.f32 %v1388_v63, %v5132_v53  ;;  %3353 = vmatprep.subr.bf16.mxu1 %v5111_v60  ;;  %v1390_v6 = vpop.f32.mrb[151].mxu0  ;;  %v5143_v57 = vmax.f32 %v4340_v2, %v5142_v50  ;;  %v5144_v40 = vld [vmem:[#allocation27_spill] sm:$0xff] }
 0x240   :  { %v5146_v63 = vmax.f32 %v4347_v11, %v5145_v37  ;;  %v3726_v6 = vld [vmem:[%s4994_s3 + $0x70] sm:$0xff]   ;;  %v3729_v50 = vld [vmem:[%s4994_s3 + $0x88] sm:$0xff]  }
 0x241   :  { %v1713_v43 = vadd.f32 %v4602_v54, %v1674_v20  ;;  %v1675_v33 = vmax.f32 %v5134_v61, %v1643_v13  ;;  %3350 = vmatmul.mubr.msk.bf16.vlgmr.msra.gmra.mrb[100].mxu1 %vm1804_vm3, %v1770_v22  ;;  %v5147_v20 = vld [vmem:[#allocation28_spill] sm:$0xff]  ;;  %v5149_v61 = vld [vmem:[#allocation46_spill] sm:$0xff]  ;;  %v3733_v37 = vld [vmem:[%s4994_s3 + $0xa8] sm:$0xff]  }
 0x242   :  { %3354 = vmatpush3.bf16.msra.mxu1 %v3720_v45  ;;  %3357 = vmatprep.mubr.msk.bf16.mxu1 %vm3762_vm2, %v5111_v60 }
 0x243   :  { %v1714_v62 = vadd.f32 %v4602_v54, %v1675_v33  ;;  %3355 = vmatprep.subr.bf16.mxu1 %v5111_v60  ;;  %v1745_v30 = vmax.f32 %v1713_v43, 0.0  ;;  %v5150_v33 = vmax.f32 %v5148_v28, %v5149_v61 }
 0x244   :  { %v1393_v21 = vpop.f32.mrb[152].mxu0 }
 0x245   :  { %v1746_v31 = vmax.f32 %v1714_v62, 0.0  ;;  %v1644_v46 = vmax.f32 %v1393_v21, %v5135_v56  ;;  %v1395_v58 = vpop.f32.mrb[153].mxu0  ;;  %v5151_v62 = vld [vmem:[#allocation29_spill] sm:$0xff]  ;;  %v5152_v56 = vld [vmem:[#allocation14_spill] sm:$0xff] }
 0x246   :  { %3356 = vmatpush3.bf16.msra.mxu1 %v3721_v14  ;;  %v1396_v9 = vpop.f32.mrb[154].mxu0 }
 0x247   :  { %v1772_v48 = vpack.c.bf16 %v1746_v31, %v1745_v30  ;;  %v1676_v47 = vmax.f32 %v5137_v29, %v1644_v46  ;;  %v1645_v55 = vmax.f32 %v1396_v9, %v5138_v4  ;;  %3361 = vmatprep.subr.bf16.mxu1 %v5111_v60  ;;  %v1398_v36 = vpop.f32.mrb[155].mxu0  ;;  %v5153_v46 = vld [vmem:[#allocation47_spill] sm:$0xff]  ;;  %v5155_v4 = vld [vmem:[#allocation30_spill] sm:$0xff] }
 0x248   :  { %v5154_v58 = vmax.f32 %v5152_v56, %v5153_v46 }
 0x249   :  { %v1715_v22 = vadd.f32 %v4602_v54, %v1676_v47  ;;  %v1677_v18 = vmax.f32 %v5140_v35, %v1645_v55  ;;  %3358 = vmatmul.mubr.msk.bf16.vlgmr.msra.gmra.mrb[104].mxu1 %vm1804_vm3, %v1771_v8  ;;  %v3725_v8 = vld [vmem:[%s4994_s3 + $0x68] sm:$0xff]  }
 0x24a   :  { %3362 = vmatpush3.bf16.msra.mxu1 %v3722_v1  ;;  %3365 = vmatprep.mubr.msk.bf16.mxu1 %vm3762_vm2, %v5111_v60  ;;  %v3727_v1 = vld [vmem:[%s4994_s3 + $0x78] sm:$0xff]  }
 0x24b   :  { %v1716_v52 = vadd.f32 %v4602_v54, %v1677_v18  ;;  %3363 = vmatprep.subr.bf16.mxu1 %v5111_v60  ;;  %v1747_v25 = vmax.f32 %v1715_v22, 0.0  ;;  %v5156_v18 = vld [vmem:[#allocation16_spill] sm:$0xff] }
 0x24c   :  { %v1401_v15 = vpop.f32.mrb[156].mxu0 }
 0x24d   :  { %v1748_v16 = vmax.f32 %v1716_v52, 0.0  ;;  %v1646_v59 = vmax.f32 %v1401_v15, %v5141_v51  ;;  %v1403_v41 = vpop.f32.mrb[157].mxu0 }
 0x24e   :  { %3364 = vmatpush3.bf16.msra.mxu1 %v3723_v5  ;;  %v1404_v10 = vpop.f32.mrb[158].mxu0  ;;  %v5157_v5 = vld [vmem:[#allocation48_spill] sm:$0xff]  ;;  %v5160_v41 = vld [vmem:[#allocation18_spill] sm:$0xff] }
 0x24f   :  { %v1773_v34 = vpack.c.bf16 %v1748_v16, %v1747_v25  ;;  %v1678_v44 = vmax.f32 %v5143_v57, %v1646_v59  ;;  %v1647_v23 = vmax.f32 %v1404_v10, %v5144_v40  ;;  %3369 = vmatprep.subr.bf16.mxu1 %v5111_v60  ;;  %v1406_v39 = vpop.f32.mrb[159].mxu0  ;;  %v5158_v52 = vmax.f32 %v5156_v18, %v5157_v5  ;;  %v5159_v25 = vld [vmem:[#allocation31_spill] sm:$0xff]  ;;  %v5161_v10 = vld [vmem:[#allocation49_spill] sm:$0xff] }
 0x251   :  { %v1717_v7 = vadd.f32 %v4602_v54, %v1678_v44  ;;  %v1679_v45 = vmax.f32 %v5146_v63, %v1647_v23  ;;  %3366 = vmatmul.mubr.msk.bf16.vlgmr.msra.gmra.mrb[108].mxu1 %vm1804_vm3, %v1772_v48  ;;  %v3730_v23 = vld [vmem:[%s4994_s3 + $0x90] sm:$0xff]  }
 0x252   :  { %3370 = vmatpush3.bf16.msra.mxu1 %v3724_v38  ;;  %3373 = vmatprep.mubr.msk.bf16.mxu1 %vm3762_vm2, %v5111_v60  ;;  %v5162_v38 = vmax.f32 %v5160_v41, %v5161_v10  ;;  %v3734_v63 = vld [vmem:[%s4994_s3 + $0xb0] sm:$0xff]  }
 0x253   :  { %v1718_v2 = vadd.f32 %v4602_v54, %v1679_v45  ;;  %3371 = vmatprep.subr.bf16.mxu1 %v5111_v60  ;;  %v1749_v0 = vmax.f32 %v1717_v7, 0.0  ;;  %v3731_v7 = vld [vmem:[%s4994_s3 + $0x98] sm:$0xff]  }
 0x254   :  { %v1409_v49 = vpop.f32.mrb[160].mxu0  ;;  %v3735_v45 = vld [vmem:[%s4994_s3 + $0xb8] sm:$0xff]  }
 0x255   :  { %v1750_v24 = vmax.f32 %v1718_v2, 0.0  ;;  %v1648_v11 = vmax.f32 %v1409_v49, %v5147_v20  ;;  %v1411_v53 = vpop.f32.mrb[161].mxu0  ;;  %v3738_v2 = vld [vmem:[%s4994_s3 + $0xd0] sm:$0xff]   ;;  %v3740_v49 = vld [vmem:[%s4994_s3 + $0xe0] sm:$0xff]   ;;  %v3747_v20 = vld [vmem:[%s4996_s5 + $0x18] sm:$0xff]  }
 0x256   :  { %3372 = vmatpush3.bf16.msra.mxu1 %v3725_v8  ;;  %v1412_v13 = vpop.f32.mrb[162].mxu0  ;;  %v3736_v8 = vld [vmem:[%s4994_s3 + $0xc0] sm:$0xff]   ;;  %v3749_v53 = vld [vmem:[%s4996_s5 + $0x28] sm:$0xff]  }
 0x257   :  { %v1774_v43 = vpack.c.bf16 %v1750_v24, %v1749_v0  ;;  %v1680_v14 = vmax.f32 %v5150_v33, %v1648_v11  ;;  %v1649_v21 = vmax.f32 %v1412_v13, %v5151_v62  ;;  %3377 = vmatprep.subr.bf16.mxu1 %v5111_v60  ;;  %v1414_v30 = vpop.f32.mrb[163].mxu0  ;;  %v3742_v0 = vld [vmem:[%s4994_s3 + $0xf0] sm:$0xff]   ;;  %v3745_v24 = vld [vmem:[%s4996_s5 + $0x8] sm:$0xff]   ;;  %v3748_v11 = vld [vmem:[%s4996_s5 + $0x20] sm:$0xff]  }
 0x258   :  { %v3750_v13 = vld [vmem:[%s4996_s5 + $0x30] sm:$0xff]  }
 0x259   :  { %v1719_v31 = vadd.f32 %v4602_v54, %v1680_v14  ;;  %v1681_v9 = vmax.f32 %v5154_v58, %v1649_v21  ;;  %3374 = vmatmul.mubr.msk.bf16.vlgmr.msra.gmra.mrb[112].mxu1 %vm1804_vm3, %v1773_v34 }
 0x25a   :  { %3378 = vmatpush3.bf16.msra.mxu1 %v3726_v6  ;;  %3381 = vmatprep.mubr.msk.bf16.mxu1 %vm3762_vm2, %v5111_v60  ;;  %v3751_v6 = vld [vmem:[%s4996_s5 + $0x38] sm:$0xff]  }
 0x25b   :  { %v1720_v48 = vadd.f32 %v4602_v54, %v1681_v9  ;;  %3379 = vmatprep.subr.bf16.mxu1 %v5111_v60  ;;  %v1751_v29 = vmax.f32 %v1719_v31, 0.0 }
 0x25c   :  { %v1417_v19 = vpop.f32.mrb[164].mxu0 }
 0x25d   :  { %v1752_v47 = vmax.f32 %v1720_v48, 0.0  ;;  %v1650_v55 = vmax.f32 %v1417_v19, %v5155_v4  ;;  %v1419_v36 = vpop.f32.mrb[165].mxu0 }
 0x25e   :  { %3380 = vmatpush3.bf16.msra.mxu1 %v3727_v1  ;;  %v1420_v22 = vpop.f32.mrb[166].mxu0 }
 0x25f   :  { %v1775_v35 = vpack.c.bf16 %v1752_v47, %v1751_v29  ;;  %v1682_v15 = vmax.f32 %v5158_v52, %v1650_v55  ;;  %v1651_v16 = vmax.f32 %v1420_v22, %v5159_v25  ;;  %3385 = vmatprep.subr.bf16.mxu1 %v5111_v60  ;;  %v1422_v51 = vpop.f32.mrb[167].mxu0 }
 0x261   :  { %v1721_v59 = vadd.f32 %v4602_v54, %v1682_v15  ;;  %v1683_v34 = vmax.f32 %v5162_v38, %v1651_v16  ;;  %3382 = vmatmul.mubr.msk.bf16.vlgmr.msra.gmra.mrb[116].mxu1 %vm1804_vm3, %v1774_v43 }
 0x262   :  { %3386 = vmatpush3.bf16.msra.mxu1 %v3728_v27  ;;  %3389 = vmatprep.mubr.msk.bf16.mxu1 %vm3762_vm2, %v5111_v60 }
 0x263   :  { %v1722_v57 = vadd.f32 %v4602_v54, %v1683_v34  ;;  %3387 = vmatprep.subr.bf16.mxu1 %v5111_v60  ;;  %v1753_v44 = vmax.f32 %v1721_v59, 0.0  ;;  %v3732_v54 = vld [vmem:[%s4994_s3 + $0xa0] sm:$0xff]  }
 0x265   :  { %v1754_v40 = vmax.f32 %v1722_v57, 0.0 }
 0x266   :  { %3388 = vmatpush3.bf16.msra.mxu1 %v3729_v50 }
 0x267   :  { %v1776_v39 = vpack.c.bf16 %v1754_v40, %v1753_v44  ;;  %3393 = vmatprep.subr.bf16.mxu1 %v5111_v60 }
 0x269   :  { %3390 = vmatmul.mubr.msk.bf16.vlgmr.msra.gmra.mrb[120].mxu1 %vm1804_vm3, %v1775_v35 }
 0x26a   :  { %3394 = vmatpush3.bf16.msra.mxu1 %v3730_v23  ;;  %3397 = vmatprep.mubr.msk.bf16.mxu1 %vm3762_vm2, %v5111_v60 }
 0x26b   :  { %3395 = vmatprep.subr.bf16.mxu1 %v5111_v60 }
 0x26e   :  { %3396 = vmatpush3.bf16.msra.mxu1 %v3731_v7 }
 0x26f   :  { %3401 = vmatprep.subr.bf16.mxu1 %v5111_v60 }
 0x271   :  { %3398 = vmatmul.mubr.msk.bf16.vlgmr.msra.gmra.mrb[124].mxu1 %vm1804_vm3, %v1776_v39 }
 0x272   :  { %3402 = vmatpush3.bf16.msra.mxu1 %v3732_v54  ;;  %3405 = vmatprep.mubr.msk.bf16.mxu1 %vm3762_vm2, %v5111_v60 }
 0x273   :  { %3403 = vmatprep.subr.bf16.mxu1 %v5111_v60 }
 0x276   :  { %3404 = vmatpush3.bf16.msra.mxu1 %v3733_v37 }
 0x277   :  { %3409 = vmatprep.subr.bf16.mxu1 %v5111_v60 }
 0x279   :  { %3406 = vmatmul.mubr.msk.bf16.vlgmr.msra.gmra.mrb[128].mxu1 %vm1804_vm3, %v4614_v3  ;;  %v3737_v3 = vld [vmem:[%s4994_s3 + $0xc8] sm:$0xff]  }
 0x27a   :  { %3410 = vmatpush3.bf16.msra.mxu1 %v3734_v63  ;;  %3413 = vmatprep.mubr.msk.bf16.mxu1 %vm3762_vm2, %v5111_v60 }
 0x27b   :  { %3411 = vmatprep.subr.bf16.mxu1 %v5111_v60 }
 0x27e   :  { %3412 = vmatpush3.bf16.msra.mxu1 %v3735_v45 }
 0x27f   :  { %3417 = vmatprep.subr.bf16.mxu1 %v5111_v60 }
 0x281   :  { %3414 = vmatmul.mubr.msk.bf16.vlgmr.msra.gmra.mrb[132].mxu1 %vm1804_vm3, %v4626_v12  ;;  %v3739_v12 = vld [vmem:[%s4994_s3 + $0xd8] sm:$0xff]  }
 0x282   :  { %3418 = vmatpush3.bf16.msra.mxu1 %v3736_v8  ;;  %3421 = vmatprep.mubr.msk.bf16.mxu1 %vm3762_vm2, %v5111_v60 }
 0x283   :  { %3419 = vmatprep.subr.bf16.mxu1 %v5111_v60 }
 0x286   :  { %3420 = vmatpush3.bf16.msra.mxu1 %v3737_v3 }
 0x287   :  { %3425 = vmatprep.subr.bf16.mxu1 %v5111_v60 }
 0x289   :  { %3422 = vmatmul.mubr.msk.bf16.vlgmr.msra.gmra.mrb[136].mxu1 %vm1804_vm3, %v4638_v17  ;;  %v3741_v17 = vld [vmem:[%s4994_s3 + $0xe8] sm:$0xff]  }
 0x28a   :  { %3426 = vmatpush3.bf16.msra.mxu1 %v3738_v2  ;;  %3429 = vmatprep.mubr.msk.bf16.mxu1 %vm3762_vm2, %v5111_v60 }
 0x28b   :  { %3427 = vmatprep.subr.bf16.mxu1 %v5111_v60 }
 0x28e   :  { %3428 = vmatpush3.bf16.msra.mxu1 %v3739_v12 }
 0x28f   :  { %3433 = vmatprep.subr.bf16.mxu1 %v5111_v60 }
 0x291   :  { %3430 = vmatmul.mubr.msk.bf16.vlgmr.msra.gmra.mrb[140].mxu1 %vm1804_vm3, %v4650_v26  ;;  %v3743_v26 = vld [vmem:[%s4994_s3 + $0xf8] sm:$0xff]  }
 0x292   :  { %3434 = vmatpush3.bf16.msra.mxu1 %v3740_v49  ;;  %3437 = vmatprep.mubr.msk.bf16.mxu1 %vm3762_vm2, %v5111_v60 }
 0x293   :  { %3435 = vmatprep.subr.bf16.mxu1 %v5111_v60 }
 0x296   :  { %3436 = vmatpush3.bf16.msra.mxu1 %v3741_v17 }
 0x297   :  { %3441 = vmatprep.subr.bf16.mxu1 %v5111_v60 }
 0x299   :  { %3438 = vmatmul.mubr.msk.bf16.vlgmr.msra.gmra.mrb[144].mxu1 %vm1804_vm3, %v4662_v32  ;;  %v3744_v32 = vld [vmem:[%s4996_s5] sm:$0xff]  }
 0x29a   :  { %3442 = vmatpush3.bf16.msra.mxu1 %v3742_v0  ;;  %3445 = vmatprep.mubr.msk.bf16.mxu1 %vm3762_vm2, %v5111_v60 }
 0x29b   :  { %3443 = vmatprep.subr.bf16.mxu1 %v5111_v60 }
 0x29e   :  { %3444 = vmatpush3.bf16.msra.mxu1 %v3743_v26 }
 0x29f   :  { %3449 = vmatprep.subr.bf16.mxu1 %v5111_v60 }
 0x2a1   :  { %3446 = vmatmul.mubr.msk.bf16.vlgmr.msra.gmra.mrb[148].mxu1 %vm1804_vm3, %v4674_v42  ;;  %v3746_v42 = vld [vmem:[%s4996_s5 + $0x10] sm:$0xff]  }
 0x2a2   :  { %3465 = vmatprep.mubr.msk.bf16.mxu1 %vm3762_vm2, %v5111_v60  ;;  %3450 = vmatpush3.bf16.msra.mxu1 %v3744_v32 }
 0x2a3   :  { %3451 = vmatprep.subr.bf16.mxu1 %v5111_v60 }
 0x2a6   :  { %3452 = vmatpush3.bf16.msra.mxu1 %v3745_v24 }
 0x2a7   :  { %3453 = vmatprep.subr.bf16.mxu1 %v5111_v60 }
 0x2aa   :  { %3454 = vmatpush3.bf16.msra.mxu1 %v3746_v42 }
 0x2ab   :  { %3455 = vmatprep.subr.bf16.mxu1 %v5111_v60 }
 0x2ae   :  { %3456 = vmatpush3.bf16.msra.mxu1 %v3747_v20 }
 0x2af   :  { %3457 = vmatprep.subr.bf16.mxu1 %v5111_v60 }
 0x2b2   :  { %3458 = vmatpush3.bf16.msra.mxu1 %v3748_v11 }
 0x2b3   :  { %3459 = vmatprep.subr.bf16.mxu1 %v5111_v60 }
 0x2b6   :  { %3460 = vmatpush3.bf16.msra.mxu1 %v3749_v53 }
 0x2b7   :  { %3461 = vmatprep.subr.bf16.mxu1 %v5111_v60 }
 0x2ba   :  { %3462 = vmatpush3.bf16.msra.mxu1 %v3750_v13 }
 0x2bb   :  { %3463 = vmatprep.subr.bf16.mxu1 %v5111_v60 }
 0x2be   :  { %3464 = vmatpush3.bf16.msra.mxu1 %v3751_v6 }
 0x2fc   :  { %v1842_v43 = vpop.f32.mrb[88].mxu1 }
 0x2fd   :  { %v3327_v28 = vpop.f32.mrb[89].mxu1 }
 0x2fe   :  { %v1845_v61 = vpop.f32.mrb[90].mxu1 }
 0x2ff   :  { %v3328_v33 = vpop.f32.mrb[91].mxu1 }
 0x304   :  { %v1898_v14 = vpop.f32.mrb[92].mxu1 }
 0x305   :  { %v1899_v62 = vadd.f32 %v1898_v14, %v1842_v43  ;;  %v3335_v21 = vpop.f32.mrb[93].mxu1 }
 0x306   :  { %v1901_v30 = vpop.f32.mrb[94].mxu1 }
 0x307   :  { %v1902_v31 = vadd.f32 %v1901_v30, %v1845_v61  ;;  %v3336_v56 = vpop.f32.mrb[95].mxu1 }
 0x30c   :  { %v1959_v46 = vpop.f32.mrb[96].mxu1 }
 0x30d   :  { %v1966_v58 = vadd.f32 %v1959_v46, %v1899_v62  ;;  %v3343_v9 = vpop.f32.mrb[97].mxu1 }
 0x30e   :  { %v1962_v1 = vpop.f32.mrb[98].mxu1 }
 0x30f   :  { %v1967_v60 = vadd.f32 %v1962_v1, %v1902_v31  ;;  %v3344_v48 = vpop.f32.mrb[99].mxu1 }
 0x314   :  { %v2022_v19 = vpop.f32.mrb[100].mxu1 }
 0x315   :  { %v2029_v29 = vadd.f32 %v2022_v19, %v1966_v58  ;;  %v3351_v47 = vpop.f32.mrb[101].mxu1 }
 0x316   :  { %v2025_v4 = vpop.f32.mrb[102].mxu1 }
 0x317   :  { %v2030_v55 = vadd.f32 %v2025_v4, %v1967_v60  ;;  %v3352_v36 = vpop.f32.mrb[103].mxu1 }
 0x31c   :  { %v2085_v22 = vpop.f32.mrb[104].mxu1 }
 0x31d   :  { %v2092_v27 = vadd.f32 %v2085_v22, %v2029_v29  ;;  %v3359_v35 = vpop.f32.mrb[105].mxu1 }
 0x31e   :  { %v2088_v18 = vpop.f32.mrb[106].mxu1 }
 0x31f   :  { %v2093_v5 = vadd.f32 %v2088_v18, %v2030_v55  ;;  %v3360_v52 = vpop.f32.mrb[107].mxu1  ;;  %v3254_v18 = vld [vmem:[%s4997_s4] ss:$0 sm:$0xff] }
 0x324   :  { %v2148_v15 = vpop.f32.mrb[108].mxu1 }
 0x325   :  { %v2155_v25 = vadd.f32 %v2148_v15, %v2092_v27  ;;  %v3367_v16 = vpop.f32.mrb[109].mxu1 }
 0x326   :  { %v2151_v51 = vpop.f32.mrb[110].mxu1 }
 0x327   :  { %v2156_v59 = vadd.f32 %v2151_v51, %v2093_v5  ;;  %v3368_v41 = vpop.f32.mrb[111].mxu1 }
 0x32c   :  { %v2211_v10 = vpop.f32.mrb[112].mxu1 }
 0x32d   :  { %v2218_v38 = vadd.f32 %v2211_v10, %v2155_v25  ;;  %v3375_v34 = vpop.f32.mrb[113].mxu1 }
 0x32e   :  { %v2214_v50 = vpop.f32.mrb[114].mxu1  ;;  %v3255_v34 = vld [vmem:[%s4998_s6] ss:$0 sm:$0xff] }
 0x32f   :  { %v2219_v57 = vadd.f32 %v2214_v50, %v2156_v59  ;;  %v3376_v44 = vpop.f32.mrb[115].mxu1 }
 0x334   :  { %v2274_v40 = vpop.f32.mrb[116].mxu1 }
 0x335   :  { %v2281_v23 = vadd.f32 %v2274_v40, %v2218_v38  ;;  %v3383_v39 = vpop.f32.mrb[117].mxu1 }
 0x336   :  { %v2277_v7 = vpop.f32.mrb[118].mxu1 }
 0x337   :  { %v2282_v54 = vadd.f32 %v2277_v7, %v2219_v57  ;;  %v3384_v37 = vpop.f32.mrb[119].mxu1 }
 0x33c   :  { %v2337_v63 = vpop.f32.mrb[120].mxu1 }
 0x33d   :  { %v2344_v45 = vadd.f32 %v2337_v63, %v2281_v23  ;;  %v3391_v8 = vpop.f32.mrb[121].mxu1 }
 0x33e   :  { %v2340_v3 = vpop.f32.mrb[122].mxu1 }
 0x33f   :  { %v2345_v2 = vadd.f32 %v2340_v3, %v2282_v54  ;;  %v3392_v12 = vpop.f32.mrb[123].mxu1 }
 0x344   :  { %v2400_v49 = vpop.f32.mrb[124].mxu1 }
 0x345   :  { %v2407_v17 = vadd.f32 %v2400_v49, %v2344_v45  ;;  %v3399_v0 = vpop.f32.mrb[125].mxu1 }
 0x346   :  { %v2403_v26 = vpop.f32.mrb[126].mxu1 }
 0x347   :  { %v2408_v32 = vadd.f32 %v2403_v26, %v2345_v2  ;;  %v3400_v24 = vpop.f32.mrb[127].mxu1 }
 0x34c   :  { %v2463_v42 = vpop.f32.mrb[128].mxu1 }
 0x34d   :  { %v2470_v20 = vadd.f32 %v2463_v42, %v2407_v17  ;;  %v3407_v11 = vpop.f32.mrb[129].mxu1 }
 0x34e   :  { %v2466_v53 = vpop.f32.mrb[130].mxu1 }
 0x34f   :  { %v2471_v13 = vadd.f32 %v2466_v53, %v2408_v32  ;;  %v3408_v6 = vpop.f32.mrb[131].mxu1 }
 0x354   :  { %v2526_v43 = vpop.f32.mrb[132].mxu1 }
 0x355   :  { %v2533_v28 = vadd.f32 %v2526_v43, %v2470_v20  ;;  %v3415_v61 = vpop.f32.mrb[133].mxu1 }
 0x356   :  { %v2529_v33 = vpop.f32.mrb[134].mxu1 }
 0x357   :  { %v2534_v14 = vadd.f32 %v2529_v33, %v2471_v13  ;;  %v3416_v62 = vpop.f32.mrb[135].mxu1 }
 0x35c   :  { %v2589_v21 = vpop.f32.mrb[136].mxu1 }
 0x35d   :  { %v2596_v30 = vadd.f32 %v2589_v21, %v2533_v28  ;;  %v3423_v31 = vpop.f32.mrb[137].mxu1 }
 0x35e   :  { %v2592_v56 = vpop.f32.mrb[138].mxu1 }
 0x35f   :  { %v2597_v46 = vadd.f32 %v2592_v56, %v2534_v14  ;;  %v3424_v58 = vpop.f32.mrb[139].mxu1 }
 0x364   :  { %v2652_v9 = vpop.f32.mrb[140].mxu1 }
 0x365   :  { %v2659_v1 = vadd.f32 %v2652_v9, %v2596_v30  ;;  %v3431_v60 = vpop.f32.mrb[141].mxu1 }
 0x366   :  { %v2655_v48 = vpop.f32.mrb[142].mxu1 }
 0x367   :  { %v2660_v19 = vadd.f32 %v2655_v48, %v2597_v46  ;;  %v3432_v29 = vpop.f32.mrb[143].mxu1 }
 0x36c   :  { %v2715_v47 = vpop.f32.mrb[144].mxu1 }
 0x36d   :  { %v2722_v4 = vadd.f32 %v2715_v47, %v2659_v1  ;;  %v3439_v55 = vpop.f32.mrb[145].mxu1 }
 0x36e   :  { %v2718_v36 = vpop.f32.mrb[146].mxu1 }
 0x36f   :  { %v2723_v22 = vadd.f32 %v2718_v36, %v2660_v19  ;;  %v3440_v27 = vpop.f32.mrb[147].mxu1 }
 0x374   :  { %v2778_v35 = vpop.f32.mrb[148].mxu1 }
 0x375   :  { %v2785_v5 = vadd.f32 %v2778_v35, %v2722_v4  ;;  %v3447_v52 = vpop.f32.mrb[149].mxu1 }
 0x376   :  { %v2781_v15 = vpop.f32.mrb[150].mxu1 }
 0x377   :  { %v2794_v25 = vadd.f32 %v3254_v18, %v2785_v5  ;;  %v2786_v16 = vadd.f32 %v2781_v15, %v2723_v22  ;;  %v3448_v51 = vpop.f32.mrb[151].mxu1 }
 0x379   :  { %v2795_v59 = vadd.f32 %v3254_v18, %v2786_v16  ;;  %v2796_v41 = vmax.f32 %v2794_v25, 0.0 }
 0x37b   :  { %v2797_v10 = vmax.f32 %v2795_v59, 0.0 }
 0x37d   :  { %v2798_v38 = vpack.c.bf16 %v2797_v10, %v2796_v41 }
 0x37f   :  { %3466 = vmatmul.mubr.bf16.vlgmr.msra.gmra.mrb[152].mxu1 %v2798_v38 }
 0x452   :  { %v2904_v50 = vpop.f32.mrb[152].mxu1 }
 0x453   :  { %v2905_v57 = vadd.f32 %v3255_v34, %v2904_v50  ;;  %v3467_v44 = vpop.f32.mrb[153].mxu1 }
 0x454   :  { %v2907_v40 = vpop.f32.mrb[154].mxu1 }
 0x455   :  { %2911 = vmax.xlane.f32.xlu0 %v2905_v57  ;;  %v3468_v23 = vpop.f32.mrb[155].mxu1  ;;  %v2908_v39 = vadd.f32 %v3255_v34, %v2907_v40 }
 0x459   :  { %2913 = vmax.xlane.f32.xlu0 %v2908_v39 }
 0x4e2   :  { %v2912_v7 = vpop.xlane.xlu0 %2911 }
 0x4e3   :  { %v2915_v54 = vsub.f32 %v2905_v57, %v2912_v7 }
 0x4e5   :  { %v2917_v37 = vmul.f32 1.442695, %v2915_v54 }
 0x4e6   :  { %v2914_v63 = vpop.xlane.xlu0 %2913 }
 0x4e7   :  { %v2916_v45 = vsub.f32 %v2908_v39, %v2914_v63  ;;  %3752 = vpow2.f32 %v2917_v37 }
 0x4e9   :  { %v2919_v8 = vmul.f32 1.442695, %v2916_v45 }
 0x4eb   :  { %3754 = vpow2.f32 %v2919_v8 }
 0x4f1   :  { %v3753_v3 = vpop.eup %3752 }
 0x4f2   :  { %2921 = vadd.xlane.f32.xlu1 %v3753_v3 }
 0x4f5   :  { %v3755_v2 = vpop.eup %3754 }
 0x4f6   :  { %2923 = vadd.xlane.f32.xlu1 %v3755_v2 }
 0x57f   :  { %v2922_v12 = vpop.xlane.xlu1 %2921 }
 0x580   :  { %3756 = vlog2.f32 %v2922_v12 }
 0x583   :  { %v2924_v49 = vpop.xlane.xlu1 %2923 }
 0x584   :  { %3758 = vlog2.f32 %v2924_v49 }
 0x58a   :  { %v3757_v17 = vpop.eup %3756 }
 0x58b   :  { %v2926_v0 = vmul.f32 0.6931472, %v3757_v17 }
 0x58d   :  { %v2929_v26 = vsub.f32 %v2915_v54, %v2926_v0 }
 0x58e   :  { %v3759_v32 = vpop.eup %3758 }
 0x58f   :  { %2931 = vst [vmem:[%s4999_s7] sm:$0xff] %v2929_v26  ;;  %v2928_v24 = vmul.f32 0.6931472, %v3759_v32 }
 0x591   :  { %v2930_v42 = vsub.f32 %v2916_v45, %v2928_v24 }
 0x593   :  { %2932 = vst [vmem:[%s4999_s7 + $0x8] sm:$0xff] %v2930_v42 }

</bundles_post_ra>
